<compile_context>
chip_gen: v7x
topology: tpu7x:2x2x1
jax: 0.10.0
libtpu: 0.0.40
codegen_flags: <defaults>
</compile_context>

<pallas_src>
import functools

import jax
import jax.numpy as jnp
from jax.experimental import pallas as pl
from jax.experimental.pallas import tpu as pltpu

EMB_DIM = 512
KSIZE = 3
PAD = 2          # dilation=1 -> pad = dil * (KSIZE - 1)
LANE = 128


def _round_up(x, m):
    return ((x + m - 1) // m) * m


# --------------------------------------------------------------------------
# Fused forward kernel: feature injection + n_layers residual blocks.
# Activation layout inside the kernel: flat (N*Lp, C_pad) f32, where each
# sequence occupies Lp (multiple of 8) consecutive rows.
# --------------------------------------------------------------------------
def _fused_kernel(feat_ref, wf_ref, x_ref, *rest, shortcut_flags, Lp):
    o_ref = rest[-1]
    wrefs = rest[:-1]

    # Feature projection (bias folded into wf via constant-1 channel).
    # feats are nonzero only on row 0 of each sequence -> the add injects the
    # projected image feature exactly at position t=0 (matches torch.cat).
    inject = jnp.dot(feat_ref[...], wf_ref[...],
                     preferred_element_type=jnp.float32)
    x = x_ref[...] + inject                                   # (rows, 512) f32

    def shift_rows(h, s):
        # shift_rows(h, s)[r] = h[r-s] within each Lp-row sequence, 0 for t<s.
        if s == 0:
            return h
        r, c = h.shape
        shifted = jnp.concatenate(
            [jnp.zeros((s, c), h.dtype), h[: r - s, :]], axis=0)
        pos = jax.lax.broadcasted_iota(jnp.int32, (r, c), 0) % Lp
        return jnp.where(pos >= s, shifted, 0.0)

    def causal_conv(h, w_ref, b_ref):
        # Stack the K=3 causally shifted views on the lane axis and issue a
        # single deep matmul against the pre-stacked (3*Cin_p, Cout_p) weight.
        taps = jnp.concatenate(
            [shift_rows(h, PAD - k) for k in range(KSIZE)], axis=1)
        y = jnp.dot(taps.astype(jnp.bfloat16), w_ref[...],
                    preferred_element_type=jnp.float32)
        return y + b_ref[...]                                 # f32 epilogue

    wi = 0
    for has_sc in shortcut_flags:
        w0, b0, w1, b1 = wrefs[wi], wrefs[wi + 1], wrefs[wi + 2], wrefs[wi + 3]
        wi += 4
        h = jnp.maximum(causal_conv(x, w0, b0), 0.0)
        # TODO(synk): dropout (p=0.2) would go here in train mode.
        h = jnp.maximum(causal_conv(h, w1, b1), 0.0)
        if has_sc:
            ws, bs = wrefs[wi], wrefs[wi + 1]
            wi += 2
            res = jnp.dot(x.astype(jnp.bfloat16), ws[...],
                          preferred_element_type=jnp.float32) + bs[...]
        else:
            res = x
        x = res + h                                           # no final ReLU (matches ref)

    o_ref[...] = x.astype(o_ref.dtype)


# --------------------------------------------------------------------------
# Parameter init (deterministic).  weight_norm folded at init:
#   w = g * v / ||v||   (norm per output channel, as in torch weight_norm)
# Conv weights are pre-stacked (K taps along the contraction axis), padded to
# lane-dense (multiples of 128) and cast to bf16.
# --------------------------------------------------------------------------
def _weight_norm_conv1d(key, cin, cout, ksize):
    kv, kg, kb = jax.random.split(key, 3)
    v = 0.1 * jax.random.normal(kv, (cout, cin, ksize), jnp.float32)
    g = jax.random.uniform(kg, (cout,), jnp.float32, 0.5, 1.5)
    norm = jnp.sqrt(jnp.sum(v * v, axis=(1, 2)))
    w = g[:, None, None] * v / norm[:, None, None]            # (cout, cin, K)
    b = 0.1 * jax.random.normal(kb, (cout,), jnp.float32)
    return w, b


def _stack_conv(w, cin_p, cout_p):
    cout, cin, k = w.shape
    out = jnp.zeros((k * cin_p, cout_p), jnp.float32)
    for t in range(k):
        out = out.at[t * cin_p: t * cin_p + cin, :cout].set(
            jnp.transpose(w[:, :, t]))
    return out.astype(jnp.bfloat16)


def _pad_bias(b, cout_p):
    out = jnp.zeros((1, cout_p), jnp.float32)
    return out.at[0, : b.shape[0]].set(b)


def init_params(key, n_layers, hidden, vocab, cimg):
    keys = jax.random.split(key, 3 + n_layers)
    # Feature projection, augmented with a bias row (constant-1 input channel).
    feat_w = 0.05 * jax.random.normal(keys[0], (cimg, EMB_DIM), jnp.float32)
    feat_b = 0.01 * jax.random.normal(keys[1], (EMB_DIM,), jnp.float32)
    cimg_p = _round_up(cimg + 1, LANE)
    wf = jnp.zeros((cimg_p, EMB_DIM), jnp.float32)
    wf = wf.at[:cimg].set(feat_w).at[cimg].set(feat_b)

    params = {
        "wf_aug": wf.astype(jnp.bfloat16),
        "emb": jax.random.normal(keys[2], (vocab, EMB_DIM), jnp.float32),
        "blocks": [],
    }
    for i in range(n_layers):
        cin = EMB_DIM if i == 0 else hidden
        cout = hidden if i != n_layers - 1 else vocab
        cin_p = _round_up(cin, LANE)
        cout_p = _round_up(cout, LANE)
        bk = jax.random.split(keys[3 + i], 3)
        w0, b0 = _weight_norm_conv1d(bk[0], cin, cout, KSIZE)
        w1, b1 = _weight_norm_conv1d(bk[1], cout, cout, KSIZE)
        blk = {
            "w0": _stack_conv(w0, cin_p, cout_p),   # (K*cin_p, cout_p) bf16
            "b0": _pad_bias(b0, cout_p),            # (1, cout_p) f32
            "w1": _stack_conv(w1, cout_p, cout_p),
            "b1": _pad_bias(b1, cout_p),
        }
        if cin != cout:  # 1x1 shortcut conv (channel_scaling)
            ws, bs = _weight_norm_conv1d(bk[2], cin, cout, 1)
            w = jnp.zeros((cin_p, cout_p), jnp.float32)
            w = w.at[:cin, :cout].set(jnp.transpose(ws[:, :, 0]))
            blk["ws"] = w.astype(jnp.bfloat16)
            blk["bs"] = _pad_bias(bs, cout_p)
        params["blocks"].append(blk)
    return params


# --------------------------------------------------------------------------
# ImageAnnotator.forward (test_time=False)
# --------------------------------------------------------------------------
def image_annotator_forward(params, images, indices, *, vocab_size):
    B, cimg, _, _ = images.shape
    R, num_captions, num_words = indices.shape
    assert R == B
    N = B * num_captions
    L = num_words + 1
    Lp = _round_up(L, 8)
    cimg_p = params["wf_aug"].shape[0]
    cout_p_last = params["blocks"][-1]["b1"].shape[1]

    # TODO(synk): ResNet-18 backbone replaced by global-average-pool (XLA).
    pooled = jnp.mean(images, axis=(2, 3))                       # (B, cimg)
    pooled = jnp.broadcast_to(
        pooled[:, None, :], (B, num_captions, cimg)).reshape(N, cimg)

    # Feature inputs: pooled channels + constant-1 (bias channel) on row t=0
    # of each sequence; zero elsewhere.  The kernel projects and injects.
    feats_flat = jnp.zeros((N, Lp, cimg_p), jnp.float32)
    feats_flat = feats_flat.at[:, 0, :cimg].set(pooled)
    feats_flat = feats_flat.at[:, 0, cimg].set(1.0)
    feats_flat = feats_flat.reshape(N * Lp, cimg_p).astype(jnp.bfloat16)

    # Embedding gather (XLA) + left slot for the image feature + zero-pad L->Lp.
    idx = indices.reshape(N, num_words)
    embeds = jnp.take(params["emb"], idx, axis=0)                # (N, W, 512)
    x_emb = jnp.zeros((N, Lp, EMB_DIM), jnp.float32)
    x_emb = x_emb.at[:, 1:1 + num_words, :].set(embeds)
    x_emb = x_emb.reshape(N * Lp, EMB_DIM)

    args = [feats_flat, params["wf_aug"], x_emb]
    shortcut_flags = []
    for blk in params["blocks"]:
        args += [blk["w0"], blk["b0"], blk["w1"], blk["b1"]]
        if "ws" in blk:
            args += [blk["ws"], blk["bs"]]
            shortcut_flags.append(True)
        else:
            shortcut_flags.append(False)

    kernel = functools.partial(
        _fused_kernel, shortcut_flags=tuple(shortcut_flags), Lp=Lp)

    out = pl.pallas_call(
        kernel,
        out_shape=jax.ShapeDtypeStruct((N * Lp, cout_p_last), jnp.float32),
        in_specs=[pl.BlockSpec(memory_space=pltpu.MemorySpace.VMEM)] * len(args),
        out_specs=pl.BlockSpec(memory_space=pltpu.MemorySpace.VMEM),
    )(*args)

    # Un-pad and return PyTorch conv1d layout (N, vocab_size, num_words+1).
    out = out.reshape(N, Lp, cout_p_last)[:, :L, :vocab_size]
    return jnp.transpose(out, (0, 2, 1))


if __name__ == "__main__":
    B, CIMG, H, W = 2, 3, 16, 16
    NUM_CAPTIONS, NUM_WORDS = 2, 8
    N_LAYERS, HIDDEN, VOCAB = 3, 32, 24

    key = jax.random.PRNGKey(0)
    k_img, k_idx, k_par = jax.random.split(key, 3)
    images = jax.random.normal(k_img, (B, CIMG, H, W), jnp.float32)
    indices = jax.random.randint(
        k_idx, (B, NUM_CAPTIONS, NUM_WORDS), 0, VOCAB, jnp.int32)
    params = init_params(k_par, N_LAYERS, HIDDEN, VOCAB, CIMG)

    fwd = jax.jit(functools.partial(image_annotator_forward, vocab_size=VOCAB))
    out = jax.block_until_ready(fwd(params, images, indices))

    assert out.shape == (B * NUM_CAPTIONS, VOCAB, NUM_WORDS + 1), out.shape
    assert bool(jnp.all(jnp.isfinite(out)))
    print("KERNEL_OK")
</pallas_src>

<mosaic_0001>
module attributes {stable_mosaic.version = 11 : i64} {
  func.func @_fused_kernel(%arg0: memref<64x128xbf16, #tpu.memory_space<vmem>>, %arg1: memref<128x512xbf16, #tpu.memory_space<vmem>>, %arg2: memref<64x512xf32, #tpu.memory_space<vmem>>, %arg3: memref<1536x128xbf16, #tpu.memory_space<vmem>>, %arg4: memref<1x128xf32, #tpu.memory_space<vmem>>, %arg5: memref<384x128xbf16, #tpu.memory_space<vmem>>, %arg6: memref<1x128xf32, #tpu.memory_space<vmem>>, %arg7: memref<512x128xbf16, #tpu.memory_space<vmem>>, %arg8: memref<1x128xf32, #tpu.memory_space<vmem>>, %arg9: memref<384x128xbf16, #tpu.memory_space<vmem>>, %arg10: memref<1x128xf32, #tpu.memory_space<vmem>>, %arg11: memref<384x128xbf16, #tpu.memory_space<vmem>>, %arg12: memref<1x128xf32, #tpu.memory_space<vmem>>, %arg13: memref<384x128xbf16, #tpu.memory_space<vmem>>, %arg14: memref<1x128xf32, #tpu.memory_space<vmem>>, %arg15: memref<384x128xbf16, #tpu.memory_space<vmem>>, %arg16: memref<1x128xf32, #tpu.memory_space<vmem>>, %arg17: memref<128x128xbf16, #tpu.memory_space<vmem>>, %arg18: memref<1x128xf32, #tpu.memory_space<vmem>>, %arg19: memref<64x128xf32, #tpu.memory_space<vmem>>) attributes {dimension_semantics = [], scalar_prefetch = 0 : i64, scratch_operands = 0 : i64, tpu.core_type = #tpu.core_type<tc>} {
    %c0 = arith.constant 0 : index
    %c0_0 = arith.constant 0 : index
    %0 = vector.load %arg0[%c0, %c0_0] : memref<64x128xbf16, #tpu.memory_space<vmem>>, vector<64x128xbf16>
    %c0_1 = arith.constant 0 : index
    %c0_2 = arith.constant 0 : index
    %1 = vector.load %arg1[%c0_1, %c0_2] : memref<128x512xbf16, #tpu.memory_space<vmem>>, vector<128x512xbf16>
    %cst = arith.constant dense<0.000000e+00> : vector<64x512xf32>
    %2 = tpu.matmul %0, %1, %cst {dimension_numbers = #tpu.dot_dimension_numbers<[1], [0], [0], [1], [0, 0, 1, 1], [], []>} : vector<64x128xbf16>, vector<128x512xbf16>, vector<64x512xf32> -> vector<64x512xf32>
    %c0_3 = arith.constant 0 : index
    %c0_4 = arith.constant 0 : index
    %3 = vector.load %arg2[%c0_3, %c0_4] : memref<64x512xf32, #tpu.memory_space<vmem>>, vector<64x512xf32>
    %4 = arith.addf %3, %2 : vector<64x512xf32>
    %cst_5 = arith.constant 0.000000e+00 : f32
    %5 = vector.broadcast %cst_5 : f32 to vector<2x512xf32>
    %6 = vector.extract_strided_slice %4 {offsets = [0, 0], sizes = [62, 512], strides = [1, 1]} : vector<64x512xf32> to vector<62x512xf32>
    %7 = tpu.concatenate %5, %6 in 0 : vector<2x512xf32>, vector<62x512xf32> -> vector<64x512xf32>
    %8 = tpu.iota {dimensions = array<i32: 0>} : vector<64x512xi32>
    %c16_i32 = arith.constant 16 : i32
    %c0_i32 = arith.constant 0 : i32
    %9 = arith.cmpi eq, %c16_i32, %c0_i32 : i32
    %c1_i32 = arith.constant 1 : i32
    %10 = arith.select %9, %c1_i32, %c16_i32 : i32
    %11 = vector.broadcast %10 : i32 to vector<64x512xi32>
    %12 = arith.remsi %8, %11 : vector<64x512xi32>
    %c0_i32_6 = arith.constant 0 : i32
    %13 = vector.broadcast %c0_i32_6 : i32 to vector<64x512xi32>
    %14 = arith.cmpi ne, %12, %13 : vector<64x512xi32>
    %c0_i32_7 = arith.constant 0 : i32
    %15 = vector.broadcast %c0_i32_7 : i32 to vector<64x512xi32>
    %16 = arith.cmpi slt, %12, %15 : vector<64x512xi32>
    %c0_i32_8 = arith.constant 0 : i32
    %17 = arith.cmpi slt, %10, %c0_i32_8 : i32
    %18 = vector.broadcast %17 : i1 to vector<64x512xi1>
    %19 = vector.broadcast %18 : vector<64x512xi1> to vector<64x512xi1>
    %20 = arith.xori %16, %19 : vector<64x512xi1>
    %21 = arith.andi %20, %14 : vector<64x512xi1>
    %22 = vector.broadcast %10 : i32 to vector<64x512xi32>
    %23 = arith.addi %12, %22 : vector<64x512xi32>
    %24 = arith.select %21, %23, %12 : vector<64x512xi1>, vector<64x512xi32>
    %c2_i32 = arith.constant 2 : i32
    %25 = vector.broadcast %c2_i32 : i32 to vector<64x512xi32>
    %26 = arith.cmpi sge, %24, %25 : vector<64x512xi32>
    %cst_9 = arith.constant 0.000000e+00 : f32
    %27 = vector.broadcast %cst_9 : f32 to vector<64x512xf32>
    %28 = arith.select %26, %7, %27 : vector<64x512xi1>, vector<64x512xf32>
    %cst_10 = arith.constant 0.000000e+00 : f32
    %29 = vector.broadcast %cst_10 : f32 to vector<1x512xf32>
    %30 = vector.extract_strided_slice %4 {offsets = [0, 0], sizes = [63, 512], strides = [1, 1]} : vector<64x512xf32> to vector<63x512xf32>
    %31 = tpu.concatenate %29, %30 in 0 : vector<1x512xf32>, vector<63x512xf32> -> vector<64x512xf32>
    %32 = tpu.iota {dimensions = array<i32: 0>} : vector<64x512xi32>
    %c16_i32_11 = arith.constant 16 : i32
    %c0_i32_12 = arith.constant 0 : i32
    %33 = arith.cmpi eq, %c16_i32_11, %c0_i32_12 : i32
    %c1_i32_13 = arith.constant 1 : i32
    %34 = arith.select %33, %c1_i32_13, %c16_i32_11 : i32
    %35 = vector.broadcast %34 : i32 to vector<64x512xi32>
    %36 = arith.remsi %32, %35 : vector<64x512xi32>
    %c0_i32_14 = arith.constant 0 : i32
    %37 = vector.broadcast %c0_i32_14 : i32 to vector<64x512xi32>
    %38 = arith.cmpi ne, %36, %37 : vector<64x512xi32>
    %c0_i32_15 = arith.constant 0 : i32
    %39 = vector.broadcast %c0_i32_15 : i32 to vector<64x512xi32>
    %40 = arith.cmpi slt, %36, %39 : vector<64x512xi32>
    %c0_i32_16 = arith.constant 0 : i32
    %41 = arith.cmpi slt, %34, %c0_i32_16 : i32
    %42 = vector.broadcast %41 : i1 to vector<64x512xi1>
    %43 = vector.broadcast %42 : vector<64x512xi1> to vector<64x512xi1>
    %44 = arith.xori %40, %43 : vector<64x512xi1>
    %45 = arith.andi %44, %38 : vector<64x512xi1>
    %46 = vector.broadcast %34 : i32 to vector<64x512xi32>
    %47 = arith.addi %36, %46 : vector<64x512xi32>
    %48 = arith.select %45, %47, %36 : vector<64x512xi1>, vector<64x512xi32>
    %c1_i32_17 = arith.constant 1 : i32
    %49 = vector.broadcast %c1_i32_17 : i32 to vector<64x512xi32>
    %50 = arith.cmpi sge, %48, %49 : vector<64x512xi32>
    %cst_18 = arith.constant 0.000000e+00 : f32
    %51 = vector.broadcast %cst_18 : f32 to vector<64x512xf32>
    %52 = arith.select %50, %31, %51 : vector<64x512xi1>, vector<64x512xf32>
    %53 = tpu.concatenate %28, %52, %4 in 1 : vector<64x512xf32>, vector<64x512xf32>, vector<64x512xf32> -> vector<64x1536xf32>
    %54 = arith.truncf %53 : vector<64x1536xf32> to vector<64x1536xbf16>
    %c0_19 = arith.constant 0 : index
    %c0_20 = arith.constant 0 : index
    %55 = vector.load %arg3[%c0_19, %c0_20] : memref<1536x128xbf16, #tpu.memory_space<vmem>>, vector<1536x128xbf16>
    %cst_21 = arith.constant dense<0.000000e+00> : vector<64x128xf32>
    %56 = tpu.matmul %54, %55, %cst_21 {dimension_numbers = #tpu.dot_dimension_numbers<[1], [0], [0], [1], [0, 0, 1, 1], [], []>} : vector<64x1536xbf16>, vector<1536x128xbf16>, vector<64x128xf32> -> vector<64x128xf32>
    %c0_22 = arith.constant 0 : index
    %c0_23 = arith.constant 0 : index
    %57 = vector.load %arg4[%c0_22, %c0_23] : memref<1x128xf32, #tpu.memory_space<vmem>>, vector<1x128xf32>
    %58 = vector.broadcast %57 : vector<1x128xf32> to vector<64x128xf32>
    %59 = arith.addf %56, %58 : vector<64x128xf32>
    %cst_24 = arith.constant 0.000000e+00 : f32
    %60 = vector.broadcast %cst_24 : f32 to vector<64x128xf32>
    %61 = arith.maximumf %59, %60 : vector<64x128xf32>
    %cst_25 = arith.constant 0.000000e+00 : f32
    %62 = vector.broadcast %cst_25 : f32 to vector<2x128xf32>
    %63 = vector.extract_strided_slice %61 {offsets = [0, 0], sizes = [62, 128], strides = [1, 1]} : vector<64x128xf32> to vector<62x128xf32>
    %64 = tpu.concatenate %62, %63 in 0 : vector<2x128xf32>, vector<62x128xf32> -> vector<64x128xf32>
    %65 = tpu.iota {dimensions = array<i32: 0>} : vector<64x128xi32>
    %c16_i32_26 = arith.constant 16 : i32
    %c0_i32_27 = arith.constant 0 : i32
    %66 = arith.cmpi eq, %c16_i32_26, %c0_i32_27 : i32
    %c1_i32_28 = arith.constant 1 : i32
    %67 = arith.select %66, %c1_i32_28, %c16_i32_26 : i32
    %68 = vector.broadcast %67 : i32 to vector<64x128xi32>
    %69 = arith.remsi %65, %68 : vector<64x128xi32>
    %c0_i32_29 = arith.constant 0 : i32
    %70 = vector.broadcast %c0_i32_29 : i32 to vector<64x128xi32>
    %71 = arith.cmpi ne, %69, %70 : vector<64x128xi32>
    %c0_i32_30 = arith.constant 0 : i32
    %72 = vector.broadcast %c0_i32_30 : i32 to vector<64x128xi32>
    %73 = arith.cmpi slt, %69, %72 : vector<64x128xi32>
    %c0_i32_31 = arith.constant 0 : i32
    %74 = arith.cmpi slt, %67, %c0_i32_31 : i32
    %75 = vector.broadcast %74 : i1 to vector<64x128xi1>
    %76 = vector.broadcast %75 : vector<64x128xi1> to vector<64x128xi1>
    %77 = arith.xori %73, %76 : vector<64x128xi1>
    %78 = arith.andi %77, %71 : vector<64x128xi1>
    %79 = vector.broadcast %67 : i32 to vector<64x128xi32>
    %80 = arith.addi %69, %79 : vector<64x128xi32>
    %81 = arith.select %78, %80, %69 : vector<64x128xi1>, vector<64x128xi32>
    %c2_i32_32 = arith.constant 2 : i32
    %82 = vector.broadcast %c2_i32_32 : i32 to vector<64x128xi32>
    %83 = arith.cmpi sge, %81, %82 : vector<64x128xi32>
    %cst_33 = arith.constant 0.000000e+00 : f32
    %84 = vector.broadcast %cst_33 : f32 to vector<64x128xf32>
    %85 = arith.select %83, %64, %84 : vector<64x128xi1>, vector<64x128xf32>
    %cst_34 = arith.constant 0.000000e+00 : f32
    %86 = vector.broadcast %cst_34 : f32 to vector<1x128xf32>
    %87 = vector.extract_strided_slice %61 {offsets = [0, 0], sizes = [63, 128], strides = [1, 1]} : vector<64x128xf32> to vector<63x128xf32>
    %88 = tpu.concatenate %86, %87 in 0 : vector<1x128xf32>, vector<63x128xf32> -> vector<64x128xf32>
    %89 = tpu.iota {dimensions = array<i32: 0>} : vector<64x128xi32>
    %c16_i32_35 = arith.constant 16 : i32
    %c0_i32_36 = arith.constant 0 : i32
    %90 = arith.cmpi eq, %c16_i32_35, %c0_i32_36 : i32
    %c1_i32_37 = arith.constant 1 : i32
    %91 = arith.select %90, %c1_i32_37, %c16_i32_35 : i32
    %92 = vector.broadcast %91 : i32 to vector<64x128xi32>
    %93 = arith.remsi %89, %92 : vector<64x128xi32>
    %c0_i32_38 = arith.constant 0 : i32
    %94 = vector.broadcast %c0_i32_38 : i32 to vector<64x128xi32>
    %95 = arith.cmpi ne, %93, %94 : vector<64x128xi32>
    %c0_i32_39 = arith.constant 0 : i32
    %96 = vector.broadcast %c0_i32_39 : i32 to vector<64x128xi32>
    %97 = arith.cmpi slt, %93, %96 : vector<64x128xi32>
    %c0_i32_40 = arith.constant 0 : i32
    %98 = arith.cmpi slt, %91, %c0_i32_40 : i32
    %99 = vector.broadcast %98 : i1 to vector<64x128xi1>
    %100 = vector.broadcast %99 : vector<64x128xi1> to vector<64x128xi1>
    %101 = arith.xori %97, %100 : vector<64x128xi1>
    %102 = arith.andi %101, %95 : vector<64x128xi1>
    %103 = vector.broadcast %91 : i32 to vector<64x128xi32>
    %104 = arith.addi %93, %103 : vector<64x128xi32>
    %105 = arith.select %102, %104, %93 : vector<64x128xi1>, vector<64x128xi32>
    %c1_i32_41 = arith.constant 1 : i32
    %106 = vector.broadcast %c1_i32_41 : i32 to vector<64x128xi32>
    %107 = arith.cmpi sge, %105, %106 : vector<64x128xi32>
    %cst_42 = arith.constant 0.000000e+00 : f32
    %108 = vector.broadcast %cst_42 : f32 to vector<64x128xf32>
    %109 = arith.select %107, %88, %108 : vector<64x128xi1>, vector<64x128xf32>
    %110 = tpu.concatenate %85, %109, %61 in 1 : vector<64x128xf32>, vector<64x128xf32>, vector<64x128xf32> -> vector<64x384xf32>
    %111 = arith.truncf %110 : vector<64x384xf32> to vector<64x384xbf16>
    %c0_43 = arith.constant 0 : index
    %c0_44 = arith.constant 0 : index
    %112 = vector.load %arg5[%c0_43, %c0_44] : memref<384x128xbf16, #tpu.memory_space<vmem>>, vector<384x128xbf16>
    %cst_45 = arith.constant dense<0.000000e+00> : vector<64x128xf32>
    %113 = tpu.matmul %111, %112, %cst_45 {dimension_numbers = #tpu.dot_dimension_numbers<[1], [0], [0], [1], [0, 0, 1, 1], [], []>} : vector<64x384xbf16>, vector<384x128xbf16>, vector<64x128xf32> -> vector<64x128xf32>
    %c0_46 = arith.constant 0 : index
    %c0_47 = arith.constant 0 : index
    %114 = vector.load %arg6[%c0_46, %c0_47] : memref<1x128xf32, #tpu.memory_space<vmem>>, vector<1x128xf32>
    %115 = vector.broadcast %114 : vector<1x128xf32> to vector<64x128xf32>
    %116 = arith.addf %113, %115 : vector<64x128xf32>
    %cst_48 = arith.constant 0.000000e+00 : f32
    %117 = vector.broadcast %cst_48 : f32 to vector<64x128xf32>
    %118 = arith.maximumf %116, %117 : vector<64x128xf32>
    %119 = arith.truncf %4 : vector<64x512xf32> to vector<64x512xbf16>
    %c0_49 = arith.constant 0 : index
    %c0_50 = arith.constant 0 : index
    %120 = vector.load %arg7[%c0_49, %c0_50] : memref<512x128xbf16, #tpu.memory_space<vmem>>, vector<512x128xbf16>
    %cst_51 = arith.constant dense<0.000000e+00> : vector<64x128xf32>
    %121 = tpu.matmul %119, %120, %cst_51 {dimension_numbers = #tpu.dot_dimension_numbers<[1], [0], [0], [1], [0, 0, 1, 1], [], []>} : vector<64x512xbf16>, vector<512x128xbf16>, vector<64x128xf32> -> vector<64x128xf32>
    %c0_52 = arith.constant 0 : index
    %c0_53 = arith.constant 0 : index
    %122 = vector.load %arg8[%c0_52, %c0_53] : memref<1x128xf32, #tpu.memory_space<vmem>>, vector<1x128xf32>
    %123 = vector.broadcast %122 : vector<1x128xf32> to vector<64x128xf32>
    %124 = arith.addf %121, %123 : vector<64x128xf32>
    %125 = arith.addf %124, %118 : vector<64x128xf32>
    %cst_54 = arith.constant 0.000000e+00 : f32
    %126 = vector.broadcast %cst_54 : f32 to vector<2x128xf32>
    %127 = vector.extract_strided_slice %125 {offsets = [0, 0], sizes = [62, 128], strides = [1, 1]} : vector<64x128xf32> to vector<62x128xf32>
    %128 = tpu.concatenate %126, %127 in 0 : vector<2x128xf32>, vector<62x128xf32> -> vector<64x128xf32>
    %129 = tpu.iota {dimensions = array<i32: 0>} : vector<64x128xi32>
    %c16_i32_55 = arith.constant 16 : i32
    %c0_i32_56 = arith.constant 0 : i32
    %130 = arith.cmpi eq, %c16_i32_55, %c0_i32_56 : i32
    %c1_i32_57 = arith.constant 1 : i32
    %131 = arith.select %130, %c1_i32_57, %c16_i32_55 : i32
    %132 = vector.broadcast %131 : i32 to vector<64x128xi32>
    %133 = arith.remsi %129, %132 : vector<64x128xi32>
    %c0_i32_58 = arith.constant 0 : i32
    %134 = vector.broadcast %c0_i32_58 : i32 to vector<64x128xi32>
    %135 = arith.cmpi ne, %133, %134 : vector<64x128xi32>
    %c0_i32_59 = arith.constant 0 : i32
    %136 = vector.broadcast %c0_i32_59 : i32 to vector<64x128xi32>
    %137 = arith.cmpi slt, %133, %136 : vector<64x128xi32>
    %c0_i32_60 = arith.constant 0 : i32
    %138 = arith.cmpi slt, %131, %c0_i32_60 : i32
    %139 = vector.broadcast %138 : i1 to vector<64x128xi1>
    %140 = vector.broadcast %139 : vector<64x128xi1> to vector<64x128xi1>
    %141 = arith.xori %137, %140 : vector<64x128xi1>
    %142 = arith.andi %141, %135 : vector<64x128xi1>
    %143 = vector.broadcast %131 : i32 to vector<64x128xi32>
    %144 = arith.addi %133, %143 : vector<64x128xi32>
    %145 = arith.select %142, %144, %133 : vector<64x128xi1>, vector<64x128xi32>
    %c2_i32_61 = arith.constant 2 : i32
    %146 = vector.broadcast %c2_i32_61 : i32 to vector<64x128xi32>
    %147 = arith.cmpi sge, %145, %146 : vector<64x128xi32>
    %cst_62 = arith.constant 0.000000e+00 : f32
    %148 = vector.broadcast %cst_62 : f32 to vector<64x128xf32>
    %149 = arith.select %147, %128, %148 : vector<64x128xi1>, vector<64x128xf32>
    %cst_63 = arith.constant 0.000000e+00 : f32
    %150 = vector.broadcast %cst_63 : f32 to vector<1x128xf32>
    %151 = vector.extract_strided_slice %125 {offsets = [0, 0], sizes = [63, 128], strides = [1, 1]} : vector<64x128xf32> to vector<63x128xf32>
    %152 = tpu.concatenate %150, %151 in 0 : vector<1x128xf32>, vector<63x128xf32> -> vector<64x128xf32>
    %153 = tpu.iota {dimensions = array<i32: 0>} : vector<64x128xi32>
    %c16_i32_64 = arith.constant 16 : i32
    %c0_i32_65 = arith.constant 0 : i32
    %154 = arith.cmpi eq, %c16_i32_64, %c0_i32_65 : i32
    %c1_i32_66 = arith.constant 1 : i32
    %155 = arith.select %154, %c1_i32_66, %c16_i32_64 : i32
    %156 = vector.broadcast %155 : i32 to vector<64x128xi32>
    %157 = arith.remsi %153, %156 : vector<64x128xi32>
    %c0_i32_67 = arith.constant 0 : i32
    %158 = vector.broadcast %c0_i32_67 : i32 to vector<64x128xi32>
    %159 = arith.cmpi ne, %157, %158 : vector<64x128xi32>
    %c0_i32_68 = arith.constant 0 : i32
    %160 = vector.broadcast %c0_i32_68 : i32 to vector<64x128xi32>
    %161 = arith.cmpi slt, %157, %160 : vector<64x128xi32>
    %c0_i32_69 = arith.constant 0 : i32
    %162 = arith.cmpi slt, %155, %c0_i32_69 : i32
    %163 = vector.broadcast %162 : i1 to vector<64x128xi1>
    %164 = vector.broadcast %163 : vector<64x128xi1> to vector<64x128xi1>
    %165 = arith.xori %161, %164 : vector<64x128xi1>
    %166 = arith.andi %165, %159 : vector<64x128xi1>
    %167 = vector.broadcast %155 : i32 to vector<64x128xi32>
    %168 = arith.addi %157, %167 : vector<64x128xi32>
    %169 = arith.select %166, %168, %157 : vector<64x128xi1>, vector<64x128xi32>
    %c1_i32_70 = arith.constant 1 : i32
    %170 = vector.broadcast %c1_i32_70 : i32 to vector<64x128xi32>
    %171 = arith.cmpi sge, %169, %170 : vector<64x128xi32>
    %cst_71 = arith.constant 0.000000e+00 : f32
    %172 = vector.broadcast %cst_71 : f32 to vector<64x128xf32>
    %173 = arith.select %171, %152, %172 : vector<64x128xi1>, vector<64x128xf32>
    %174 = tpu.concatenate %149, %173, %125 in 1 : vector<64x128xf32>, vector<64x128xf32>, vector<64x128xf32> -> vector<64x384xf32>
    %175 = arith.truncf %174 : vector<64x384xf32> to vector<64x384xbf16>
    %c0_72 = arith.constant 0 : index
    %c0_73 = arith.constant 0 : index
    %176 = vector.load %arg9[%c0_72, %c0_73] : memref<384x128xbf16, #tpu.memory_space<vmem>>, vector<384x128xbf16>
    %cst_74 = arith.constant dense<0.000000e+00> : vector<64x128xf32>
    %177 = tpu.matmul %175, %176, %cst_74 {dimension_numbers = #tpu.dot_dimension_numbers<[1], [0], [0], [1], [0, 0, 1, 1], [], []>} : vector<64x384xbf16>, vector<384x128xbf16>, vector<64x128xf32> -> vector<64x128xf32>
    %c0_75 = arith.constant 0 : index
    %c0_76 = arith.constant 0 : index
    %178 = vector.load %arg10[%c0_75, %c0_76] : memref<1x128xf32, #tpu.memory_space<vmem>>, vector<1x128xf32>
    %179 = vector.broadcast %178 : vector<1x128xf32> to vector<64x128xf32>
    %180 = arith.addf %177, %179 : vector<64x128xf32>
    %cst_77 = arith.constant 0.000000e+00 : f32
    %181 = vector.broadcast %cst_77 : f32 to vector<64x128xf32>
    %182 = arith.maximumf %180, %181 : vector<64x128xf32>
    %cst_78 = arith.constant 0.000000e+00 : f32
    %183 = vector.broadcast %cst_78 : f32 to vector<2x128xf32>
    %184 = vector.extract_strided_slice %182 {offsets = [0, 0], sizes = [62, 128], strides = [1, 1]} : vector<64x128xf32> to vector<62x128xf32>
    %185 = tpu.concatenate %183, %184 in 0 : vector<2x128xf32>, vector<62x128xf32> -> vector<64x128xf32>
    %186 = tpu.iota {dimensions = array<i32: 0>} : vector<64x128xi32>
    %c16_i32_79 = arith.constant 16 : i32
    %c0_i32_80 = arith.constant 0 : i32
    %187 = arith.cmpi eq, %c16_i32_79, %c0_i32_80 : i32
    %c1_i32_81 = arith.constant 1 : i32
    %188 = arith.select %187, %c1_i32_81, %c16_i32_79 : i32
    %189 = vector.broadcast %188 : i32 to vector<64x128xi32>
    %190 = arith.remsi %186, %189 : vector<64x128xi32>
    %c0_i32_82 = arith.constant 0 : i32
    %191 = vector.broadcast %c0_i32_82 : i32 to vector<64x128xi32>
    %192 = arith.cmpi ne, %190, %191 : vector<64x128xi32>
    %c0_i32_83 = arith.constant 0 : i32
    %193 = vector.broadcast %c0_i32_83 : i32 to vector<64x128xi32>
    %194 = arith.cmpi slt, %190, %193 : vector<64x128xi32>
    %c0_i32_84 = arith.constant 0 : i32
    %195 = arith.cmpi slt, %188, %c0_i32_84 : i32
    %196 = vector.broadcast %195 : i1 to vector<64x128xi1>
    %197 = vector.broadcast %196 : vector<64x128xi1> to vector<64x128xi1>
    %198 = arith.xori %194, %197 : vector<64x128xi1>
    %199 = arith.andi %198, %192 : vector<64x128xi1>
    %200 = vector.broadcast %188 : i32 to vector<64x128xi32>
    %201 = arith.addi %190, %200 : vector<64x128xi32>
    %202 = arith.select %199, %201, %190 : vector<64x128xi1>, vector<64x128xi32>
    %c2_i32_85 = arith.constant 2 : i32
    %203 = vector.broadcast %c2_i32_85 : i32 to vector<64x128xi32>
    %204 = arith.cmpi sge, %202, %203 : vector<64x128xi32>
    %cst_86 = arith.constant 0.000000e+00 : f32
    %205 = vector.broadcast %cst_86 : f32 to vector<64x128xf32>
    %206 = arith.select %204, %185, %205 : vector<64x128xi1>, vector<64x128xf32>
    %cst_87 = arith.constant 0.000000e+00 : f32
    %207 = vector.broadcast %cst_87 : f32 to vector<1x128xf32>
    %208 = vector.extract_strided_slice %182 {offsets = [0, 0], sizes = [63, 128], strides = [1, 1]} : vector<64x128xf32> to vector<63x128xf32>
    %209 = tpu.concatenate %207, %208 in 0 : vector<1x128xf32>, vector<63x128xf32> -> vector<64x128xf32>
    %210 = tpu.iota {dimensions = array<i32: 0>} : vector<64x128xi32>
    %c16_i32_88 = arith.constant 16 : i32
    %c0_i32_89 = arith.constant 0 : i32
    %211 = arith.cmpi eq, %c16_i32_88, %c0_i32_89 : i32
    %c1_i32_90 = arith.constant 1 : i32
    %212 = arith.select %211, %c1_i32_90, %c16_i32_88 : i32
    %213 = vector.broadcast %212 : i32 to vector<64x128xi32>
    %214 = arith.remsi %210, %213 : vector<64x128xi32>
    %c0_i32_91 = arith.constant 0 : i32
    %215 = vector.broadcast %c0_i32_91 : i32 to vector<64x128xi32>
    %216 = arith.cmpi ne, %214, %215 : vector<64x128xi32>
    %c0_i32_92 = arith.constant 0 : i32
    %217 = vector.broadcast %c0_i32_92 : i32 to vector<64x128xi32>
    %218 = arith.cmpi slt, %214, %217 : vector<64x128xi32>
    %c0_i32_93 = arith.constant 0 : i32
    %219 = arith.cmpi slt, %212, %c0_i32_93 : i32
    %220 = vector.broadcast %219 : i1 to vector<64x128xi1>
    %221 = vector.broadcast %220 : vector<64x128xi1> to vector<64x128xi1>
    %222 = arith.xori %218, %221 : vector<64x128xi1>
    %223 = arith.andi %222, %216 : vector<64x128xi1>
    %224 = vector.broadcast %212 : i32 to vector<64x128xi32>
    %225 = arith.addi %214, %224 : vector<64x128xi32>
    %226 = arith.select %223, %225, %214 : vector<64x128xi1>, vector<64x128xi32>
    %c1_i32_94 = arith.constant 1 : i32
    %227 = vector.broadcast %c1_i32_94 : i32 to vector<64x128xi32>
    %228 = arith.cmpi sge, %226, %227 : vector<64x128xi32>
    %cst_95 = arith.constant 0.000000e+00 : f32
    %229 = vector.broadcast %cst_95 : f32 to vector<64x128xf32>
    %230 = arith.select %228, %209, %229 : vector<64x128xi1>, vector<64x128xf32>
    %231 = tpu.concatenate %206, %230, %182 in 1 : vector<64x128xf32>, vector<64x128xf32>, vector<64x128xf32> -> vector<64x384xf32>
    %232 = arith.truncf %231 : vector<64x384xf32> to vector<64x384xbf16>
    %c0_96 = arith.constant 0 : index
    %c0_97 = arith.constant 0 : index
    %233 = vector.load %arg11[%c0_96, %c0_97] : memref<384x128xbf16, #tpu.memory_space<vmem>>, vector<384x128xbf16>
    %cst_98 = arith.constant dense<0.000000e+00> : vector<64x128xf32>
    %234 = tpu.matmul %232, %233, %cst_98 {dimension_numbers = #tpu.dot_dimension_numbers<[1], [0], [0], [1], [0, 0, 1, 1], [], []>} : vector<64x384xbf16>, vector<384x128xbf16>, vector<64x128xf32> -> vector<64x128xf32>
    %c0_99 = arith.constant 0 : index
    %c0_100 = arith.constant 0 : index
    %235 = vector.load %arg12[%c0_99, %c0_100] : memref<1x128xf32, #tpu.memory_space<vmem>>, vector<1x128xf32>
    %236 = vector.broadcast %235 : vector<1x128xf32> to vector<64x128xf32>
    %237 = arith.addf %234, %236 : vector<64x128xf32>
    %cst_101 = arith.constant 0.000000e+00 : f32
    %238 = vector.broadcast %cst_101 : f32 to vector<64x128xf32>
    %239 = arith.maximumf %237, %238 : vector<64x128xf32>
    %240 = arith.addf %125, %239 : vector<64x128xf32>
    %cst_102 = arith.constant 0.000000e+00 : f32
    %241 = vector.broadcast %cst_102 : f32 to vector<2x128xf32>
    %242 = vector.extract_strided_slice %240 {offsets = [0, 0], sizes = [62, 128], strides = [1, 1]} : vector<64x128xf32> to vector<62x128xf32>
    %243 = tpu.concatenate %241, %242 in 0 : vector<2x128xf32>, vector<62x128xf32> -> vector<64x128xf32>
    %244 = tpu.iota {dimensions = array<i32: 0>} : vector<64x128xi32>
    %c16_i32_103 = arith.constant 16 : i32
    %c0_i32_104 = arith.constant 0 : i32
    %245 = arith.cmpi eq, %c16_i32_103, %c0_i32_104 : i32
    %c1_i32_105 = arith.constant 1 : i32
    %246 = arith.select %245, %c1_i32_105, %c16_i32_103 : i32
    %247 = vector.broadcast %246 : i32 to vector<64x128xi32>
    %248 = arith.remsi %244, %247 : vector<64x128xi32>
    %c0_i32_106 = arith.constant 0 : i32
    %249 = vector.broadcast %c0_i32_106 : i32 to vector<64x128xi32>
    %250 = arith.cmpi ne, %248, %249 : vector<64x128xi32>
    %c0_i32_107 = arith.constant 0 : i32
    %251 = vector.broadcast %c0_i32_107 : i32 to vector<64x128xi32>
    %252 = arith.cmpi slt, %248, %251 : vector<64x128xi32>
    %c0_i32_108 = arith.constant 0 : i32
    %253 = arith.cmpi slt, %246, %c0_i32_108 : i32
    %254 = vector.broadcast %253 : i1 to vector<64x128xi1>
    %255 = vector.broadcast %254 : vector<64x128xi1> to vector<64x128xi1>
    %256 = arith.xori %252, %255 : vector<64x128xi1>
    %257 = arith.andi %256, %250 : vector<64x128xi1>
    %258 = vector.broadcast %246 : i32 to vector<64x128xi32>
    %259 = arith.addi %248, %258 : vector<64x128xi32>
    %260 = arith.select %257, %259, %248 : vector<64x128xi1>, vector<64x128xi32>
    %c2_i32_109 = arith.constant 2 : i32
    %261 = vector.broadcast %c2_i32_109 : i32 to vector<64x128xi32>
    %262 = arith.cmpi sge, %260, %261 : vector<64x128xi32>
    %cst_110 = arith.constant 0.000000e+00 : f32
    %263 = vector.broadcast %cst_110 : f32 to vector<64x128xf32>
    %264 = arith.select %262, %243, %263 : vector<64x128xi1>, vector<64x128xf32>
    %cst_111 = arith.constant 0.000000e+00 : f32
    %265 = vector.broadcast %cst_111 : f32 to vector<1x128xf32>
    %266 = vector.extract_strided_slice %240 {offsets = [0, 0], sizes = [63, 128], strides = [1, 1]} : vector<64x128xf32> to vector<63x128xf32>
    %267 = tpu.concatenate %265, %266 in 0 : vector<1x128xf32>, vector<63x128xf32> -> vector<64x128xf32>
    %268 = tpu.iota {dimensions = array<i32: 0>} : vector<64x128xi32>
    %c16_i32_112 = arith.constant 16 : i32
    %c0_i32_113 = arith.constant 0 : i32
    %269 = arith.cmpi eq, %c16_i32_112, %c0_i32_113 : i32
    %c1_i32_114 = arith.constant 1 : i32
    %270 = arith.select %269, %c1_i32_114, %c16_i32_112 : i32
    %271 = vector.broadcast %270 : i32 to vector<64x128xi32>
    %272 = arith.remsi %268, %271 : vector<64x128xi32>
    %c0_i32_115 = arith.constant 0 : i32
    %273 = vector.broadcast %c0_i32_115 : i32 to vector<64x128xi32>
    %274 = arith.cmpi ne, %272, %273 : vector<64x128xi32>
    %c0_i32_116 = arith.constant 0 : i32
    %275 = vector.broadcast %c0_i32_116 : i32 to vector<64x128xi32>
    %276 = arith.cmpi slt, %272, %275 : vector<64x128xi32>
    %c0_i32_117 = arith.constant 0 : i32
    %277 = arith.cmpi slt, %270, %c0_i32_117 : i32
    %278 = vector.broadcast %277 : i1 to vector<64x128xi1>
    %279 = vector.broadcast %278 : vector<64x128xi1> to vector<64x128xi1>
    %280 = arith.xori %276, %279 : vector<64x128xi1>
    %281 = arith.andi %280, %274 : vector<64x128xi1>
    %282 = vector.broadcast %270 : i32 to vector<64x128xi32>
    %283 = arith.addi %272, %282 : vector<64x128xi32>
    %284 = arith.select %281, %283, %272 : vector<64x128xi1>, vector<64x128xi32>
    %c1_i32_118 = arith.constant 1 : i32
    %285 = vector.broadcast %c1_i32_118 : i32 to vector<64x128xi32>
    %286 = arith.cmpi sge, %284, %285 : vector<64x128xi32>
    %cst_119 = arith.constant 0.000000e+00 : f32
    %287 = vector.broadcast %cst_119 : f32 to vector<64x128xf32>
    %288 = arith.select %286, %267, %287 : vector<64x128xi1>, vector<64x128xf32>
    %289 = tpu.concatenate %264, %288, %240 in 1 : vector<64x128xf32>, vector<64x128xf32>, vector<64x128xf32> -> vector<64x384xf32>
    %290 = arith.truncf %289 : vector<64x384xf32> to vector<64x384xbf16>
    %c0_120 = arith.constant 0 : index
    %c0_121 = arith.constant 0 : index
    %291 = vector.load %arg13[%c0_120, %c0_121] : memref<384x128xbf16, #tpu.memory_space<vmem>>, vector<384x128xbf16>
    %cst_122 = arith.constant dense<0.000000e+00> : vector<64x128xf32>
    %292 = tpu.matmul %290, %291, %cst_122 {dimension_numbers = #tpu.dot_dimension_numbers<[1], [0], [0], [1], [0, 0, 1, 1], [], []>} : vector<64x384xbf16>, vector<384x128xbf16>, vector<64x128xf32> -> vector<64x128xf32>
    %c0_123 = arith.constant 0 : index
    %c0_124 = arith.constant 0 : index
    %293 = vector.load %arg14[%c0_123, %c0_124] : memref<1x128xf32, #tpu.memory_space<vmem>>, vector<1x128xf32>
    %294 = vector.broadcast %293 : vector<1x128xf32> to vector<64x128xf32>
    %295 = arith.addf %292, %294 : vector<64x128xf32>
    %cst_125 = arith.constant 0.000000e+00 : f32
    %296 = vector.broadcast %cst_125 : f32 to vector<64x128xf32>
    %297 = arith.maximumf %295, %296 : vector<64x128xf32>
    %cst_126 = arith.constant 0.000000e+00 : f32
    %298 = vector.broadcast %cst_126 : f32 to vector<2x128xf32>
    %299 = vector.extract_strided_slice %297 {offsets = [0, 0], sizes = [62, 128], strides = [1, 1]} : vector<64x128xf32> to vector<62x128xf32>
    %300 = tpu.concatenate %298, %299 in 0 : vector<2x128xf32>, vector<62x128xf32> -> vector<64x128xf32>
    %301 = tpu.iota {dimensions = array<i32: 0>} : vector<64x128xi32>
    %c16_i32_127 = arith.constant 16 : i32
    %c0_i32_128 = arith.constant 0 : i32
    %302 = arith.cmpi eq, %c16_i32_127, %c0_i32_128 : i32
    %c1_i32_129 = arith.constant 1 : i32
    %303 = arith.select %302, %c1_i32_129, %c16_i32_127 : i32
    %304 = vector.broadcast %303 : i32 to vector<64x128xi32>
    %305 = arith.remsi %301, %304 : vector<64x128xi32>
    %c0_i32_130 = arith.constant 0 : i32
    %306 = vector.broadcast %c0_i32_130 : i32 to vector<64x128xi32>
    %307 = arith.cmpi ne, %305, %306 : vector<64x128xi32>
    %c0_i32_131 = arith.constant 0 : i32
    %308 = vector.broadcast %c0_i32_131 : i32 to vector<64x128xi32>
    %309 = arith.cmpi slt, %305, %308 : vector<64x128xi32>
    %c0_i32_132 = arith.constant 0 : i32
    %310 = arith.cmpi slt, %303, %c0_i32_132 : i32
    %311 = vector.broadcast %310 : i1 to vector<64x128xi1>
    %312 = vector.broadcast %311 : vector<64x128xi1> to vector<64x128xi1>
    %313 = arith.xori %309, %312 : vector<64x128xi1>
    %314 = arith.andi %313, %307 : vector<64x128xi1>
    %315 = vector.broadcast %303 : i32 to vector<64x128xi32>
    %316 = arith.addi %305, %315 : vector<64x128xi32>
    %317 = arith.select %314, %316, %305 : vector<64x128xi1>, vector<64x128xi32>
    %c2_i32_133 = arith.constant 2 : i32
    %318 = vector.broadcast %c2_i32_133 : i32 to vector<64x128xi32>
    %319 = arith.cmpi sge, %317, %318 : vector<64x128xi32>
    %cst_134 = arith.constant 0.000000e+00 : f32
    %320 = vector.broadcast %cst_134 : f32 to vector<64x128xf32>
    %321 = arith.select %319, %300, %320 : vector<64x128xi1>, vector<64x128xf32>
    %cst_135 = arith.constant 0.000000e+00 : f32
    %322 = vector.broadcast %cst_135 : f32 to vector<1x128xf32>
    %323 = vector.extract_strided_slice %297 {offsets = [0, 0], sizes = [63, 128], strides = [1, 1]} : vector<64x128xf32> to vector<63x128xf32>
    %324 = tpu.concatenate %322, %323 in 0 : vector<1x128xf32>, vector<63x128xf32> -> vector<64x128xf32>
    %325 = tpu.iota {dimensions = array<i32: 0>} : vector<64x128xi32>
    %c16_i32_136 = arith.constant 16 : i32
    %c0_i32_137 = arith.constant 0 : i32
    %326 = arith.cmpi eq, %c16_i32_136, %c0_i32_137 : i32
    %c1_i32_138 = arith.constant 1 : i32
    %327 = arith.select %326, %c1_i32_138, %c16_i32_136 : i32
    %328 = vector.broadcast %327 : i32 to vector<64x128xi32>
    %329 = arith.remsi %325, %328 : vector<64x128xi32>
    %c0_i32_139 = arith.constant 0 : i32
    %330 = vector.broadcast %c0_i32_139 : i32 to vector<64x128xi32>
    %331 = arith.cmpi ne, %329, %330 : vector<64x128xi32>
    %c0_i32_140 = arith.constant 0 : i32
    %332 = vector.broadcast %c0_i32_140 : i32 to vector<64x128xi32>
    %333 = arith.cmpi slt, %329, %332 : vector<64x128xi32>
    %c0_i32_141 = arith.constant 0 : i32
    %334 = arith.cmpi slt, %327, %c0_i32_141 : i32
    %335 = vector.broadcast %334 : i1 to vector<64x128xi1>
    %336 = vector.broadcast %335 : vector<64x128xi1> to vector<64x128xi1>
    %337 = arith.xori %333, %336 : vector<64x128xi1>
    %338 = arith.andi %337, %331 : vector<64x128xi1>
    %339 = vector.broadcast %327 : i32 to vector<64x128xi32>
    %340 = arith.addi %329, %339 : vector<64x128xi32>
    %341 = arith.select %338, %340, %329 : vector<64x128xi1>, vector<64x128xi32>
    %c1_i32_142 = arith.constant 1 : i32
    %342 = vector.broadcast %c1_i32_142 : i32 to vector<64x128xi32>
    %343 = arith.cmpi sge, %341, %342 : vector<64x128xi32>
    %cst_143 = arith.constant 0.000000e+00 : f32
    %344 = vector.broadcast %cst_143 : f32 to vector<64x128xf32>
    %345 = arith.select %343, %324, %344 : vector<64x128xi1>, vector<64x128xf32>
    %346 = tpu.concatenate %321, %345, %297 in 1 : vector<64x128xf32>, vector<64x128xf32>, vector<64x128xf32> -> vector<64x384xf32>
    %347 = arith.truncf %346 : vector<64x384xf32> to vector<64x384xbf16>
    %c0_144 = arith.constant 0 : index
    %c0_145 = arith.constant 0 : index
    %348 = vector.load %arg15[%c0_144, %c0_145] : memref<384x128xbf16, #tpu.memory_space<vmem>>, vector<384x128xbf16>
    %cst_146 = arith.constant dense<0.000000e+00> : vector<64x128xf32>
    %349 = tpu.matmul %347, %348, %cst_146 {dimension_numbers = #tpu.dot_dimension_numbers<[1], [0], [0], [1], [0, 0, 1, 1], [], []>} : vector<64x384xbf16>, vector<384x128xbf16>, vector<64x128xf32> -> vector<64x128xf32>
    %c0_147 = arith.constant 0 : index
    %c0_148 = arith.constant 0 : index
    %350 = vector.load %arg16[%c0_147, %c0_148] : memref<1x128xf32, #tpu.memory_space<vmem>>, vector<1x128xf32>
    %351 = vector.broadcast %350 : vector<1x128xf32> to vector<64x128xf32>
    %352 = arith.addf %349, %351 : vector<64x128xf32>
    %cst_149 = arith.constant 0.000000e+00 : f32
    %353 = vector.broadcast %cst_149 : f32 to vector<64x128xf32>
    %354 = arith.maximumf %352, %353 : vector<64x128xf32>
    %355 = arith.truncf %240 : vector<64x128xf32> to vector<64x128xbf16>
    %c0_150 = arith.constant 0 : index
    %c0_151 = arith.constant 0 : index
    %356 = vector.load %arg17[%c0_150, %c0_151] : memref<128x128xbf16, #tpu.memory_space<vmem>>, vector<128x128xbf16>
    %cst_152 = arith.constant dense<0.000000e+00> : vector<64x128xf32>
    %357 = tpu.matmul %355, %356, %cst_152 {dimension_numbers = #tpu.dot_dimension_numbers<[1], [0], [0], [1], [0, 0, 1, 1], [], []>} : vector<64x128xbf16>, vector<128x128xbf16>, vector<64x128xf32> -> vector<64x128xf32>
    %c0_153 = arith.constant 0 : index
    %c0_154 = arith.constant 0 : index
    %358 = vector.load %arg18[%c0_153, %c0_154] : memref<1x128xf32, #tpu.memory_space<vmem>>, vector<1x128xf32>
    %359 = vector.broadcast %358 : vector<1x128xf32> to vector<64x128xf32>
    %360 = arith.addf %357, %359 : vector<64x128xf32>
    %361 = arith.addf %360, %354 : vector<64x128xf32>
    %c0_155 = arith.constant 0 : index
    %c0_156 = arith.constant 0 : index
    %362 = vector.load %arg19[%c0_155, %c0_156] : memref<64x128xf32, #tpu.memory_space<vmem>>, vector<64x128xf32>
    tpu.vector_store %arg19[%c0_155, %c0_156], %361 {strides = array<i32>} : memref<64x128xf32, #tpu.memory_space<vmem>>, vector<64x128xf32>,
    return
  }
}

</mosaic_0001>

<bundles_post_ra>
// kernel: image_annotator_forward.1
= control target key start
LH: loop header
LB: loop body
LE: loop exit
PB: predicated region body
PF: predicated region fallthrough
CT: control target
= control target key end

     0   :  { %s8634_s0 = inlined_call_operand.vmem [shape: bf16[64,128], index: 0, kind: input, shape index: {}]   ;;  %s8635_s1 = inlined_call_operand.vmem [shape: bf16[128,512], index: 1, kind: input, shape index: {}]   ;;  %s8636_s2 = inlined_call_operand.vmem [shape: f32[64,512], index: 2, kind: input, shape index: {}]   ;;  %s8637_s3 = inlined_call_operand.vmem [shape: bf16[1536,128], index: 3, kind: input, shape index: {}]   ;;  %s8638_s4 = inlined_call_operand.vmem [shape: f32[1,128], index: 4, kind: input, shape index: {}]   ;;  %s8639_s5 = inlined_call_operand.vmem [shape: bf16[384,128], index: 5, kind: input, shape index: {}]   ;;  %s8640_s6 = inlined_call_operand.vmem [shape: f32[1,128], index: 6, kind: input, shape index: {}]   ;;  %s8641_s7 = inlined_call_operand.vmem [shape: bf16[512,128], index: 7, kind: input, shape index: {}]   ;;  %s8642_s8 = inlined_call_operand.vmem [shape: f32[1,128], index: 8, kind: input, shape index: {}]   ;;  %s8643_s9 = inlined_call_operand.vmem [shape: bf16[384,128], index: 9, kind: input, shape index: {}]   ;;  %s8644_s10 = inlined_call_operand.vmem [shape: f32[1,128], index: 10, kind: input, shape index: {}]   ;;  %s8645_s11 = inlined_call_operand.vmem [shape: bf16[384,128], index: 11, kind: input, shape index: {}]   ;;  %s8646_s12 = inlined_call_operand.vmem [shape: f32[1,128], index: 12, kind: input, shape index: {}]   ;;  %s8647_s13 = inlined_call_operand.vmem [shape: bf16[384,128], index: 13, kind: input, shape index: {}]   ;;  %s8648_s14 = inlined_call_operand.vmem [shape: f32[1,128], index: 14, kind: input, shape index: {}]   ;;  %s8649_s15 = inlined_call_operand.hbm [shape: bf16[384,128], index: 15, kind: input, shape index: {}]   ;;  %s8650_s16 = inlined_call_operand.vmem [shape: f32[1,128], index: 16, kind: input, shape index: {}]   ;;  %s8651_s17 = inlined_call_operand.hbm [shape: bf16[128,128], index: 17, kind: input, shape index: {}]   ;;  %s8652_s18 = inlined_call_operand.vmem [shape: f32[1,128], index: 18, kind: input, shape index: {}]   ;;  %s8653_s19 = inlined_call_operand.vmem [shape: f32[64,128], index: 19, kind: output, shape index: {}]  }
   0x1   :  { %8685 = sst [smem:[#allocation20_spill]] %s8634_s0 }
   0x2   :  { %8686 = sst [smem:[#allocation21_spill]] %s8635_s1 }
   0x3   :  { %8687 = sst [smem:[#allocation22_spill]] %s8636_s2 }
   0x4   :  { %8688 = sst [smem:[#allocation23_spill]] %s8637_s3 }
   0x5   :  { %24 = vsyncpa [#allocation3], 0 }
   0x6   :  { %25 = vsyncpa [#allocation5], 0  ;;  %s6459_s0 = smov [#allocation2]   ;;  %s6411_s1 = scalar_lea.hbm %s8649_s15, 3072 }
   0x7   :  { %s61_s30 = sshll.u32 %s6459_s0, 4  ;;  %p6412_p0 = scmp.ne.s32.totalorder %s8649_s15, %s6411_s1  ;;  %s62_s30 = int_to_ptr.vmem [resolvable:$true] %s61_s30 }
   0x8   :  { %p6415_p1 = scmp.lt.u32.totalorder %s6411_s1, %s8649_s15 }
   0xa   :  { %p6417_p2 = pnand %p6415_p1, %p6412_p0 }
   0xc   :  { %6420 = shalt.err (!%p6417_p2)
}
   0xd   :  { %s6421_s25 = scalar_lea.vmem %s62_s30, 3072  ;;  %p6426_p4 = scmp.lt.s32.totalorder %s62_s30, %s62_s30 }
   0xe   :  { %p6422_p3 = scmp.ne.s32.totalorder %s62_s30, %s6421_s25  ;;  %p6427_p5 = scmp.lt.s32.totalorder %s6421_s25, %s6421_s25 }
  0x10   :  { %p6428_p6 = por %p6427_p5, %p6426_p4 }
  0x12   :  { %p6429_p7 = pnand %p6428_p6, %p6422_p3 }
  0x14   :  { %6432 = shalt.err (!%p6429_p7)
}
  0x15   :  { %s6460_s3 = smov 64   ;;  %s6461_s26 = smov 4  }
  0x16   :  { %67 = dma.hbm_to_vmem [thread:$0]  %s8649_s15, 3072, %s62_s30, [#allocation3], %s6460_s3, %s6460_s3, %s6461_s26  }
  0x17   :  { %s6462_s29 = smov [#allocation4]   ;;  %s6433_s1 = scalar_lea.hbm %s8651_s17, 1024 }
  0x18   :  { %s75_s0 = sshll.u32 %s6462_s29, 4  ;;  %p6434_p8 = scmp.ne.s32.totalorder %s8651_s17, %s6433_s1  ;;  %s76_s0 = int_to_ptr.vmem [resolvable:$true] %s75_s0 }
  0x19   :  { %p6437_p9 = scmp.lt.u32.totalorder %s6433_s1, %s8651_s17 }
  0x1b   :  { %p6439_p10 = pnand %p6437_p9, %p6434_p8 }
  0x1d   :  { %6442 = shalt.err (!%p6439_p10)
}
  0x1e   :  { %s6443_s25 = scalar_lea.vmem %s76_s0, 1024  ;;  %p6448_p12 = scmp.lt.s32.totalorder %s76_s0, %s76_s0 }
  0x1f   :  { %p6444_p11 = scmp.ne.s32.totalorder %s76_s0, %s6443_s25  ;;  %p6449_p13 = scmp.lt.s32.totalorder %s6443_s25, %s6443_s25 }
  0x21   :  { %p6450_p0 = por %p6449_p13, %p6448_p12 }
  0x23   :  { %p6451_p1 = pnand %p6450_p0, %p6444_p11 }
  0x25   :  { %6454 = shalt.err (!%p6451_p1)
}
  0x26   :  { %81 = dma.hbm_to_vmem [thread:$0]  %s8651_s17, 1024, %s76_s0, [#allocation5], %s6460_s3, %s6460_s3, %s6461_s26  }
  0x27   :  { %6455 = dma.done.wait [#allocation3], 3072  }
  0x28   :  { %6456 = vsyncadd [#allocation3], 4294964224 }
  0x29   :  { %6457 = dma.done.wait [#allocation5], 1024  }
  0x2a   :  { %6458 = vsyncadd [#allocation5], 4294966272  ;;  %v6463_v0 = vmov 0   ;;  %s8689_s29 = sld [smem:[#allocation21_spill]]  ;;  %s8690_s20 = sld [smem:[#allocation23_spill]]  ;;  %vm557_vm0 = vcmask 1041408  }
  0x2b   :  { %347 = vmatprep.mubr.bf16.mxu0 %v6463_v0  ;;  %420 = vmatprep.mubr.bf16.mxu1 %v6463_v0  ;;  %s8691_s26 = sld [smem:[#allocation20_spill]]  ;;  %s8692_s28 = sld [smem:[#allocation22_spill]]  ;;  %vm799_vm1 = vcmask 1040384   ;;  %vm6464_vm4 = vmmov 1  }
  0x30   :  { %v6103_v1 = vld [vmem:[%s8689_s29 + $0x4] ss:$16 sps:$4 sm:$0xff]   ;;  %v6105_v2 = vld [vmem:[%s8689_s29 + $0xc] ss:$16 sps:$4 sm:$0xff]   ;;  %v6107_v3 = vld [vmem:[%s8689_s29] ss:$16 sps:$4 sm:$0xff]  }
  0x31   :  { %315 = vmatprep.subr.bf16.mxu0 %v6103_v1  ;;  %v6108_v4 = vld [vmem:[%s8689_s29 + $0x8] ss:$16 sps:$4 sm:$0xff]   ;;  %388 = vmatprep.subr.bf16.mxu1 %v6105_v2  ;;  %v6109_v5 = vld [vmem:[%s8689_s29 + $0x24] ss:$16 sps:$4 sm:$0xff]   ;;  %v6111_v6 = vld [vmem:[%s8689_s29 + $0x2c] ss:$16 sps:$4 sm:$0xff]  }
  0x32   :  { %316 = vmatpush1.bf16.msra.mxu0 %v6107_v3  ;;  %389 = vmatpush1.bf16.msra.mxu1 %v6108_v4  ;;  %v6113_v7 = vld [vmem:[%s8689_s29 + $0x20] ss:$16 sps:$4 sm:$0xff]   ;;  %v6114_v8 = vld [vmem:[%s8689_s29 + $0x28] ss:$16 sps:$4 sm:$0xff]   ;;  %v6115_v9 = vld [vmem:[%s8689_s29 + $0x44] ss:$16 sps:$4 sm:$0xff]  }
  0x33   :  { %317 = vmatprep.subr.bf16.mxu0 %v6109_v5  ;;  %390 = vmatprep.subr.bf16.mxu1 %v6111_v6  ;;  %v6117_v10 = vld [vmem:[%s8689_s29 + $0x4c] ss:$16 sps:$4 sm:$0xff]   ;;  %v6119_v11 = vld [vmem:[%s8689_s29 + $0x40] ss:$16 sps:$4 sm:$0xff]   ;;  %v6120_v12 = vld [vmem:[%s8689_s29 + $0x48] ss:$16 sps:$4 sm:$0xff]  }
  0x34   :  { %v6121_v13 = vld [vmem:[%s8689_s29 + $0x64] ss:$16 sps:$4 sm:$0xff]   ;;  %v6123_v14 = vld [vmem:[%s8689_s29 + $0x6c] ss:$16 sps:$4 sm:$0xff]   ;;  %v6125_v15 = vld [vmem:[%s8689_s29 + $0x60] ss:$16 sps:$4 sm:$0xff]  }
  0x35   :  { %v6126_v16 = vld [vmem:[%s8689_s29 + $0x68] ss:$16 sps:$4 sm:$0xff]   ;;  %v6127_v17 = vld [vmem:[%s8689_s29 + $0x84] ss:$16 sps:$4 sm:$0xff]   ;;  %v6129_v18 = vld [vmem:[%s8689_s29 + $0x8c] ss:$16 sps:$4 sm:$0xff]  }
  0x36   :  { %318 = vmatpush1.bf16.msra.mxu0 %v6113_v7  ;;  %391 = vmatpush1.bf16.msra.mxu1 %v6114_v8  ;;  %v6131_v19 = vld [vmem:[%s8689_s29 + $0x80] ss:$16 sps:$4 sm:$0xff]   ;;  %v6132_v20 = vld [vmem:[%s8689_s29 + $0x88] ss:$16 sps:$4 sm:$0xff]   ;;  %v6133_v21 = vld [vmem:[%s8689_s29 + $0xa4] ss:$16 sps:$4 sm:$0xff]   ;;  %v654_v7 = vlaneseq }
  0x37   :  { %319 = vmatprep.subr.bf16.mxu0 %v6115_v9  ;;  %392 = vmatprep.subr.bf16.mxu1 %v6117_v10  ;;  %v6135_v22 = vld [vmem:[%s8689_s29 + $0xac] ss:$16 sps:$4 sm:$0xff]   ;;  %v6137_v23 = vld [vmem:[%s8689_s29 + $0xa0] ss:$16 sps:$4 sm:$0xff]   ;;  %v6138_v24 = vld [vmem:[%s8689_s29 + $0xa8] ss:$16 sps:$4 sm:$0xff]  }
  0x38   :  { %v6139_v25 = vld [vmem:[%s8689_s29 + $0xc4] ss:$16 sps:$4 sm:$0xff]   ;;  %v6141_v26 = vld [vmem:[%s8689_s29 + $0xcc] ss:$16 sps:$4 sm:$0xff]   ;;  %v6143_v27 = vld [vmem:[%s8689_s29 + $0xc0] ss:$16 sps:$4 sm:$0xff]  }
  0x39   :  { %v6144_v28 = vld [vmem:[%s8689_s29 + $0xc8] ss:$16 sps:$4 sm:$0xff]   ;;  %v6145_v29 = vld [vmem:[%s8689_s29 + $0xe4] ss:$16 sps:$4 sm:$0xff]   ;;  %v6147_v30 = vld [vmem:[%s8689_s29 + $0xec] ss:$16 sps:$4 sm:$0xff]  }
  0x3a   :  { %320 = vmatpush1.bf16.msra.mxu0 %v6119_v11  ;;  %393 = vmatpush1.bf16.msra.mxu1 %v6120_v12  ;;  %v6149_v31 = vld [vmem:[%s8689_s29 + $0xe0] ss:$16 sps:$4 sm:$0xff]   ;;  %v6150_v32 = vld [vmem:[%s8689_s29 + $0xe8] ss:$16 sps:$4 sm:$0xff]   ;;  %v6816_v11 = vshrl.u32 %v654_v7, 7 }
  0x3b   :  { %321 = vmatprep.subr.bf16.mxu0 %v6121_v13  ;;  %394 = vmatprep.subr.bf16.mxu1 %v6123_v14  ;;  %v6155_v33 = vld [vmem:[%s8690_s20 + $0x40] sm:$0xff]   ;;  %v6159_v38 = vld [vmem:[%s8690_s20 + $0x48] sm:$0xff]   ;;  %v6163_v43 = vld [vmem:[%s8690_s20 + $0x50] sm:$0xff]  }
  0x3c   :  { %v6157_v34 = vld [vmem:[%s8690_s20 + $0xc0] sm:$0xff]   ;;  %v6161_v39 = vld [vmem:[%s8690_s20 + $0xc8] sm:$0xff]   ;;  %v6165_v44 = vld [vmem:[%s8690_s20 + $0xd0] sm:$0xff]  }
  0x3d   :  { %v6151_v35 = vld [vmem:[%s8691_s26] sm:$0xff]   ;;  %v6160_v40 = vld [vmem:[%s8690_s20 + $0x8] sm:$0xff]   ;;  %v6164_v45 = vld [vmem:[%s8690_s20 + $0x10] sm:$0xff]  }
  0x3e   :  { %322 = vmatpush1.bf16.msra.mxu0 %v6125_v15  ;;  %395 = vmatpush1.bf16.msra.mxu1 %v6126_v16  ;;  %v6156_v36 = vld [vmem:[%s8690_s20] sm:$0xff]   ;;  %v6162_v41 = vld [vmem:[%s8690_s20 + $0x88] sm:$0xff]   ;;  %v6166_v46 = vld [vmem:[%s8690_s20 + $0x90] sm:$0xff]  }
  0x3f   :  { %323 = vmatprep.subr.bf16.mxu0 %v6127_v17  ;;  %396 = vmatprep.subr.bf16.mxu1 %v6129_v18  ;;  %v6158_v37 = vld [vmem:[%s8690_s20 + $0x80] sm:$0xff]   ;;  %v6152_v42 = vld [vmem:[%s8691_s26 + $0x8] sm:$0xff]   ;;  %v6167_v47 = vld [vmem:[%s8690_s20 + $0x58] sm:$0xff]  }
  0x40   :  { %v6169_v48 = vld [vmem:[%s8690_s20 + $0xd8] sm:$0xff]   ;;  %v6153_v51 = vld [vmem:[%s8691_s26 + $0x10] sm:$0xff]   ;;  %v6171_v52 = vld [vmem:[%s8690_s20 + $0x60] sm:$0xff]  }
  0x41   :  { %v6168_v49 = vld [vmem:[%s8690_s20 + $0x18] sm:$0xff]   ;;  %v6173_v53 = vld [vmem:[%s8690_s20 + $0xe0] sm:$0xff]   ;;  %v6175_v56 = vld [vmem:[%s8690_s20 + $0x68] sm:$0xff]  }
  0x42   :  { %324 = vmatpush1.bf16.msra.mxu0 %v6131_v19  ;;  %397 = vmatpush1.bf16.msra.mxu1 %v6132_v20  ;;  %v6170_v50 = vld [vmem:[%s8690_s20 + $0x98] sm:$0xff]   ;;  %v6172_v54 = vld [vmem:[%s8690_s20 + $0x20] sm:$0xff]   ;;  %v6177_v58 = vld [vmem:[%s8690_s20 + $0xe8] sm:$0xff]   ;;  %v6822_v19 = vadd.s32 16, %v6816_v11 }
  0x43   :  { %325 = vmatprep.subr.bf16.mxu0 %v6133_v21  ;;  %398 = vmatprep.subr.bf16.mxu1 %v6135_v22  ;;  %v6174_v55 = vld [vmem:[%s8690_s20 + $0xa0] sm:$0xff]   ;;  %v6154_v57 = vld [vmem:[%s8691_s26 + $0x18] sm:$0xff]   ;;  %v6176_v59 = vld [vmem:[%s8690_s20 + $0x28] sm:$0xff]  }
  0x44   :  { %v6178_v60 = vld [vmem:[%s8690_s20 + $0xa8] sm:$0xff]   ;;  %v6179_v61 = vld [vmem:[%s8690_s20 + $0x70] sm:$0xff]   ;;  %v6183_v1 = vld [vmem:[%s8690_s20 + $0x78] sm:$0xff]  }
  0x45   :  { %v6181_v62 = vld [vmem:[%s8690_s20 + $0xf0] sm:$0xff]   ;;  %v6185_v2 = vld [vmem:[%s8690_s20 + $0xf8] sm:$0xff]   ;;  %v6187_v5 = vld [vmem:[%s8690_s20 + $0x140] sm:$0xff]  }
  0x46   :  { %326 = vmatpush1.bf16.msra.mxu0 %v6137_v23  ;;  %399 = vmatpush1.bf16.msra.mxu1 %v6138_v24  ;;  %v6180_v63 = vld [vmem:[%s8690_s20 + $0x30] sm:$0xff]   ;;  %v6184_v3 = vld [vmem:[%s8690_s20 + $0x38] sm:$0xff]   ;;  %v6189_v6 = vld [vmem:[%s8690_s20 + $0x1c0] sm:$0xff]  }
  0x47   :  { %327 = vmatprep.subr.bf16.mxu0 %v6139_v25  ;;  %400 = vmatprep.subr.bf16.mxu1 %v6141_v26  ;;  %v6186_v4 = vld [vmem:[%s8690_s20 + $0xb8] sm:$0xff]   ;;  %v461_v8 = vld [vmem:[%s8692_s28] sm:$0xff]  ;;  %v463_v9 = vld [vmem:[%s8692_s28 + $0x10] sm:$0xff] }
  0x48   :  { %v462_v10 = vld [vmem:[%s8692_s28 + $0x8] sm:$0xff]  ;;  %v464_v14 = vld [vmem:[%s8692_s28 + $0x18] sm:$0xff] }
  0x4a   :  { %328 = vmatpush1.bf16.msra.mxu0 %v6143_v27  ;;  %401 = vmatpush1.bf16.msra.mxu1 %v6144_v28 }
  0x4b   :  { %329 = vmatprep.subr.bf16.mxu0 %v6145_v29  ;;  %402 = vmatprep.subr.bf16.mxu1 %v6147_v30  ;;  %v465_v29 = vld [vmem:[%s8692_s28 + $0x20] sm:$0xff]  ;;  %v467_v30 = vld [vmem:[%s8692_s28 + $0x30] sm:$0xff] }
  0x4e   :  { %330 = vmatpush1.bf16.msra.mxu0 %v6149_v31  ;;  %403 = vmatpush1.bf16.msra.mxu1 %v6150_v32  ;;  %v8663_v31 = vand.u32 15, %v6816_v11  ;;  %v8658_v32 = vand.u32 15, %v6822_v19 }
  0x4f   :  { %5345 = vmatprep.subr.bf16.mxu0 %v6155_v33  ;;  %5385 = vmatprep.subr.bf16.mxu1 %v6157_v34 }
  0x50   :  { %vm6923_vm2 = vcmp.ge.s32.totalorder %v8663_v31, 2  ;;  %vm6957_vm3 = vcmp.ge.s32.totalorder %v8658_v32, 2  ;;  %v480_v31 = vld [vmem:[%s8692_s28 + $0x98] sm:$0xff] }
  0x51   :  { %348 = vmatmul.mubr.bf16.vlgmr.msra.gmra.mrb[0].mxu0 %v6151_v35  ;;  %421 = vmatmul.mubr.bf16.vlgmr.msra.gmra.mrb[0].mxu1 %v6151_v35  ;;  %v6838_v35 = vadd.s32 32, %v6816_v11  ;;  %vm6997_vm5 = vmpackc.low %vm6464_vm4, %vm6923_vm2 }
  0x52   :  { %357 = vmatprep.mubr.bf16.mxu0 %v6463_v0  ;;  %430 = vmatprep.mubr.bf16.mxu1 %v6463_v0  ;;  %vm7111_vm7 = vmpackc.low %vm6464_vm4, %vm6957_vm3 }
  0x53   :  { %5346 = vmatpush3.bf16.msra.mxu0 %v6156_v36  ;;  %5386 = vmatpush3.bf16.msra.mxu1 %v6158_v37  ;;  %8693 = vst [vmem:[#allocation8_spill] sm:$0xff] %v6838_v35  ;;  %v6841_v36 = vadd.s32 48, %v6816_v11 }
  0x54   :  { %5347 = vmatprep.subr.bf16.mxu0 %v6159_v38  ;;  %5387 = vmatprep.subr.bf16.mxu1 %v6161_v39 }
  0x55   :  { %8694 = vst [vmem:[#allocation9_spill] sm:$0xff] %v6841_v36 }
  0x57   :  { %5348 = vmatpush3.bf16.msra.mxu0 %v6160_v40  ;;  %5388 = vmatpush3.bf16.msra.mxu1 %v6162_v41  ;;  %v466_v41 = vld [vmem:[%s8692_s28 + $0x28] sm:$0xff] }
  0x58   :  { %5349 = vmatprep.subr.bf16.mxu0 %v6163_v43  ;;  %5389 = vmatprep.subr.bf16.mxu1 %v6165_v44 }
  0x59   :  { %358 = vmatmul.mubr.bf16.gmra.mrb[4].mxu0 %v6152_v42  ;;  %431 = vmatmul.mubr.bf16.gmra.mrb[4].mxu1 %v6152_v42  ;;  %v468_v42 = vld [vmem:[%s8692_s28 + $0x38] sm:$0xff] }
  0x5a   :  { %367 = vmatprep.mubr.bf16.mxu0 %v6463_v0  ;;  %440 = vmatprep.mubr.bf16.mxu1 %v6463_v0 }
  0x5b   :  { %5350 = vmatpush3.bf16.msra.mxu0 %v6164_v45  ;;  %5390 = vmatpush3.bf16.msra.mxu1 %v6166_v46 }
  0x5c   :  { %5351 = vmatprep.subr.bf16.mxu0 %v6167_v47  ;;  %5391 = vmatprep.subr.bf16.mxu1 %v6169_v48 }
  0x5f   :  { %5352 = vmatpush3.bf16.msra.mxu0 %v6168_v49  ;;  %5392 = vmatpush3.bf16.msra.mxu1 %v6170_v50 }
  0x60   :  { %5353 = vmatprep.subr.bf16.mxu0 %v6171_v52  ;;  %5393 = vmatprep.subr.bf16.mxu1 %v6173_v53 }
  0x61   :  { %368 = vmatmul.mubr.bf16.gmra.mrb[8].mxu0 %v6153_v51  ;;  %441 = vmatmul.mubr.bf16.gmra.mrb[8].mxu1 %v6153_v51 }
  0x62   :  { %377 = vmatprep.mubr.bf16.mxu0 %v6463_v0  ;;  %450 = vmatprep.mubr.bf16.mxu1 %v6463_v0  ;;  %v6182_v0 = vld [vmem:[%s8690_s20 + $0xb0] sm:$0xff]  }
  0x63   :  { %5354 = vmatpush3.bf16.msra.mxu0 %v6172_v54  ;;  %5394 = vmatpush3.bf16.msra.mxu1 %v6174_v55 }
  0x64   :  { %5355 = vmatprep.subr.bf16.mxu0 %v6175_v56  ;;  %5395 = vmatprep.subr.bf16.mxu1 %v6177_v58 }
  0x67   :  { %5356 = vmatpush3.bf16.msra.mxu0 %v6176_v59  ;;  %5396 = vmatpush3.bf16.msra.mxu1 %v6178_v60  ;;  %v469_v59 = vld [vmem:[%s8692_s28 + $0x40] sm:$0xff] }
  0x68   :  { %5357 = vmatprep.subr.bf16.mxu0 %v6179_v61  ;;  %5397 = vmatprep.subr.bf16.mxu1 %v6181_v62 }
  0x69   :  { %378 = vmatmul.mubr.bf16.gmra.mrb[12].mxu0 %v6154_v57  ;;  %451 = vmatmul.mubr.bf16.gmra.mrb[12].mxu1 %v6154_v57 }
  0x6b   :  { %5358 = vmatpush3.bf16.msra.mxu0 %v6180_v63  ;;  %5398 = vmatpush3.bf16.msra.mxu1 %v6182_v0 }
  0x6c   :  { %5359 = vmatprep.subr.bf16.mxu0 %v6183_v1  ;;  %5399 = vmatprep.subr.bf16.mxu1 %v6185_v2  ;;  %v471_v2 = vld [vmem:[%s8692_s28 + $0x50] sm:$0xff] }
  0x6f   :  { %5360 = vmatpush3.bf16.msra.mxu0 %v6184_v3  ;;  %5400 = vmatpush3.bf16.msra.mxu1 %v6186_v4 }
  0x70   :  { %5425 = vmatprep.subr.bf16.mxu0 %v6187_v5  ;;  %5465 = vmatprep.subr.bf16.mxu1 %v6189_v6 }
 0x124   :  { %v349_v12 = vpop.f32.mrb[0].mxu0  ;;  %v422_v13 = vpop.f32.mrb[0].mxu1 }
 0x125   :  { %v493_v15 = vadd.f32 %v461_v8, %v349_v12  ;;  %v495_v16 = vadd.f32 %v463_v9, %v422_v13  ;;  %v351_v17 = vpop.f32.mrb[1].mxu0  ;;  %v424_v18 = vpop.f32.mrb[1].mxu1  ;;  %v470_v12 = vld [vmem:[%s8692_s28 + $0x48] sm:$0xff] }
 0x126   :  { %v6824_v20 = vadd.f32 %v462_v10, %v351_v17  ;;  %v353_v21 = vpop.f32.mrb[2].mxu0  ;;  %v426_v22 = vpop.f32.mrb[2].mxu1  ;;  %v6826_v23 = vadd.f32 %v464_v14, %v424_v18  ;;  %v472_v17 = vld [vmem:[%s8692_s28 + $0x58] sm:$0xff]  ;;  %v473_v18 = vld [vmem:[%s8692_s28 + $0x60] sm:$0xff] }
 0x127   :  { %v355_v24 = vpop.f32.mrb[3].mxu0  ;;  %v428_v25 = vpop.f32.mrb[3].mxu1  ;;  %v558_v26 = vrot.slane %v493_v15, 6  ;;  %v560_v27 = vrot.slane %v495_v16, 6  ;;  %v802_v28 = vrot.slane %v495_v16, 7  ;;  %v800_v33 = vrot.slane %v493_v15, 7 }
 0x128   :  { %v559_v34 = vrot.slane %v6824_v20, 6  ;;  %v8662_v37 = vrot.slane %v6824_v20, 7  ;;  %v561_v38 = vrot.slane %v6826_v23, 6  ;;  %v6845_v39 = vadd.f32 %v465_v29, %v353_v21  ;;  %v475_v21 = vld [vmem:[%s8692_s28 + $0x70] sm:$0xff] }
 0x129   :  { %v6847_v40 = vadd.f32 %v467_v30, %v426_v22  ;;  %v6856_v43 = vsel %vm557_vm0, 0.0, %v558_v26  ;;  %v6859_v44 = vsel %vm557_vm0, 0.0, %v560_v27  ;;  %v6862_v45 = vsel %vm799_vm1, 0.0, %v802_v28 }
 0x12a   :  { %8695 = vst [vmem:[#allocation10_spill] sm:$0xff] %v6862_v45  ;;  %v8661_v46 = vrot.slane %v6826_v23, 7  ;;  %v8666_v49 = vrot.slane %v6845_v39, 6  ;;  %v8660_v50 = vrot.slane %v6845_v39, 7  ;;  %v6868_v51 = vpack.c.bf16 %v6845_v39, %v493_v15 }
 0x12b   :  { %v8664_v52 = vrot.slane %v6847_v40, 6  ;;  %v8659_v55 = vrot.slane %v6847_v40, 7  ;;  %v6873_v56 = vpack.c.bf16 %v6847_v40, %v495_v16  ;;  %v6875_v57 = vadd.f32 %v466_v41, %v355_v24 }
 0x12c   :  { %v359_v47 = vpop.f32.mrb[4].mxu0  ;;  %v432_v48 = vpop.f32.mrb[4].mxu1  ;;  %8696 = vst [vmem:[#allocation11_spill] sm:$0xff] %v6868_v51  ;;  %v6877_v58 = vadd.f32 %v468_v42, %v428_v25  ;;  %v6883_v62 = vsel %vm799_vm1, 0.0, %v800_v33  ;;  %v6888_v63 = vsel %vm557_vm0, %v558_v26, %v8666_v49  ;;  %v6893_v0 = vsel %vm799_vm1, %v800_v33, %v8660_v50  ;;  %v6190_v33 = vld [vmem:[%s8690_s20 + $0x180] sm:$0xff]  }
 0x12d   :  { %v361_v53 = vpop.f32.mrb[5].mxu0  ;;  %v434_v54 = vpop.f32.mrb[5].mxu1  ;;  %8697 = vst [vmem:[#allocation12_spill] sm:$0xff] %v6873_v56  ;;  %v6898_v1 = vsel %vm557_vm0, %v560_v27, %v8664_v52  ;;  %v4966_v5 = vpack.c.bf16 %v6888_v63, %v6856_v43  ;;  %v6910_v7 = vsel %vm799_vm1, %v802_v28, %v8659_v55  ;;  %v6916_v10 = vadd.f32 %v469_v59, %v359_v47  ;;  %v474_v27 = vld [vmem:[%s8692_s28 + $0x68] sm:$0xff]  ;;  %v476_v47 = vld [vmem:[%s8692_s28 + $0x78] sm:$0xff]  ;;  %v477_v55 = vld [vmem:[%s8692_s28 + $0x80] sm:$0xff] }
 0x12e   :  { %v363_v60 = vpop.f32.mrb[6].mxu0  ;;  %v436_v61 = vpop.f32.mrb[6].mxu1  ;;  %8698 = vst [vmem:[#allocation13_spill] sm:$0xff] %v6910_v7  ;;  %v4990_v8 = vpack.c.bf16 %v6898_v1, %v6859_v44  ;;  %v564_v14 = vrot.slane %v6875_v57, 6  ;;  %v568_v15 = vrot.slane %v6877_v58, 6  ;;  %v6929_v16 = vadd.f32 %v471_v2, %v432_v48  ;;  %v483_v43 = vld [vmem:[%s8692_s28 + $0xb0] sm:$0xff] }
 0x12f   :  { %v365_v3 = vpop.f32.mrb[7].mxu0  ;;  %v438_v4 = vpop.f32.mrb[7].mxu1  ;;  %v8665_v22 = vand.u32 15, %v6838_v35  ;;  %v651_v24 = vsel %vm557_vm0, 0.0, %v559_v34  ;;  %v6947_v25 = vsel %vm799_vm1, 0.0, %v8662_v37  ;;  %v653_v26 = vsel %vm557_vm0, 0.0, %v561_v38 }
 0x130   :  { %v6965_v30 = vsel %vm799_vm1, 0.0, %v8661_v46  ;;  %v6969_v42 = vadd.f32 %v470_v12, %v361_v53  ;;  %v570_v2 = vrot.slane %v6916_v10, 6  ;;  %v6975_v9 = vadd.f32 %v472_v17, %v434_v54  ;;  %v479_v53 = vld [vmem:[%s8692_s28 + $0x90] sm:$0xff]  ;;  %v6188_v17 = vld [vmem:[%s8690_s20 + $0x100] sm:$0xff]   ;;  %v482_v63 = vld [vmem:[%s8692_s28 + $0xa8] sm:$0xff] }
 0x131   :  { %v6977_v6 = vadd.f32 %v473_v18, %v363_v60  ;;  %v6979_v32 = vadd.f32 %v475_v21, %v436_v61  ;;  %v565_v54 = vsel %vm557_vm0, %v559_v34, %v564_v14  ;;  %v8703_v60 = vmov 0 }
 0x132   :  { %v8704_v60 = vsel %vm6997_vm5, 4294967295, %v8703_v60  ;;  %v569_v61 = vsel %vm557_vm0, %v561_v38, %v568_v15  ;;  %v7009_v21 = vadd.f32 %v474_v27, %v365_v3  ;;  %v7011_v13 = vadd.f32 %v476_v47, %v438_v4  ;;  %v478_v38 = vld [vmem:[%s8692_s28 + $0x88] sm:$0xff] }
 0x133   :  { %8705 = vst [vmem:[#allocation14_spill] sm:$0xff] %v8704_v60  ;;  %v4963_v46 = vpack.c.bf16 %v565_v54, %v651_v24  ;;  %v4987_v37 = vpack.c.bf16 %v569_v61, %v653_v26  ;;  %v572_v4 = vrot.slane %v6969_v42, 6  ;;  %v6191_v24 = vld [vmem:[%s8690_s20 + $0x148] sm:$0xff]   ;;  %v576_v61 = vrot.slane %v6975_v9, 6  ;;  %v6198_v60 = vld [vmem:[%s8690_s20 + $0x190] sm:$0xff]  }
 0x134   :  { %v369_v48 = vpop.f32.mrb[8].mxu0  ;;  %v442_v59 = vpop.f32.mrb[8].mxu1  ;;  %v6193_v47 = vld [vmem:[%s8690_s20 + $0x1c8] sm:$0xff]   ;;  %v8668_v1 = vrot.slane %v7009_v21, 6  ;;  %vm7089_vm6 = vcmp.ge.s32.totalorder %v8665_v22, 2  ;;  %v8712_v22 = vrot.slane %v6977_v6, 6 }
 0x135   :  { %v371_v12 = vpop.f32.mrb[9].mxu0  ;;  %v444_v50 = vpop.f32.mrb[9].mxu1  ;;  %v7027_v26 = vadd.f32 %v477_v55, %v369_v48  ;;  %v7029_v27 = vadd.f32 %v479_v53, %v442_v59  ;;  %4964 = vmatprep.mubr.msk.bf16.mxu0 %vm6997_vm5, %v4963_v46  ;;  %4988 = vmatprep.mubr.msk.bf16.mxu1 %vm6997_vm5, %v4987_v37  ;;  %v6192_v55 = vld [vmem:[%s8690_s20 + $0x108] sm:$0xff]   ;;  %v481_v59 = vld [vmem:[%s8692_s28 + $0xa0] sm:$0xff]  ;;  %v577_v28 = vsel %vm557_vm0, %v568_v15, %v576_v61  ;;  %v8711_v15 = vrot.slane %v6845_v39, 6  ;;  %vm7247_vm9 = vmpackc.low %vm6464_vm4, %vm7089_vm6 }
 0x136   :  { %v373_v18 = vpop.f32.mrb[10].mxu0  ;;  %v446_v34 = vpop.f32.mrb[10].mxu1  ;;  %v6194_v48 = vld [vmem:[%s8690_s20 + $0x188] sm:$0xff]   ;;  %4967 = vmatmul.mubr.msk.bf16.vlgmr.msra.gmra.mrb[16].mxu0 %vm6997_vm5, %v4966_v5  ;;  %4991 = vmatmul.mubr.msk.bf16.vlgmr.msra.gmra.mrb[16].mxu1 %vm6997_vm5, %v4990_v8  ;;  %v7060_v37 = vadd.f32 %v478_v38, %v371_v12  ;;  %v7062_v46 = vadd.f32 %v480_v31, %v444_v50  ;;  %v8667_v31 = vrot.slane %v7011_v13, 6  ;;  %v484_v50 = vld [vmem:[%s8692_s28 + $0xb8] sm:$0xff]  ;;  %v6195_v8 = vld [vmem:[%s8690_s20 + $0x150] sm:$0xff]   ;;  %v579_v41 = vsel %vm557_vm0, %v570_v2, %v8712_v22 }
 0x137   :  { %v375_v29 = vpop.f32.mrb[11].mxu0  ;;  %v448_v52 = vpop.f32.mrb[11].mxu1  ;;  %5426 = vmatpush3.bf16.msra.mxu0 %v6188_v17  ;;  %5466 = vmatpush3.bf16.msra.mxu1 %v6190_v33  ;;  %v7094_v53 = vadd.f32 %v481_v59, %v373_v18  ;;  %v571_v59 = vsel %vm557_vm0, %v8711_v15, %v570_v2  ;;  %v8714_v15 = vrot.slane %v6847_v40, 6  ;;  %v8715_v38 = vrot.slane %v6979_v32, 6 }
 0x138   :  { %5427 = vmatprep.subr.bf16.mxu0 %v6191_v24  ;;  %5467 = vmatprep.subr.bf16.mxu1 %v6193_v47  ;;  %v7096_v24 = vadd.f32 %v483_v43, %v446_v34  ;;  %v7098_v12 = vadd.f32 %v482_v63, %v375_v29  ;;  %v6197_v47 = vld [vmem:[%s8690_s20 + $0x1d0] sm:$0xff]   ;;  %v7106_v49 = vadd.f32 %v484_v50, %v448_v52  ;;  %v8708_v29 = vmov 0  ;;  %v485_v63 = vld [vmem:[%s8692_s28 + $0xc0] sm:$0xff] }
 0x139   :  { %v8709_v29 = vsel %vm7111_vm7, 4294967295, %v8708_v29  ;;  %v573_v43 = vsel %vm557_vm0, %v564_v14, %v572_v4  ;;  %v581_v52 = vsel %vm557_vm0, %v572_v4, %v8668_v1  ;;  %v486_v14 = vld [vmem:[%s8692_s28 + $0xc8] sm:$0xff]  ;;  %v585_v4 = vsel %vm557_vm0, %v576_v61, %v8667_v31  ;;  %v488_v61 = vld [vmem:[%s8692_s28 + $0xd8] sm:$0xff] }
 0x13a   :  { %8710 = vst [vmem:[#allocation15_spill] sm:$0xff] %v8709_v29  ;;  %v4969_v54 = vpack.c.bf16 %v581_v52, %v573_v43  ;;  %v6196_v43 = vld [vmem:[%s8690_s20 + $0x110] sm:$0xff]   ;;  %v4972_v52 = vpack.c.bf16 %v579_v41, %v571_v59  ;;  %v8713_v31 = vrot.slane %v6929_v16, 6  ;;  %v6199_v41 = vld [vmem:[%s8690_s20 + $0x158] sm:$0xff]   ;;  %v8717_v59 = vand.u32 15, %v6841_v36 }
 0x13b   :  { %5428 = vmatpush3.bf16.msra.mxu0 %v6192_v55  ;;  %5468 = vmatpush3.bf16.msra.mxu1 %v6194_v48  ;;  %v487_v55 = vld [vmem:[%s8692_s28 + $0xd0] sm:$0xff]  ;;  %v8730_v29 = vrot.slane %v6977_v6, 6  ;;  %v8736_v36 = vrot.slane %v6979_v32, 6  ;;  %v8737_v45 = vrot.slane %v7096_v24, 6 }
 0x13c   :  { %v379_v17 = vpop.f32.mrb[12].mxu0  ;;  %v452_v33 = vpop.f32.mrb[12].mxu1  ;;  %5429 = vmatprep.subr.bf16.mxu0 %v6195_v8  ;;  %v4993_v8 = vpack.c.bf16 %v585_v4, %v577_v28  ;;  %v575_v1 = vsel %vm557_vm0, %v8714_v15, %v8713_v31  ;;  %v8716_v22 = vmov %v8713_v31  ;;  %5469 = vmatprep.subr.bf16.mxu1 %v6197_v47  ;;  %vm7171_vm8 = vcmp.ge.s32.totalorder %v8717_v59, 2  ;;  %v6201_v4 = vld [vmem:[%s8690_s20 + $0x1d8] sm:$0xff]   ;;  %v491_v59 = vld [vmem:[%s8692_s28 + $0xf0] sm:$0xff] }
 0x13d   :  { %v381_v44 = vpop.f32.mrb[13].mxu0  ;;  %v454_v3 = vpop.f32.mrb[13].mxu1  ;;  %v583_v2 = vsel %vm557_vm0, %v8716_v22, %v8715_v38  ;;  %4970 = vmatprep.mubr.msk.bf16.mxu0 %vm7111_vm7, %v4969_v54  ;;  %v7177_v38 = vadd.f32 %v485_v63, %v379_v17  ;;  %v7179_v47 = vadd.f32 %v487_v55, %v452_v33  ;;  %v489_v22 = vld [vmem:[%s8692_s28 + $0xe0] sm:$0xff]  ;;  %v596_v17 = vrot.slane %v7098_v12, 6  ;;  %v6202_v55 = vld [vmem:[%s8690_s20 + $0x198] sm:$0xff]   ;;  %vm7317_vm11 = vmpackc.low %vm6464_vm4, %vm7171_vm8 }
 0x13e   :  { %v383_v18 = vpop.f32.mrb[14].mxu0  ;;  %v456_v34 = vpop.f32.mrb[14].mxu1  ;;  %v4996_v31 = vpack.c.bf16 %v583_v2, %v575_v1  ;;  %v7184_v15 = vadd.f32 %v486_v14, %v381_v44  ;;  %4994 = vmatprep.mubr.msk.bf16.mxu1 %vm7111_vm7, %v4993_v8  ;;  %4973 = vmatmul.mubr.msk.bf16.gmra.mrb[20].mxu0 %vm7111_vm7, %v4972_v52  ;;  %v6200_v44 = vld [vmem:[%s8690_s20 + $0x118] sm:$0xff]   ;;  %v7202_v33 = vadd.f32 %v488_v61, %v454_v3  ;;  %v600_v2 = vrot.slane %v7106_v49, 6  ;;  %v490_v8 = vld [vmem:[%s8692_s28 + $0xe8] sm:$0xff]  ;;  %v6203_v1 = vld [vmem:[%s8690_s20 + $0x160] sm:$0xff]  }
 0x13f   :  { %v385_v48 = vpop.f32.mrb[15].mxu0  ;;  %v458_v50 = vpop.f32.mrb[15].mxu1  ;;  %5430 = vmatpush3.bf16.msra.mxu0 %v6196_v43  ;;  %v492_v3 = vld [vmem:[%s8692_s28 + $0xf8] sm:$0xff]  ;;  %5470 = vmatpush3.bf16.msra.mxu1 %v6198_v60  ;;  %v602_v52 = vrot.slane %v7177_v38, 6  ;;  %v7223_v43 = vadd.f32 %v491_v59, %v456_v34  ;;  %v606_v61 = vrot.slane %v7179_v47, 6  ;;  %v8721_v34 = vrot.slane %v7009_v21, 6 }
 0x140   :  { %4997 = vmatmul.mubr.msk.bf16.gmra.mrb[20].mxu1 %vm7111_vm7, %v4996_v31  ;;  %5431 = vmatprep.subr.bf16.mxu0 %v6199_v41  ;;  %v7221_v31 = vadd.f32 %v489_v22, %v383_v18  ;;  %v604_v60 = vrot.slane %v7184_v15, 6  ;;  %v608_v41 = vrot.slane %v7202_v33, 6  ;;  %v7232_v63 = vadd.f32 %v490_v8, %v385_v48  ;;  %v6205_v48 = vld [vmem:[%s8690_s20 + $0x1e0] sm:$0xff]   ;;  %v6211_v28 = vld [vmem:[%s8690_s20 + $0x170] sm:$0xff]  }
 0x141   :  { %5471 = vmatprep.subr.bf16.mxu1 %v6201_v4  ;;  %v7234_v54 = vadd.f32 %v492_v3, %v458_v50  ;;  %v8720_v18 = vrot.slane %v7060_v37, 6  ;;  %v8723_v4 = vmov 0  ;;  %v8726_v8 = vrot.slane %v7062_v46, 6 }
 0x142   :  { %v8724_v4 = vsel %vm7247_vm9, 4294967295, %v8723_v4  ;;  %v8727_v3 = vrot.slane %v7011_v13, 6 }
 0x143   :  { %v589_v22 = vsel %vm557_vm0, %v8721_v34, %v8720_v18  ;;  %v8722_v59 = vmov %v8720_v18  ;;  %8725 = vst [vmem:[#allocation16_spill] sm:$0xff] %v8724_v4  ;;  %5432 = vmatpush3.bf16.msra.mxu0 %v6200_v44  ;;  %v8728_v34 = vmov %v8726_v8  ;;  %v6204_v44 = vld [vmem:[%s8690_s20 + $0x120] sm:$0xff]   ;;  %5472 = vmatpush3.bf16.msra.mxu1 %v6202_v55  ;;  %v616_v51 = vrot.slane %v7234_v54, 6 }
 0x144   :  { %v597_v14 = vsel %vm557_vm0, %v8722_v59, %v596_v17  ;;  %v593_v18 = vsel %vm557_vm0, %v8727_v3, %v8726_v8  ;;  %v601_v5 = vsel %vm557_vm0, %v8728_v34, %v600_v2  ;;  %v8729_v59 = vrot.slane %v7027_v26, 6  ;;  %5433 = vmatprep.subr.bf16.mxu0 %v6203_v1  ;;  %5473 = vmatprep.subr.bf16.mxu1 %v6205_v48 }
 0x145   :  { %v4975_v50 = vpack.c.bf16 %v597_v14, %v589_v22  ;;  %v8731_v14 = vand.u32 15, %v6816_v11  ;;  %v610_v8 = vrot.slane %v7221_v31, 6  ;;  %v614_v3 = vrot.slane %v7223_v43, 6 }
 0x146   :  { %v587_v56 = vsel %vm557_vm0, %v8730_v29, %v8729_v59  ;;  %v612_v34 = vrot.slane %v7232_v63, 6  ;;  %v4999_v29 = vpack.c.bf16 %v601_v5, %v593_v18  ;;  %v8734_v11 = vrot.slane %v7094_v53, 6  ;;  %v6207_v18 = vld [vmem:[%s8690_s20 + $0x168] sm:$0xff]  }
 0x147   :  { %vm7272_vm10 = vcmp.ge.s32.totalorder %v8731_v14, 1  ;;  %4976 = vmatprep.mubr.msk.bf16.mxu0 %vm7247_vm9, %v4975_v50  ;;  %v8735_v55 = vrot.slane %v7029_v27, 6  ;;  %v6206_v50 = vld [vmem:[%s8690_s20 + $0x1a0] sm:$0xff]   ;;  %5434 = vmatpush3.bf16.msra.mxu0 %v6204_v44  ;;  %v8766_v22 = vrot.slane %v7060_v37, 7  ;;  %v856_v48 = vrot.slane %v7223_v43, 7 }
 0x148   :  { %v595_v14 = vsel %vm557_vm0, %v8729_v59, %v8734_v11  ;;  %v605_v59 = vsel %vm557_vm0, %v596_v17, %v604_v60  ;;  %5000 = vmatprep.mubr.msk.bf16.mxu1 %vm7247_vm9, %v4999_v29  ;;  %v609_v17 = vsel %vm557_vm0, %v600_v2, %v608_v41  ;;  %v611_v2 = vsel %vm557_vm0, %v602_v52, %v610_v8  ;;  %v6213_v8 = vld [vmem:[%s8690_s20 + $0x1f0] sm:$0xff]   ;;  %vm7426_vm12 = vmpackc.low %vm6464_vm4, %vm7272_vm10 }
 0x149   :  { %v591_v35 = vsel %vm557_vm0, %v8736_v36, %v8735_v55  ;;  %v8738_v1 = vmov %v8735_v55  ;;  %v4978_v5 = vpack.c.bf16 %v595_v14, %v587_v56  ;;  %v6209_v36 = vld [vmem:[%s8690_s20 + $0x1e8] sm:$0xff]   ;;  %v613_v55 = vsel %vm557_vm0, %v604_v60, %v612_v34  ;;  %5474 = vmatpush3.bf16.msra.mxu1 %v6206_v50  ;;  %5435 = vmatprep.subr.bf16.mxu0 %v6207_v18 }
 0x14a   :  { %v599_v7 = vsel %vm557_vm0, %v8738_v1, %v8737_v45  ;;  %v6208_v56 = vld [vmem:[%s8690_s20 + $0x128] sm:$0xff]   ;;  %v617_v60 = vsel %vm557_vm0, %v608_v41, %v616_v51  ;;  %v8742_v34 = vrot.slane %v7094_v53, 6  ;;  %v8743_v1 = vmov %v8737_v45  ;;  %5475 = vmatprep.subr.bf16.mxu1 %v6209_v36 }
 0x14b   :  { %v5002_v11 = vpack.c.bf16 %v599_v7, %v591_v35  ;;  %v8739_v35 = vmov 0  ;;  %v4981_v7 = vpack.c.bf16 %v613_v55, %v605_v59  ;;  %4979 = vmatmul.mubr.msk.bf16.gmra.mrb[24].mxu0 %vm7247_vm9, %v4978_v5  ;;  %v5005_v44 = vpack.c.bf16 %v617_v60, %v609_v17  ;;  %v6210_v41 = vld [vmem:[%s8690_s20 + $0x1a8] sm:$0xff]  }
 0x14c   :  { %v8740_v35 = vsel %vm7317_vm11, 4294967295, %v8739_v35  ;;  %v603_v29 = vsel %vm557_vm0, %v8742_v34, %v602_v52  ;;  %v607_v5 = vsel %vm557_vm0, %v8743_v1, %v606_v61  ;;  %v854_v59 = vrot.slane %v7232_v63, 7  ;;  %5436 = vmatpush3.bf16.msra.mxu0 %v6208_v56 }
 0x14d   :  { %8741 = vst [vmem:[#allocation17_spill] sm:$0xff] %v8740_v35  ;;  %5003 = vmatmul.mubr.msk.bf16.gmra.mrb[24].mxu1 %vm7247_vm9, %v5002_v11  ;;  %v4984_v14 = vpack.c.bf16 %v611_v2, %v603_v29  ;;  %v615_v11 = vsel %vm557_vm0, %v606_v61, %v614_v3  ;;  %4982 = vmatprep.mubr.msk.bf16.mxu0 %vm7317_vm11, %v4981_v7  ;;  %v8744_v50 = vrot.slane %v6875_v57, 7  ;;  %v8745_v18 = vrot.slane %v6824_v20, 7  ;;  %v6212_v7 = vld [vmem:[%s8690_s20 + $0x130] sm:$0xff]  }
 0x14e   :  { %v5008_v52 = vpack.c.bf16 %v615_v11, %v607_v5  ;;  %v8746_v17 = vrot.slane %v6877_v58, 7  ;;  %v8747_v61 = vrot.slane %v6826_v23, 7  ;;  %v858_v36 = vrot.slane %v7234_v54, 7  ;;  %5006 = vmatprep.mubr.msk.bf16.mxu1 %vm7317_vm11, %v5005_v44  ;;  %5437 = vmatprep.subr.bf16.mxu0 %v6211_v28 }
 0x14f   :  { %v807_v55 = vsel %vm799_vm1, %v8745_v18, %v8744_v50  ;;  %v8748_v29 = vrot.slane %v6969_v42, 7  ;;  %v8749_v2 = vmov %v8744_v50  ;;  %v8750_v56 = vrot.slane %v7009_v21, 7  ;;  %5476 = vmatpush3.bf16.msra.mxu1 %v6210_v41 }
 0x150   :  { %v811_v3 = vsel %vm799_vm1, %v8747_v61, %v8746_v17  ;;  %v5011_v60 = vpack.c.bf16 %v807_v55, %v6947_v25  ;;  %v8752_v11 = vrot.slane %v6975_v9, 7  ;;  %v8753_v25 = vmov %v8746_v17  ;;  %5477 = vmatprep.subr.bf16.mxu1 %v6213_v8  ;;  %5438 = vmatpush3.bf16.msra.mxu0 %v6212_v7 }
 0x151   :  { %v5035_v34 = vpack.c.bf16 %v811_v3, %v6965_v30  ;;  %v7372_v1 = vsel %vm799_vm1, %v8749_v2, %v8748_v29  ;;  %v8751_v44 = vmov %v8748_v29  ;;  %v8754_v50 = vrot.slane %v7011_v13, 7  ;;  %v6214_v3 = vld [vmem:[%s8690_s20 + $0x1b0] sm:$0xff]  }
 0x152   :  { %v7379_v5 = vsel %vm799_vm1, %v8751_v44, %v8750_v56  ;;  %v7386_v30 = vsel %vm799_vm1, %v8753_v25, %v8752_v11  ;;  %v8755_v18 = vmov %v8752_v11  ;;  %v8756_v55 = vrot.slane %v6916_v10, 7 }
 0x153   :  { %v7393_v28 = vsel %vm799_vm1, %v8755_v18, %v8754_v50  ;;  %v8757_v17 = vrot.slane %v6845_v39, 7  ;;  %v8758_v56 = vrot.slane %v6977_v6, 7  ;;  %v8760_v11 = vrot.slane %v6929_v16, 7  ;;  %v6215_v18 = vld [vmem:[%s8690_s20 + $0x178] sm:$0xff]   ;;  %4985 = vmatmul.mubr.msk.bf16.gmra.mrb[28].mxu0 %vm7317_vm11, %v4984_v14  ;;  %5478 = vmatpush3.bf16.msra.mxu1 %v6214_v3  ;;  %v6221_v3 = vld [vmem:[%s8690_s20 + $0x2c0] sm:$0xff]  }
 0x154   :  { %v8759_v44 = vmov %v8756_v55  ;;  %v8761_v41 = vrot.slane %v6847_v40, 7  ;;  %v8764_v40 = vrot.slane %v6979_v32, 7  ;;  %v8770_v2 = vrot.slane %v7062_v46, 7  ;;  %5012 = vmatprep.mubr.msk.bf16.mxu0 %vm7426_vm12, %v5011_v60  ;;  %5439 = vmatprep.subr.bf16.mxu0 %v6215_v18  ;;  %v6225_v18 = vld [vmem:[%s8690_s20 + $0x2c8] sm:$0xff]  }
 0x155   :  { %v7400_v61 = vsel %vm799_vm1, %v8757_v17, %v8756_v55  ;;  %v7414_v39 = vsel %vm799_vm1, %v8759_v44, %v8758_v56  ;;  %v8765_v17 = vmov %v8760_v11  ;;  %v8767_v56 = vrot.slane %v7009_v21, 7  ;;  %5009 = vmatmul.mubr.msk.bf16.gmra.mrb[28].mxu1 %vm7317_vm11, %v5008_v52 }
 0x156   :  { %v7421_v25 = vsel %vm799_vm1, %v8761_v41, %v8760_v11  ;;  %v7440_v8 = vsel %vm799_vm1, %v8765_v17, %v8764_v40  ;;  %v8768_v11 = vrot.slane %v7098_v12, 7  ;;  %v8769_v41 = vmov %v8766_v22  ;;  %v6216_v40 = vld [vmem:[%s8690_s20 + $0x138] sm:$0xff]   ;;  %5036 = vmatprep.mubr.msk.bf16.mxu1 %vm7426_vm12, %v5035_v34 }
 0x157   :  { %v7447_v44 = vsel %vm799_vm1, %v8767_v56, %v8766_v22  ;;  %v6217_v17 = vld [vmem:[%s8690_s20 + $0x1f8] sm:$0xff]   ;;  %v8773_v29 = vmov %v8770_v2  ;;  %v852_v51 = vrot.slane %v7221_v31, 7  ;;  %v8774_v56 = vrot.slane %v7027_v26, 7  ;;  %5440 = vmatpush3.bf16.msra.mxu0 %v6216_v40 }
 0x158   :  { %v7454_v55 = vsel %vm799_vm1, %v8769_v41, %v8768_v11  ;;  %v8771_v11 = vrot.slane %v7011_v13, 7  ;;  %v8772_v41 = vrot.slane %v7106_v49, 7  ;;  %v8777_v22 = vrot.slane %v7094_v53, 7  ;;  %5479 = vmatprep.subr.bf16.mxu1 %v6217_v17 }
 0x159   :  { %v8778_v14 = vmov %v8774_v56  ;;  %v8780_v35 = vrot.slane %v6979_v32, 7  ;;  %v8787_v34 = vand.u32 15, %v6822_v19  ;;  %v8793_v17 = vrot.slane %v7177_v38, 7 }
 0x15a   :  { %v7471_v7 = vsel %vm799_vm1, %v8771_v11, %v8770_v2  ;;  %v7478_v45 = vsel %vm799_vm1, %v8773_v29, %v8772_v41  ;;  %v6219_v2 = vld [vmem:[%s8690_s20 + $0x240] sm:$0xff]   ;;  %v8775_v29 = vrot.slane %v6977_v6, 7  ;;  %v7502_v52 = vsel %vm799_vm1, %v8778_v14, %v8777_v22  ;;  %v6218_v11 = vld [vmem:[%s8690_s20 + $0x1b8] sm:$0xff]  }
 0x15b   :  { %v8782_v14 = vrot.slane %v7096_v24, 7  ;;  %vm7547_vm13 = vcmp.ge.s32.totalorder %v8787_v34, 1  ;;  %5505 = vmatprep.subr.bf16.mxu0 %v6219_v2  ;;  %5480 = vmatpush3.bf16.msra.mxu1 %v6218_v11 }
 0x15c   :  { %v7495_v41 = vsel %vm799_vm1, %v8775_v29, %v8774_v56  ;;  %v8779_v29 = vrot.slane %v7029_v27, 7  ;;  %v8795_v56 = vmov %v8793_v17  ;;  %5545 = vmatprep.subr.bf16.mxu1 %v6221_v3  ;;  %vm7607_vm14 = vmpackc.low %vm6464_vm4, %vm7547_vm13  ;;  %v6223_v3 = vld [vmem:[%s8690_s20 + $0x248] sm:$0xff]  }
 0x15d   :  { %8776 = vst [vmem:[#allocation18_spill] sm:$0xff] %v7495_v41 }
 0x15e   :  { %v7517_v22 = vsel %vm799_vm1, %v8780_v35, %v8779_v29  ;;  %v8783_v4 = vmov %v8779_v29  ;;  %v8784_v35 = vrot.slane %v7184_v15, 7  ;;  %v8785_v29 = vrot.slane %v7098_v12, 7 }
 0x15f   :  { %8781 = vst [vmem:[#allocation19_spill] sm:$0xff] %v7517_v22  ;;  %v7524_v60 = vsel %vm799_vm1, %v8783_v4, %v8782_v14  ;;  %v8790_v22 = vrot.slane %v7202_v33, 7 }
 0x160   :  { %v7538_v41 = vsel %vm799_vm1, %v8785_v29, %v8784_v35  ;;  %v8786_v4 = vmov %v8784_v35  ;;  %v8791_v35 = vrot.slane %v7106_v49, 7 }
 0x161   :  { %v7543_v14 = vsel %vm799_vm1, %v8786_v4, %v854_v59  ;;  %v8792_v59 = vmov %v8790_v22  ;;  %v8794_v4 = vrot.slane %v7094_v53, 7 }
 0x162   :  { %v7558_v29 = vsel %vm799_vm1, %v8791_v35, %v8790_v22  ;;  %v7563_v40 = vsel %vm799_vm1, %v8792_v59, %v858_v36  ;;  %v7577_v22 = vsel %vm799_vm1, %v8795_v56, %v852_v51  ;;  %v8796_v35 = vrot.slane %v7179_v47, 7  ;;  %v6220_v59 = vld [vmem:[%s8690_s20 + $0x200] sm:$0xff]  }
 0x163   :  { %v5053_v19 = vpack.c.bf16 %v7563_v40, %v7558_v29  ;;  %v7572_v34 = vsel %vm799_vm1, %v8794_v4, %v8793_v17  ;;  %v8797_v36 = vrot.slane %v7096_v24, 7  ;;  %v7598_v56 = vpack.c.bf16 %v6875_v57, %v6824_v20  ;;  %v6244_v29 = vld [vmem:[%s8690_s20 + $0x230] sm:$0xff]  }
 0x164   :  { %v5032_v17 = vpack.c.bf16 %v7577_v22, %v7572_v34  ;;  %v8798_v4 = vmov %v8796_v35  ;;  %v7618_v57 = vpack.c.bf16 %v7009_v21, %v6969_v42  ;;  %v7636_v42 = vpack.c.bf16 %v6979_v32, %v6929_v16  ;;  %v8802_v32 = vld [vmem:[#allocation13_spill] sm:$0xff]  ;;  %v8803_v16 = vld [vmem:[#allocation10_spill] sm:$0xff]  ;;  %v6250_v34 = vld [vmem:[%s8690_s20 + $0x2b8] sm:$0xff]  }
 0x165   :  { %v7584_v2 = vsel %vm799_vm1, %v8797_v36, %v8796_v35  ;;  %v7594_v51 = vsel %vm799_vm1, %v8798_v4, %v856_v48  ;;  %v7602_v35 = vpack.c.bf16 %v6877_v58, %v6826_v23  ;;  %v6222_v48 = vld [vmem:[%s8690_s20 + $0x280] sm:$0xff]   ;;  %v7622_v23 = vpack.c.bf16 %v7011_v13, %v6975_v9  ;;  %v6241_v4 = vld [vmem:[%s8690_s20 + $0x2e8] sm:$0xff]   ;;  %v6246_v40 = vld [vmem:[%s8690_s20 + $0x2b0] sm:$0xff]  }
 0x166   :  { %v5056_v20 = vpack.c.bf16 %v7594_v51, %v7584_v2  ;;  %v7626_v58 = vpack.c.bf16 %v6977_v6, %v6916_v10  ;;  %v7640_v9 = vpack.c.bf16 %v7098_v12, %v7060_v37  ;;  %v7644_v6 = vpack.c.bf16 %v7106_v49, %v7062_v46  ;;  %v6226_v12 = vld [vmem:[%s8690_s20 + $0x288] sm:$0xff]   ;;  %v6238_v36 = vld [vmem:[%s8690_s20 + $0x2a0] sm:$0xff]   ;;  %v8824_v22 = vld [vmem:[#allocation11_spill] sm:$0xff] }
 0x167   :  { %v7648_v10 = vpack.c.bf16 %v7094_v53, %v7027_v26  ;;  %v8801_v21 = vpack.c.bf16 %v6893_v0, %v6883_v62  ;;  %v8804_v13 = vpack.c.bf16 %v8802_v32, %v8803_v16  ;;  %v7662_v49 = vpack.c.bf16 %v7096_v24, %v7029_v27  ;;  %v6224_v27 = vld [vmem:[%s8690_s20 + $0x208] sm:$0xff]   ;;  %v6227_v24 = vld [vmem:[%s8690_s20 + $0x250] sm:$0xff]   ;;  %v6249_v16 = vld [vmem:[%s8690_s20 + $0x2f8] sm:$0xff]  }
 0x168   :  { %v7666_v26 = vpack.c.bf16 %v7232_v63, %v7184_v15  ;;  %v7670_v62 = vpack.c.bf16 %v7234_v54, %v7202_v33  ;;  %v8805_v0 = vpack.c.bf16 %v7379_v5, %v7372_v1  ;;  %v7682_v53 = vpack.c.bf16 %v7221_v31, %v7177_v38  ;;  %v6229_v38 = vld [vmem:[%s8690_s20 + $0x2d0] sm:$0xff]   ;;  %v6231_v31 = vld [vmem:[%s8690_s20 + $0x258] sm:$0xff]   ;;  %v8825_v2 = vld [vmem:[#allocation12_spill] sm:$0xff] }
 0x169   :  { %5015 = vmatmul.mubr.msk.bf16.vlgmr.msra.gmra.mrb[32].mxu0 %vm7426_vm12, %v8801_v21  ;;  %5039 = vmatmul.mubr.msk.bf16.vlgmr.msra.gmra.mrb[32].mxu1 %vm7426_vm12, %v8804_v13  ;;  %v7686_v37 = vpack.c.bf16 %v7223_v43, %v7179_v47  ;;  %v8806_v46 = vpack.c.bf16 %v7393_v28, %v7386_v30  ;;  %v8807_v47 = vld [vmem:[#allocation8_spill] sm:$0xff]  ;;  %v6228_v54 = vld [vmem:[%s8690_s20 + $0x210] sm:$0xff]   ;;  %v6233_v43 = vld [vmem:[%s8690_s20 + $0x2d8] sm:$0xff]   ;;  %v8811_v1 = vpack.c.bf16 %v7414_v39, %v7400_v61 }
 0x16a   :  { %5506 = vmatpush3.bf16.msra.mxu0 %v6220_v59  ;;  %5018 = vmatprep.mubr.msk.bf16.mxu0 %vm7607_vm14, %v8805_v0  ;;  %v8808_v15 = vand.u32 15, %v8807_v47  ;;  %v6230_v63 = vld [vmem:[%s8690_s20 + $0x290] sm:$0xff]   ;;  %v8812_v5 = vpack.c.bf16 %v7440_v8, %v7421_v25  ;;  %v8813_v30 = vpack.c.bf16 %v7454_v55, %v7447_v44  ;;  %v6232_v28 = vld [vmem:[%s8690_s20 + $0x218] sm:$0xff]   ;;  %v8814_v61 = vpack.c.bf16 %v7478_v45, %v7471_v7  ;;  %v6235_v25 = vld [vmem:[%s8690_s20 + $0x260] sm:$0xff]  }
 0x16b   :  { %5042 = vmatprep.mubr.msk.bf16.mxu1 %vm7607_vm14, %v8806_v46  ;;  %5546 = vmatpush3.bf16.msra.mxu1 %v6222_v48  ;;  %v6234_v39 = vld [vmem:[%s8690_s20 + $0x298] sm:$0xff]   ;;  %v6237_v55 = vld [vmem:[%s8690_s20 + $0x2e0] sm:$0xff]   ;;  %v8815_v8 = vld [vmem:[#allocation9_spill] sm:$0xff]  ;;  %v8823_v32 = vpack.c.bf16 %v7543_v14, %v7538_v41 }
 0x16c   :  { %5507 = vmatprep.subr.bf16.mxu0 %v6223_v3  ;;  %5547 = vmatprep.subr.bf16.mxu1 %v6225_v18  ;;  %vm900_vm15 = vcmp.ge.s32.totalorder %v8808_v15, 1  ;;  %v8816_v45 = vand.u32 15, %v8815_v8  ;;  %v6236_v44 = vld [vmem:[%s8690_s20 + $0x220] sm:$0xff]   ;;  %v6239_v59 = vld [vmem:[%s8690_s20 + $0x268] sm:$0xff]   ;;  %v8819_v48 = vld [vmem:[#allocation18_spill] sm:$0xff] }
 0x16d   :  { %vm7708_vm2 = vmpackc.low %vm6464_vm4, %vm900_vm15  ;;  %v8820_v3 = vpack.c.bf16 %v7502_v52, %v8819_v48  ;;  %v8821_v18 = vld [vmem:[#allocation19_spill] sm:$0xff]  ;;  %v6240_v52 = vld [vmem:[%s8690_s20 + $0x228] sm:$0xff]  }
 0x16e   :  { %5508 = vmatpush3.bf16.msra.mxu0 %v6224_v27  ;;  %vm902_vm3 = vcmp.ge.s32.totalorder %v8816_v45, 1  ;;  %v8822_v21 = vpack.c.bf16 %v7524_v60, %v8821_v18  ;;  %v6242_v60 = vld [vmem:[%s8690_s20 + $0x2a8] sm:$0xff]   ;;  %v6243_v41 = vld [vmem:[%s8690_s20 + $0x270] sm:$0xff]   ;;  %v6248_v13 = vld [vmem:[%s8690_s20 + $0x238] sm:$0xff]  }
 0x16f   :  { %5548 = vmatpush3.bf16.msra.mxu1 %v6226_v12  ;;  %5509 = vmatprep.subr.bf16.mxu0 %v6227_v24  ;;  %vm7759_vm6 = vmpackc.low %vm6464_vm4, %vm902_vm3  ;;  %v6245_v14 = vld [vmem:[%s8690_s20 + $0x2f0] sm:$0xff]   ;;  %v6252_v51 = vld [vmem:[%s8639_s5] sm:$0xff]  }
 0x170   :  { %5549 = vmatprep.subr.bf16.mxu1 %v6229_v38  ;;  %v6254_v0 = vld [vmem:[%s8639_s5 + $0x48] sm:$0xff]   ;;  %v6257_v12 = vld [vmem:[%s8639_s5 + $0x50] sm:$0xff]   ;;  %v6260_v47 = vld [vmem:[%s8639_s5 + $0x58] sm:$0xff]  }
 0x171   :  { %5021 = vmatmul.mubr.msk.bf16.gmra.mrb[36].mxu0 %vm7607_vm14, %v8811_v1  ;;  %5045 = vmatmul.mubr.msk.bf16.gmra.mrb[36].mxu1 %vm7607_vm14, %v8812_v5  ;;  %v6255_v27 = vld [vmem:[%s8639_s5 + $0x8] sm:$0xff]   ;;  %v6258_v24 = vld [vmem:[%s8639_s5 + $0x10] sm:$0xff]   ;;  %v6261_v15 = vld [vmem:[%s8639_s5 + $0x18] sm:$0xff]  }
 0x172   :  { %5510 = vmatpush3.bf16.msra.mxu0 %v6228_v54  ;;  %5024 = vmatprep.mubr.msk.bf16.mxu0 %vm7708_vm2, %v8813_v30  ;;  %v6256_v46 = vld [vmem:[%s8639_s5 + $0x88] sm:$0xff]   ;;  %v6259_v38 = vld [vmem:[%s8639_s5 + $0x90] sm:$0xff]   ;;  %v6262_v54 = vld [vmem:[%s8639_s5 + $0x98] sm:$0xff]  }
 0x173   :  { %5048 = vmatprep.mubr.msk.bf16.mxu1 %vm7708_vm2, %v8814_v61  ;;  %5550 = vmatpush3.bf16.msra.mxu1 %v6230_v63  ;;  %v6263_v63 = vld [vmem:[%s8639_s5 + $0x60] sm:$0xff]   ;;  %v6266_v1 = vld [vmem:[%s8639_s5 + $0x68] sm:$0xff]   ;;  %v6270_v61 = vld [vmem:[%s8639_s5 + $0x30] sm:$0xff]  }
 0x174   :  { %5511 = vmatprep.subr.bf16.mxu0 %v6231_v31  ;;  %5551 = vmatprep.subr.bf16.mxu1 %v6233_v43  ;;  %v6264_v31 = vld [vmem:[%s8639_s5 + $0x20] sm:$0xff]   ;;  %v6267_v5 = vld [vmem:[%s8639_s5 + $0x28] sm:$0xff]   ;;  %v6274_v8 = vld [vmem:[%s8639_s5 + $0xb8] sm:$0xff]  }
 0x175   :  { %v6265_v43 = vld [vmem:[%s8639_s5 + $0xa0] sm:$0xff]   ;;  %v6268_v30 = vld [vmem:[%s8639_s5 + $0xa8] sm:$0xff]  }
 0x176   :  { %5512 = vmatpush3.bf16.msra.mxu0 %v6232_v28  ;;  %v6269_v28 = vld [vmem:[%s8639_s5 + $0x70] sm:$0xff]   ;;  %v6275_v45 = vld [vmem:[%s8641_s7 + $0x40] sm:$0xff]  }
 0x177   :  { %5552 = vmatpush3.bf16.msra.mxu1 %v6234_v39  ;;  %5513 = vmatprep.subr.bf16.mxu0 %v6235_v25  ;;  %v6271_v39 = vld [vmem:[%s8639_s5 + $0xb0] sm:$0xff]   ;;  %v6272_v25 = vld [vmem:[%s8639_s5 + $0x78] sm:$0xff]  }
 0x178   :  { %5553 = vmatprep.subr.bf16.mxu1 %v6237_v55  ;;  %v6273_v55 = vld [vmem:[%s8639_s5 + $0x38] sm:$0xff]  }
 0x179   :  { %5027 = vmatmul.mubr.msk.bf16.gmra.mrb[40].mxu0 %vm7708_vm2, %v8820_v3  ;;  %5051 = vmatmul.mubr.msk.bf16.gmra.mrb[40].mxu1 %vm7708_vm2, %v8822_v21 }
 0x17a   :  { %5514 = vmatpush3.bf16.msra.mxu0 %v6236_v44  ;;  %5030 = vmatprep.mubr.msk.bf16.mxu0 %vm7759_vm6, %v8823_v32  ;;  %v6277_v44 = vld [vmem:[%s8641_s7 + $0xc0] sm:$0xff]  }
 0x17b   :  { %5054 = vmatprep.mubr.msk.bf16.mxu1 %vm7759_vm6, %v5053_v19  ;;  %5554 = vmatpush3.bf16.msra.mxu1 %v6238_v36  ;;  %v6247_v19 = vld [vmem:[%s8690_s20 + $0x278] sm:$0xff]  }
 0x17c   :  { %5515 = vmatprep.subr.bf16.mxu0 %v6239_v59  ;;  %5555 = vmatprep.subr.bf16.mxu1 %v6241_v4  ;;  %v4865_v4 = vld [vmem:[%s8638_s4] ss:$0 sm:$0xff] }
 0x17e   :  { %5516 = vmatpush3.bf16.msra.mxu0 %v6240_v52 }
 0x17f   :  { %5556 = vmatpush3.bf16.msra.mxu1 %v6242_v60  ;;  %5517 = vmatprep.subr.bf16.mxu0 %v6243_v41 }
 0x180   :  { %5557 = vmatprep.subr.bf16.mxu1 %v6245_v14 }
 0x181   :  { %5033 = vmatmul.mubr.msk.bf16.gmra.mrb[44].mxu0 %vm7759_vm6, %v5032_v17  ;;  %5057 = vmatmul.mubr.msk.bf16.gmra.mrb[44].mxu1 %vm7759_vm6, %v5056_v20  ;;  %v6251_v17 = vld [vmem:[%s8639_s5 + $0x40] sm:$0xff]  }
 0x182   :  { %5518 = vmatpush3.bf16.msra.mxu0 %v6244_v29  ;;  %2051 = vmatprep.mubr.bf16.mxu0 %v7598_v56  ;;  %v6253_v20 = vld [vmem:[%s8639_s5 + $0x80] sm:$0xff]  }
 0x183   :  { %5558 = vmatpush3.bf16.msra.mxu1 %v6246_v40  ;;  %2116 = vmatprep.mubr.bf16.mxu1 %v7602_v35 }
 0x184   :  { %5519 = vmatprep.subr.bf16.mxu0 %v6247_v19  ;;  %5559 = vmatprep.subr.bf16.mxu1 %v6249_v16 }
 0x186   :  { %5520 = vmatpush3.bf16.msra.mxu0 %v6248_v13 }
 0x187   :  { %5560 = vmatpush3.bf16.msra.mxu1 %v6250_v34  ;;  %5585 = vmatprep.subr.bf16.mxu0 %v6251_v17 }
 0x188   :  { %5937 = vmatprep.subr.bf16.mxu1 %v6253_v20 }
 0x189   :  { %2052 = vmatmul.mubr.bf16.vlgmr.msra.gmra.mrb[48].mxu0 %v8824_v22 }
 0x18a   :  { %2117 = vmatmul.mubr.bf16.vlgmr.msra.gmra.mrb[48].mxu1 %v8825_v2  ;;  %2059 = vmatprep.mubr.bf16.mxu0 %v7618_v57 }
 0x18b   :  { %2124 = vmatprep.mubr.bf16.mxu1 %v7622_v23  ;;  %5586 = vmatpush3.bf16.msra.mxu0 %v6252_v51 }
 0x18c   :  { %5587 = vmatprep.subr.bf16.mxu0 %v6254_v0  ;;  %5938 = vmatpush3.bf16.msra.mxu1 %v6253_v20 }
 0x18d   :  { %5939 = vmatprep.subr.bf16.mxu1 %v6256_v46 }
 0x18f   :  { %5588 = vmatpush3.bf16.msra.mxu0 %v6255_v27 }
 0x190   :  { %5589 = vmatprep.subr.bf16.mxu0 %v6257_v12  ;;  %5940 = vmatpush3.bf16.msra.mxu1 %v6256_v46 }
 0x191   :  { %2060 = vmatmul.mubr.bf16.gmra.mrb[52].mxu0 %v7626_v58  ;;  %5941 = vmatprep.subr.bf16.mxu1 %v6259_v38 }
 0x192   :  { %2125 = vmatmul.mubr.bf16.gmra.mrb[52].mxu1 %v7636_v42  ;;  %2067 = vmatprep.mubr.bf16.mxu0 %v7640_v9 }
 0x193   :  { %2132 = vmatprep.mubr.bf16.mxu1 %v7644_v6  ;;  %5590 = vmatpush3.bf16.msra.mxu0 %v6258_v24 }
 0x194   :  { %5591 = vmatprep.subr.bf16.mxu0 %v6260_v47  ;;  %5942 = vmatpush3.bf16.msra.mxu1 %v6259_v38 }
 0x195   :  { %5943 = vmatprep.subr.bf16.mxu1 %v6262_v54 }
 0x197   :  { %5592 = vmatpush3.bf16.msra.mxu0 %v6261_v15 }
 0x198   :  { %5593 = vmatprep.subr.bf16.mxu0 %v6263_v63  ;;  %5944 = vmatpush3.bf16.msra.mxu1 %v6262_v54 }
 0x199   :  { %2068 = vmatmul.mubr.bf16.gmra.mrb[56].mxu0 %v7648_v10  ;;  %5945 = vmatprep.subr.bf16.mxu1 %v6265_v43 }
 0x19a   :  { %2133 = vmatmul.mubr.bf16.gmra.mrb[56].mxu1 %v7662_v49  ;;  %2075 = vmatprep.mubr.bf16.mxu0 %v7666_v26 }
 0x19b   :  { %2140 = vmatprep.mubr.bf16.mxu1 %v7670_v62  ;;  %5594 = vmatpush3.bf16.msra.mxu0 %v6264_v31 }
 0x19c   :  { %5595 = vmatprep.subr.bf16.mxu0 %v6266_v1  ;;  %5946 = vmatpush3.bf16.msra.mxu1 %v6265_v43 }
 0x19d   :  { %5947 = vmatprep.subr.bf16.mxu1 %v6268_v30 }
 0x19f   :  { %5596 = vmatpush3.bf16.msra.mxu0 %v6267_v5 }
 0x1a0   :  { %5597 = vmatprep.subr.bf16.mxu0 %v6269_v28  ;;  %5948 = vmatpush3.bf16.msra.mxu1 %v6268_v30 }
 0x1a1   :  { %2076 = vmatmul.mubr.bf16.gmra.mrb[60].mxu0 %v7682_v53  ;;  %5949 = vmatprep.subr.bf16.mxu1 %v6271_v39 }
 0x1a2   :  { %2141 = vmatmul.mubr.bf16.gmra.mrb[60].mxu1 %v7686_v37 }
 0x1a3   :  { %5598 = vmatpush3.bf16.msra.mxu0 %v6270_v61 }
 0x1a4   :  { %5599 = vmatprep.subr.bf16.mxu0 %v6272_v25  ;;  %5950 = vmatpush3.bf16.msra.mxu1 %v6271_v39 }
 0x1a5   :  { %5951 = vmatprep.subr.bf16.mxu1 %v6274_v8 }
 0x1a7   :  { %5600 = vmatpush3.bf16.msra.mxu0 %v6273_v55 }
 0x1a8   :  { %5637 = vmatprep.subr.bf16.mxu0 %v6275_v45  ;;  %5952 = vmatpush3.bf16.msra.mxu1 %v6274_v8 }
 0x1a9   :  { %5677 = vmatprep.subr.bf16.mxu1 %v6277_v44 }
 0x209   :  { %v5361_v36 = vpop.f32.mrb[16].mxu0  ;;  %v5401_v59 = vpop.f32.mrb[16].mxu1 }
 0x20a   :  { %v5362_v48 = vpop.f32.mrb[17].mxu0  ;;  %v5402_v3 = vpop.f32.mrb[17].mxu1 }
 0x20b   :  { %v5363_v18 = vadd.f32 %v5362_v48, %v5361_v36  ;;  %v5403_v21 = vadd.f32 %v5402_v3, %v5401_v59  ;;  %v5364_v32 = vpop.f32.mrb[18].mxu0  ;;  %v5404_v52 = vpop.f32.mrb[18].mxu1 }
 0x20c   :  { %v5365_v60 = vpop.f32.mrb[19].mxu0  ;;  %v5405_v41 = vpop.f32.mrb[19].mxu1 }
 0x20d   :  { %v1794_v14 = vadd.f32 %v5363_v18, %v4865_v4  ;;  %v5366_v29 = vadd.f32 %v5365_v60, %v5364_v32  ;;  %v5406_v40 = vadd.f32 %v5405_v41, %v5404_v52 }
 0x20f   :  { %v1859_v19 = vadd.f32 %v5403_v21, %v1794_v14  ;;  %v1797_v16 = vadd.f32 %v5366_v29, %v4865_v4 }
 0x211   :  { %v7929_v13 = vadd.f32 %v5406_v40, %v1797_v16  ;;  %v5367_v34 = vpop.f32.mrb[20].mxu0 }
 0x212   :  { %v5368_v51 = vpop.f32.mrb[21].mxu0 }
 0x213   :  { %v5407_v17 = vpop.f32.mrb[20].mxu1  ;;  %v5369_v20 = vadd.f32 %v5368_v51, %v5367_v34  ;;  %v5370_v27 = vpop.f32.mrb[22].mxu0 }
 0x214   :  { %v5408_v0 = vpop.f32.mrb[21].mxu1  ;;  %v5371_v24 = vpop.f32.mrb[23].mxu0 }
 0x215   :  { %v5409_v46 = vadd.f32 %v5408_v0, %v5407_v17  ;;  %v5410_v12 = vpop.f32.mrb[22].mxu1  ;;  %v1802_v38 = vadd.f32 %v5369_v20, %v4865_v4  ;;  %v5372_v47 = vadd.f32 %v5371_v24, %v5370_v27 }
 0x216   :  { %v5411_v15 = vpop.f32.mrb[23].mxu1 }
 0x217   :  { %v5412_v54 = vadd.f32 %v5411_v15, %v5410_v12  ;;  %v1867_v63 = vadd.f32 %v5409_v46, %v1802_v38  ;;  %v1805_v31 = vadd.f32 %v5372_v47, %v4865_v4 }
 0x219   :  { %v7931_v43 = vadd.f32 %v5412_v54, %v1805_v31 }
 0x21e   :  { %v5373_v1 = vpop.f32.mrb[24].mxu0 }
 0x21f   :  { %v5374_v30 = vpop.f32.mrb[25].mxu0 }
 0x220   :  { %v5413_v5 = vpop.f32.mrb[24].mxu1  ;;  %v5375_v61 = vadd.f32 %v5374_v30, %v5373_v1  ;;  %v5376_v25 = vpop.f32.mrb[26].mxu0 }
 0x221   :  { %v5414_v28 = vpop.f32.mrb[25].mxu1  ;;  %v5377_v8 = vpop.f32.mrb[27].mxu0 }
 0x222   :  { %v5415_v39 = vadd.f32 %v5414_v28, %v5413_v5  ;;  %v5416_v55 = vpop.f32.mrb[26].mxu1  ;;  %v1810_v44 = vadd.f32 %v5375_v61, %v4865_v4  ;;  %v5378_v36 = vadd.f32 %v5377_v8, %v5376_v25 }
 0x223   :  { %v5417_v45 = vpop.f32.mrb[27].mxu1 }
 0x224   :  { %v5418_v59 = vadd.f32 %v5417_v45, %v5416_v55  ;;  %v1875_v48 = vadd.f32 %v5415_v39, %v1810_v44  ;;  %v1813_v3 = vadd.f32 %v5378_v36, %v4865_v4 }
 0x226   :  { %v7933_v18 = vadd.f32 %v5418_v59, %v1813_v3  ;;  %v5379_v21 = vpop.f32.mrb[28].mxu0 }
 0x227   :  { %v5380_v52 = vpop.f32.mrb[29].mxu0 }
 0x228   :  { %v5419_v32 = vpop.f32.mrb[28].mxu1  ;;  %v5381_v41 = vadd.f32 %v5380_v52, %v5379_v21  ;;  %v5382_v29 = vpop.f32.mrb[30].mxu0 }
 0x229   :  { %v5420_v60 = vpop.f32.mrb[29].mxu1  ;;  %v5383_v16 = vpop.f32.mrb[31].mxu0 }
 0x22a   :  { %v5421_v14 = vadd.f32 %v5420_v60, %v5419_v32  ;;  %v5422_v40 = vpop.f32.mrb[30].mxu1  ;;  %v1818_v17 = vadd.f32 %v5381_v41, %v4865_v4  ;;  %v5384_v51 = vadd.f32 %v5383_v16, %v5382_v29 }
 0x22b   :  { %v5423_v34 = vpop.f32.mrb[31].mxu1 }
 0x22c   :  { %v5424_v20 = vadd.f32 %v5423_v34, %v5422_v40  ;;  %v1883_v0 = vadd.f32 %v5421_v14, %v1818_v17  ;;  %v1821_v27 = vadd.f32 %v5384_v51, %v4865_v4 }
 0x22e   :  { %v7935_v46 = vadd.f32 %v5424_v20, %v1821_v27 }
 0x23c   :  { %v5441_v12 = vpop.f32.mrb[32].mxu0  ;;  %v5481_v24 = vpop.f32.mrb[32].mxu1 }
 0x23d   :  { %v5442_v38 = vpop.f32.mrb[33].mxu0  ;;  %v5482_v47 = vpop.f32.mrb[33].mxu1 }
 0x23e   :  { %v5443_v15 = vadd.f32 %v5442_v38, %v5441_v12  ;;  %v5483_v54 = vadd.f32 %v5482_v47, %v5481_v24  ;;  %v5444_v31 = vpop.f32.mrb[34].mxu0  ;;  %v5484_v1 = vpop.f32.mrb[34].mxu1 }
 0x23f   :  { %v5445_v5 = vpop.f32.mrb[35].mxu0  ;;  %v5485_v30 = vpop.f32.mrb[35].mxu1 }
 0x240   :  { %v1924_v28 = vadd.f32 %v5443_v15, %v1859_v19  ;;  %v5446_v61 = vadd.f32 %v5445_v5, %v5444_v31  ;;  %v5486_v39 = vadd.f32 %v5485_v30, %v5484_v1 }
 0x242   :  { %v1989_v25 = vadd.f32 %v5483_v54, %v1924_v28  ;;  %v1927_v55 = vadd.f32 %v5446_v61, %v7929_v13 }
 0x244   :  { %v7938_v8 = vadd.f32 %v5486_v39, %v1927_v55  ;;  %v5447_v4 = vpop.f32.mrb[36].mxu0  ;;  %v5487_v45 = vpop.f32.mrb[36].mxu1 }
 0x245   :  { %v5448_v44 = vpop.f32.mrb[37].mxu0  ;;  %v5488_v36 = vpop.f32.mrb[37].mxu1 }
 0x246   :  { %v5449_v59 = vadd.f32 %v5448_v44, %v5447_v4  ;;  %v5489_v3 = vadd.f32 %v5488_v36, %v5487_v45  ;;  %v5450_v21 = vpop.f32.mrb[38].mxu0  ;;  %v5490_v32 = vpop.f32.mrb[38].mxu1 }
 0x247   :  { %v5451_v52 = vpop.f32.mrb[39].mxu0  ;;  %v5491_v60 = vpop.f32.mrb[39].mxu1 }
 0x248   :  { %v1932_v41 = vadd.f32 %v5449_v59, %v1867_v63  ;;  %v5452_v14 = vadd.f32 %v5451_v52, %v5450_v21  ;;  %v5492_v19 = vadd.f32 %v5491_v60, %v5490_v32 }
 0x24a   :  { %v7940_v29 = vadd.f32 %v5489_v3, %v1932_v41  ;;  %v1935_v40 = vadd.f32 %v5452_v14, %v7931_v43 }
 0x24c   :  { %v7943_v13 = vadd.f32 %v5492_v19, %v1935_v40  ;;  %v5453_v16 = vpop.f32.mrb[40].mxu0  ;;  %v5493_v34 = vpop.f32.mrb[40].mxu1 }
 0x24d   :  { %v5454_v17 = vpop.f32.mrb[41].mxu0  ;;  %v5494_v51 = vpop.f32.mrb[41].mxu1 }
 0x24e   :  { %v5455_v20 = vadd.f32 %v5454_v17, %v5453_v16  ;;  %v5495_v27 = vadd.f32 %v5494_v51, %v5493_v34  ;;  %v5456_v12 = vpop.f32.mrb[42].mxu0  ;;  %v5496_v24 = vpop.f32.mrb[42].mxu1 }
 0x24f   :  { %v5457_v38 = vpop.f32.mrb[43].mxu0  ;;  %v5497_v47 = vpop.f32.mrb[43].mxu1 }
 0x250   :  { %v1940_v15 = vadd.f32 %v5455_v20, %v1875_v48  ;;  %v5458_v63 = vadd.f32 %v5457_v38, %v5456_v12  ;;  %v5498_v54 = vadd.f32 %v5497_v47, %v5496_v24 }
 0x252   :  { %v7945_v31 = vadd.f32 %v5495_v27, %v1940_v15  ;;  %v1943_v1 = vadd.f32 %v5458_v63, %v7933_v18 }
 0x254   :  { %v7948_v43 = vadd.f32 %v5498_v54, %v1943_v1  ;;  %v5459_v5 = vpop.f32.mrb[44].mxu0  ;;  %v5499_v30 = vpop.f32.mrb[44].mxu1 }
 0x255   :  { %v5460_v28 = vpop.f32.mrb[45].mxu0  ;;  %v5500_v61 = vpop.f32.mrb[45].mxu1 }
 0x256   :  { %v5461_v39 = vadd.f32 %v5460_v28, %v5459_v5  ;;  %v5501_v55 = vadd.f32 %v5500_v61, %v5499_v30  ;;  %v5462_v4 = vpop.f32.mrb[46].mxu0  ;;  %v5502_v45 = vpop.f32.mrb[46].mxu1 }
 0x257   :  { %v5463_v44 = vpop.f32.mrb[47].mxu0  ;;  %v5503_v36 = vpop.f32.mrb[47].mxu1 }
 0x258   :  { %v1948_v59 = vadd.f32 %v5461_v39, %v1883_v0  ;;  %v5464_v48 = vadd.f32 %v5463_v44, %v5462_v4  ;;  %v5504_v3 = vadd.f32 %v5503_v36, %v5502_v45 }
 0x25a   :  { %v7950_v21 = vadd.f32 %v5501_v55, %v1948_v59  ;;  %v1951_v32 = vadd.f32 %v5464_v48, %v7935_v46 }
 0x25c   :  { %v7953_v18 = vadd.f32 %v5504_v3, %v1951_v32  ;;  %v5521_v52 = vpop.f32.mrb[48].mxu0 }
 0x25d   :  { %v5561_v60 = vpop.f32.mrb[48].mxu1  ;;  %v5522_v41 = vpop.f32.mrb[49].mxu0 }
 0x25e   :  { %v5523_v14 = vadd.f32 %v5522_v41, %v5521_v52  ;;  %v5562_v19 = vpop.f32.mrb[49].mxu1  ;;  %v5524_v40 = vpop.f32.mrb[50].mxu0 }
 0x25f   :  { %v5563_v16 = vadd.f32 %v5562_v19, %v5561_v60  ;;  %v5564_v34 = vpop.f32.mrb[50].mxu1  ;;  %v5525_v17 = vpop.f32.mrb[51].mxu0 }
 0x260   :  { %v2054_v51 = vadd.f32 %v5523_v14, %v1989_v25  ;;  %v5526_v20 = vadd.f32 %v5525_v17, %v5524_v40  ;;  %v5565_v0 = vpop.f32.mrb[51].mxu1  ;;  %v6278_v17 = vld [vmem:[%s8641_s7 + $0x48] sm:$0xff]  }
 0x261   :  { %v5566_v27 = vadd.f32 %v5565_v0, %v5564_v34 }
 0x262   :  { %v2119_v12 = vadd.f32 %v5563_v16, %v2054_v51  ;;  %v2057_v24 = vadd.f32 %v5526_v20, %v7938_v8 }
 0x264   :  { %v2149_v38 = vmax.f32 %v2119_v12, 0.0  ;;  %v2122_v46 = vadd.f32 %v5566_v27, %v2057_v24  ;;  %v5527_v47 = vpop.f32.mrb[52].mxu0 }
 0x265   :  { %v5567_v15 = vpop.f32.mrb[52].mxu1  ;;  %v5528_v63 = vpop.f32.mrb[53].mxu0 }
 0x266   :  { %v2165_v54 = vrot.slane %v2149_v38, 6  ;;  %v2197_v1 = vrot.slane %v2149_v38, 7  ;;  %v2150_v5 = vmax.f32 %v2122_v46, 0.0  ;;  %v5529_v30 = vadd.f32 %v5528_v63, %v5527_v47  ;;  %v5568_v28 = vpop.f32.mrb[53].mxu1  ;;  %v5530_v61 = vpop.f32.mrb[54].mxu0 }
 0x267   :  { %v5569_v39 = vadd.f32 %v5568_v28, %v5567_v15  ;;  %v5570_v55 = vpop.f32.mrb[54].mxu1  ;;  %v5531_v25 = vpop.f32.mrb[55].mxu0 }
 0x268   :  { %v2166_v4 = vrot.slane %v2150_v5, 6  ;;  %v2198_v45 = vrot.slane %v2150_v5, 7  ;;  %v2062_v44 = vadd.f32 %v5529_v30, %v7940_v29  ;;  %v5571_v36 = vpop.f32.mrb[55].mxu1  ;;  %v2188_v8 = vsel %vm557_vm0, 0.0, %v2165_v54  ;;  %v6276_v29 = vld [vmem:[%s8641_s7] sm:$0xff]  }
 0x269   :  { %v5532_v59 = vadd.f32 %v5531_v25, %v5530_v61  ;;  %v5572_v48 = vadd.f32 %v5571_v36, %v5570_v55  ;;  %v2231_v3 = vpack.c.bf16 %v2150_v5, %v2149_v38  ;;  %v2220_v41 = vsel %vm799_vm1, 0.0, %v2197_v1  ;;  %v6279_v61 = vld [vmem:[%s8641_s7 + $0x80] sm:$0xff]   ;;  %v6282_v25 = vld [vmem:[%s8641_s7 + $0x50] sm:$0xff]  }
 0x26a   :  { %v2167_v32 = vsel %vm557_vm0, %v2165_v54, %v2166_v4  ;;  %v2127_v52 = vadd.f32 %v5569_v39, %v2062_v44  ;;  %v2199_v60 = vsel %vm799_vm1, %v2197_v1, %v2198_v45  ;;  %v6280_v1 = vld [vmem:[%s8641_s7 + $0x8] sm:$0xff]  }
 0x26b   :  { %v5087_v14 = vpack.c.bf16 %v2167_v32, %v2188_v8  ;;  %v2065_v19 = vadd.f32 %v5532_v59, %v7943_v13  ;;  %5953 = vmatprep.mubr.bf16.mxu1 %v2231_v3  ;;  %v5084_v40 = vpack.c.bf16 %v2199_v60, %v2220_v41  ;;  %v6281_v59 = vld [vmem:[%s8641_s7 + $0xc8] sm:$0xff]  }
 0x26c   :  { %v2151_v16 = vmax.f32 %v2127_v52, 0.0  ;;  %v5533_v34 = vpop.f32.mrb[56].mxu0 }
 0x26d   :  { %v2130_v51 = vadd.f32 %v5572_v48, %v2065_v19  ;;  %v5573_v20 = vpop.f32.mrb[56].mxu1  ;;  %v5534_v0 = vpop.f32.mrb[57].mxu0  ;;  %5085 = vmatprep.mubr.msk.bf16.mxu0 %vm7426_vm12, %v5084_v40  ;;  %v6283_v19 = vld [vmem:[%s8641_s7 + $0x88] sm:$0xff]  }
 0x26e   :  { %v2168_v27 = vrot.slane %v2151_v16, 6  ;;  %v2200_v13 = vrot.slane %v2151_v16, 7  ;;  %v5535_v12 = vadd.f32 %v5534_v0, %v5533_v34  ;;  %v5574_v24 = vpop.f32.mrb[57].mxu1  ;;  %v5536_v38 = vpop.f32.mrb[58].mxu0  ;;  %5088 = vmatmul.mubr.msk.bf16.vlgmr.msra.gmra.mrb[64].mxu0 %vm6997_vm5, %v5087_v14  ;;  %v6286_v34 = vld [vmem:[%s8641_s7 + $0x58] sm:$0xff]  }
 0x26f   :  { %v7972_v47 = vmax.f32 %v2130_v51, 0.0  ;;  %v5575_v15 = vadd.f32 %v5574_v24, %v5573_v20  ;;  %v5576_v63 = vpop.f32.mrb[58].mxu1  ;;  %v5537_v54 = vpop.f32.mrb[59].mxu0  ;;  %5638 = vmatpush3.bf16.msra.mxu0 %v6276_v29 }
 0x270   :  { %v2070_v5 = vadd.f32 %v5535_v12, %v7945_v31  ;;  %v5538_v30 = vadd.f32 %v5537_v54, %v5536_v38  ;;  %v5577_v28 = vpop.f32.mrb[59].mxu1  ;;  %5639 = vmatprep.subr.bf16.mxu0 %v6278_v17  ;;  %v2201_v39 = vsel %vm799_vm1, %v2198_v45, %v2200_v13  ;;  %v2169_v55 = vsel %vm557_vm0, %v2166_v4, %v2168_v27 }
 0x271   :  { %v2170_v44 = vrot.slane %v7972_v47, 6  ;;  %v2202_v36 = vrot.slane %v7972_v47, 7  ;;  %v2234_v31 = vpack.c.bf16 %v7972_v47, %v2151_v16  ;;  %v5578_v8 = vadd.f32 %v5577_v28, %v5576_v63  ;;  %v6285_v16 = vld [vmem:[%s8641_s7 + $0xd0] sm:$0xff]   ;;  %v6288_v28 = vld [vmem:[%s8641_s7 + $0x18] sm:$0xff]  }
 0x272   :  { %v2135_v48 = vadd.f32 %v5575_v15, %v2070_v5  ;;  %v2073_v45 = vadd.f32 %v5538_v30, %v7948_v43  ;;  %v6284_v43 = vld [vmem:[%s8641_s7 + $0x10] sm:$0xff]  }
 0x273   :  { %5954 = vmatmul.mubr.bf16.vlgmr.msra.gmra.mrb[64].mxu1 %v2234_v31  ;;  %5640 = vmatpush3.bf16.msra.mxu0 %v6280_v1  ;;  %v2203_v4 = vsel %vm799_vm1, %v2200_v13, %v2202_v36  ;;  %v2171_v3 = vsel %vm557_vm0, %v2168_v27, %v2170_v44  ;;  %v6287_v30 = vld [vmem:[%s8641_s7 + $0x90] sm:$0xff]  }
 0x274   :  { %v2153_v32 = vmax.f32 %v2135_v48, 0.0  ;;  %v2138_v52 = vadd.f32 %v5578_v8, %v2073_v45  ;;  %5678 = vmatpush3.bf16.msra.mxu1 %v6279_v61  ;;  %v5539_v60 = vpop.f32.mrb[60].mxu0  ;;  %v5090_v41 = vpack.c.bf16 %v2203_v4, %v2201_v39  ;;  %v5093_v14 = vpack.c.bf16 %v2171_v3, %v2169_v55  ;;  %5641 = vmatprep.subr.bf16.mxu0 %v6282_v25  ;;  %v6290_v48 = vld [vmem:[%s8641_s7 + $0x60] sm:$0xff]  }
 0x275   :  { %v5579_v40 = vpop.f32.mrb[60].mxu1  ;;  %v5540_v29 = vpop.f32.mrb[61].mxu0  ;;  %5679 = vmatprep.subr.bf16.mxu1 %v6281_v59 }
 0x276   :  { %v2172_v17 = vrot.slane %v2153_v32, 6  ;;  %v2204_v51 = vrot.slane %v2153_v32, 7  ;;  %v2154_v20 = vmax.f32 %v2138_v52, 0.0  ;;  %v5541_v0 = vadd.f32 %v5540_v29, %v5539_v60  ;;  %v5580_v27 = vpop.f32.mrb[61].mxu1  ;;  %5091 = vmatprep.mubr.msk.bf16.mxu0 %vm7607_vm14, %v5090_v41  ;;  %v5542_v13 = vpop.f32.mrb[62].mxu0  ;;  %v6293_v52 = vld [vmem:[%s8641_s7 + $0xe0] sm:$0xff]  }
 0x277   :  { %v5581_v12 = vadd.f32 %v5580_v27, %v5579_v40  ;;  %v5582_v24 = vpop.f32.mrb[62].mxu1  ;;  %5094 = vmatmul.mubr.msk.bf16.gmra.mrb[68].mxu0 %vm7111_vm7, %v5093_v14  ;;  %v5543_v47 = vpop.f32.mrb[63].mxu0  ;;  %v6294_v60 = vld [vmem:[%s8641_s7 + $0x68] sm:$0xff]  }
 0x278   :  { %v2174_v15 = vrot.slane %v2154_v20, 6  ;;  %v2206_v63 = vrot.slane %v2154_v20, 7  ;;  %v2078_v54 = vadd.f32 %v5541_v0, %v7950_v21  ;;  %5680 = vmatpush3.bf16.msra.mxu1 %v6283_v19  ;;  %v5544_v1 = vadd.f32 %v5543_v47, %v5542_v13  ;;  %v5583_v5 = vpop.f32.mrb[63].mxu1  ;;  %5642 = vmatpush3.bf16.msra.mxu0 %v6284_v43  ;;  %v6289_v21 = vld [vmem:[%s8641_s7 + $0xd8] sm:$0xff]  }
 0x279   :  { %v5584_v61 = vadd.f32 %v5583_v5, %v5582_v24  ;;  %5681 = vmatprep.subr.bf16.mxu1 %v6285_v16  ;;  %v2237_v39 = vpack.c.bf16 %v2154_v20, %v2153_v32  ;;  %5643 = vmatprep.subr.bf16.mxu0 %v6286_v34  ;;  %v2205_v55 = vsel %vm799_vm1, %v2202_v36, %v2204_v51  ;;  %v6295_v34 = vld [vmem:[%s8641_s7 + $0xa0] sm:$0xff]   ;;  %v6297_v20 = vld [vmem:[%s8641_s7 + $0xe8] sm:$0xff]   ;;  %v6303_v5 = vld [vmem:[%s8641_s7 + $0xb0] sm:$0xff]  }
 0x27a   :  { %v2143_v25 = vadd.f32 %v5581_v12, %v2078_v54  ;;  %v2081_v31 = vadd.f32 %v5544_v1, %v7953_v18  ;;  %v2207_v8 = vsel %vm799_vm1, %v2204_v51, %v2206_v63  ;;  %v2173_v59 = vsel %vm557_vm0, %v2170_v44, %v2172_v17  ;;  %v6291_v18 = vld [vmem:[%s8641_s7 + $0x98] sm:$0xff]   ;;  %v6292_v44 = vld [vmem:[%s8641_s7 + $0x20] sm:$0xff]   ;;  %v6298_v12 = vld [vmem:[%s8641_s7 + $0x70] sm:$0xff]  }
 0x27b   :  { %5957 = vmatprep.mubr.bf16.mxu1 %v2237_v39  ;;  %v5096_v45 = vpack.c.bf16 %v2207_v8, %v2205_v55  ;;  %v2175_v4 = vsel %vm557_vm0, %v2172_v17, %v2174_v15  ;;  %v6296_v17 = vld [vmem:[%s8641_s7 + $0x28] sm:$0xff]   ;;  %v6302_v54 = vld [vmem:[%s8641_s7 + $0x78] sm:$0xff]   ;;  %v6322_v39 = vld [vmem:[%s8643_s9 + $0xa0] sm:$0xff]  }
 0x27c   :  { %v2155_v36 = vmax.f32 %v2143_v25, 0.0  ;;  %v2146_v3 = vadd.f32 %v5584_v61, %v2081_v31  ;;  %5682 = vmatpush3.bf16.msra.mxu1 %v6287_v30  ;;  %5644 = vmatpush3.bf16.msra.mxu0 %v6288_v28  ;;  %v5099_v32 = vpack.c.bf16 %v2175_v4, %v2173_v59  ;;  %v6304_v30 = vld [vmem:[%s8641_s7 + $0x38] sm:$0xff]   ;;  %v6323_v55 = vld [vmem:[%s8643_s9 + $0x28] sm:$0xff]   ;;  %v6326_v31 = vld [vmem:[%s8643_s9 + $0x30] sm:$0xff]  }
 0x27d   :  { %5097 = vmatprep.mubr.msk.bf16.mxu0 %vm7708_vm2, %v5096_v45  ;;  %5683 = vmatprep.subr.bf16.mxu1 %v6289_v21  ;;  %v6305_v28 = vld [vmem:[%s8641_s7 + $0xf8] sm:$0xff]   ;;  %v6324_v21 = vld [vmem:[%s8643_s9 + $0x70] sm:$0xff]   ;;  %v6325_v25 = vld [vmem:[%s8643_s9 + $0xa8] sm:$0xff]  }
 0x27e   :  { %v2176_v41 = vrot.slane %v2155_v36, 6  ;;  %v2208_v14 = vrot.slane %v2155_v36, 7  ;;  %v2156_v19 = vmax.f32 %v2146_v3, 0.0  ;;  %5645 = vmatprep.subr.bf16.mxu0 %v6290_v48  ;;  %v6306_v61 = vld [vmem:[%s8641_s7 + $0xb8] sm:$0xff]   ;;  %v6328_v59 = vld [vmem:[%s8643_s9 + $0xb0] sm:$0xff]   ;;  %v6331_v4 = vld [vmem:[%s8645_s11 + $0x40] sm:$0xff]  }
 0x27f   :  { %5100 = vmatmul.mubr.msk.bf16.gmra.mrb[72].mxu0 %vm7247_vm9, %v5099_v32  ;;  %v6327_v8 = vld [vmem:[%s8643_s9 + $0x78] sm:$0xff]   ;;  %v5287_v1 = vld [vmem:[%s8650_s16] ss:$0 sm:$0xff] }
 0x280   :  { %v2178_v40 = vrot.slane %v2156_v19, 6  ;;  %v2210_v29 = vrot.slane %v2156_v19, 7  ;;  %5684 = vmatpush3.bf16.msra.mxu1 %v6291_v18  ;;  %5646 = vmatpush3.bf16.msra.mxu0 %v6292_v44  ;;  %v2240_v16 = vpack.c.bf16 %v2156_v19, %v2155_v36  ;;  %v2209_v51 = vsel %vm799_vm1, %v2206_v63, %v2208_v14  ;;  %v6299_v63 = vld [vmem:[%s8641_s7 + $0xa8] sm:$0xff]   ;;  %v6329_v48 = vld [vmem:[%s8643_s9 + $0x38] sm:$0xff]   ;;  %v8183_v36 = vld [vmem:[%s8645_s11 + $0x80] sm:$0xff]  }
 0x281   :  { %5685 = vmatprep.subr.bf16.mxu1 %v6293_v52  ;;  %5647 = vmatprep.subr.bf16.mxu0 %v6294_v60  ;;  %v2177_v0 = vsel %vm557_vm0, %v2174_v15, %v2176_v41  ;;  %v6300_v15 = vld [vmem:[%s8641_s7 + $0x30] sm:$0xff]   ;;  %v6330_v45 = vld [vmem:[%s8643_s9 + $0xb8] sm:$0xff]   ;;  %v5058_v18 = vld [vmem:[%s8640_s6] ss:$0 sm:$0xff] }
 0x282   :  { %5958 = vmatmul.mubr.bf16.gmra.mrb[68].mxu1 %v2240_v16  ;;  %v2211_v27 = vsel %vm799_vm1, %v2208_v14, %v2210_v29  ;;  %v2179_v13 = vsel %vm557_vm0, %v2176_v41, %v2178_v40 }
 0x283   :  { %2938 = vmatprep.mubr.bf16.mxu1 %v7602_v35  ;;  %v5102_v24 = vpack.c.bf16 %v2211_v27, %v2209_v51  ;;  %v5105_v47 = vpack.c.bf16 %v2179_v13, %v2177_v0  ;;  %v6301_v35 = vld [vmem:[%s8641_s7 + $0xf0] sm:$0xff]  }
 0x284   :  { %5686 = vmatpush3.bf16.msra.mxu1 %v6295_v34  ;;  %5648 = vmatpush3.bf16.msra.mxu0 %v6296_v17 }
 0x285   :  { %5103 = vmatprep.mubr.msk.bf16.mxu0 %vm7759_vm6, %v5102_v24  ;;  %5687 = vmatprep.subr.bf16.mxu1 %v6297_v20 }
 0x286   :  { %5649 = vmatprep.subr.bf16.mxu0 %v6298_v12 }
 0x287   :  { %5106 = vmatmul.mubr.msk.bf16.gmra.mrb[76].mxu0 %vm7317_vm11, %v5105_v47 }
 0x288   :  { %5688 = vmatpush3.bf16.msra.mxu1 %v6299_v63  ;;  %5650 = vmatpush3.bf16.msra.mxu0 %v6300_v15 }
 0x289   :  { %2873 = vmatprep.mubr.bf16.mxu0 %v7598_v56  ;;  %5689 = vmatprep.subr.bf16.mxu1 %v6301_v35  ;;  %v6307_v56 = vld [vmem:[%s8643_s9 + $0x40] sm:$0xff]  }
 0x28a   :  { %5651 = vmatprep.subr.bf16.mxu0 %v6302_v54 }
 0x28c   :  { %5690 = vmatpush3.bf16.msra.mxu1 %v6303_v5  ;;  %5652 = vmatpush3.bf16.msra.mxu0 %v6304_v30 }
 0x28d   :  { %5691 = vmatprep.subr.bf16.mxu1 %v6305_v28  ;;  %5717 = vmatprep.subr.bf16.mxu0 %v6307_v56 }
 0x28f   :  { %2874 = vmatmul.mubr.bf16.vlgmr.msra.gmra.mrb[80].mxu0 %v8824_v22  ;;  %v6320_v22 = vld [vmem:[%s8643_s9 + $0x20] sm:$0xff]  }
 0x290   :  { %5692 = vmatpush3.bf16.msra.mxu1 %v6306_v61  ;;  %2881 = vmatprep.mubr.bf16.mxu0 %v7618_v57  ;;  %v6308_v57 = vld [vmem:[%s8643_s9] sm:$0xff]  }
 0x291   :  { %5718 = vmatpush3.bf16.msra.mxu0 %v6308_v57 }
 0x293   :  { %2939 = vmatmul.mubr.bf16.vlgmr.msra.gmra.mrb[72].mxu1 %v8825_v2  ;;  %v6321_v2 = vld [vmem:[%s8643_s9 + $0x68] sm:$0xff]  }
 0x294   :  { %2946 = vmatprep.mubr.bf16.mxu1 %v7622_v23  ;;  %v6309_v23 = vld [vmem:[%s8643_s9 + $0x48] sm:$0xff]  }
 0x295   :  { %5719 = vmatprep.subr.bf16.mxu0 %v6309_v23 }
 0x297   :  { %2882 = vmatmul.mubr.bf16.gmra.mrb[84].mxu0 %v7626_v58  ;;  %v6310_v58 = vld [vmem:[%s8643_s9 + $0x80] sm:$0xff]  }
 0x298   :  { %2889 = vmatprep.mubr.bf16.mxu0 %v7640_v9  ;;  %5961 = vmatprep.subr.bf16.mxu1 %v6310_v58  ;;  %v6312_v9 = vld [vmem:[%s8643_s9 + $0x50] sm:$0xff]  }
 0x299   :  { %5962 = vmatpush3.bf16.msra.mxu1 %v6310_v58 }
 0x29b   :  { %2947 = vmatmul.mubr.bf16.gmra.mrb[76].mxu1 %v7636_v42  ;;  %v6311_v42 = vld [vmem:[%s8643_s9 + $0x8] sm:$0xff]  }
 0x29c   :  { %2954 = vmatprep.mubr.bf16.mxu1 %v7644_v6  ;;  %5720 = vmatpush3.bf16.msra.mxu0 %v6311_v42  ;;  %v6313_v6 = vld [vmem:[%s8643_s9 + $0x88] sm:$0xff]  }
 0x29d   :  { %5721 = vmatprep.subr.bf16.mxu0 %v6312_v9  ;;  %5963 = vmatprep.subr.bf16.mxu1 %v6313_v6 }
 0x29e   :  { %5964 = vmatpush3.bf16.msra.mxu1 %v6313_v6 }
 0x29f   :  { %2890 = vmatmul.mubr.bf16.gmra.mrb[88].mxu0 %v7648_v10  ;;  %v6314_v10 = vld [vmem:[%s8643_s9 + $0x10] sm:$0xff]  }
 0x2a0   :  { %2897 = vmatprep.mubr.bf16.mxu0 %v7666_v26  ;;  %v6316_v26 = vld [vmem:[%s8643_s9 + $0x90] sm:$0xff]   ;;  %5722 = vmatpush3.bf16.msra.mxu0 %v6314_v10 }
 0x2a1   :  { %5965 = vmatprep.subr.bf16.mxu1 %v6316_v26 }
 0x2a2   :  { %5966 = vmatpush3.bf16.msra.mxu1 %v6316_v26 }
 0x2a3   :  { %2955 = vmatmul.mubr.bf16.gmra.mrb[80].mxu1 %v7662_v49  ;;  %v6315_v49 = vld [vmem:[%s8643_s9 + $0x58] sm:$0xff]  }
 0x2a4   :  { %2962 = vmatprep.mubr.bf16.mxu1 %v7670_v62  ;;  %v6317_v62 = vld [vmem:[%s8643_s9 + $0x18] sm:$0xff]   ;;  %5723 = vmatprep.subr.bf16.mxu0 %v6315_v49 }
 0x2a5   :  { %5724 = vmatpush3.bf16.msra.mxu0 %v6317_v62 }
 0x2a7   :  { %2898 = vmatmul.mubr.bf16.gmra.mrb[92].mxu0 %v7682_v53  ;;  %v6319_v53 = vld [vmem:[%s8643_s9 + $0x98] sm:$0xff]  }
 0x2a8   :  { %5967 = vmatprep.subr.bf16.mxu1 %v6319_v53 }
 0x2a9   :  { %5968 = vmatpush3.bf16.msra.mxu1 %v6319_v53 }
 0x2aa   :  { %5969 = vmatprep.subr.bf16.mxu1 %v6322_v39 }
 0x2ab   :  { %2963 = vmatmul.mubr.bf16.gmra.mrb[84].mxu1 %v7686_v37  ;;  %v6318_v37 = vld [vmem:[%s8643_s9 + $0x60] sm:$0xff]  }
 0x2ac   :  { %5725 = vmatprep.subr.bf16.mxu0 %v6318_v37 }
 0x2ad   :  { %5726 = vmatpush3.bf16.msra.mxu0 %v6320_v22  ;;  %5970 = vmatpush3.bf16.msra.mxu1 %v6322_v39 }
 0x2ae   :  { %5727 = vmatprep.subr.bf16.mxu0 %v6321_v2  ;;  %5971 = vmatprep.subr.bf16.mxu1 %v6325_v25 }
 0x2b1   :  { %5728 = vmatpush3.bf16.msra.mxu0 %v6323_v55  ;;  %5972 = vmatpush3.bf16.msra.mxu1 %v6325_v25 }
 0x2b2   :  { %5729 = vmatprep.subr.bf16.mxu0 %v6324_v21  ;;  %5973 = vmatprep.subr.bf16.mxu1 %v6328_v59 }
 0x2b5   :  { %5730 = vmatpush3.bf16.msra.mxu0 %v6326_v31  ;;  %5974 = vmatpush3.bf16.msra.mxu1 %v6328_v59 }
 0x2b6   :  { %5731 = vmatprep.subr.bf16.mxu0 %v6327_v8  ;;  %5975 = vmatprep.subr.bf16.mxu1 %v6330_v45  ;;  %v8204_v8 = vld [vmem:[%s8642_s8] ss:$0 sm:$0xff] }
 0x2b9   :  { %5732 = vmatpush3.bf16.msra.mxu0 %v6329_v48  ;;  %5976 = vmatpush3.bf16.msra.mxu1 %v6330_v45 }
 0x2ba   :  { %5769 = vmatprep.subr.bf16.mxu0 %v6331_v4  ;;  %5985 = vmatprep.subr.bf16.mxu1 %v8183_v36 }
 0x341   :  { %v5601_v3 = vpop.f32.mrb[64].mxu0 }
 0x342   :  { %v5602_v32 = vpop.f32.mrb[65].mxu0 }
 0x343   :  { %v5603_v44 = vadd.f32 %v5602_v32, %v5601_v3  ;;  %v5604_v52 = vpop.f32.mrb[66].mxu0 }
 0x344   :  { %v5605_v60 = vpop.f32.mrb[67].mxu0 }
 0x345   :  { %v5606_v41 = vadd.f32 %v5605_v60, %v5604_v52  ;;  %v2475_v14 = vadd.f32 %v5603_v44, %v5058_v18 }
 0x346   :  { %v5955_v19 = vpop.f32.mrb[64].mxu1 }
 0x347   :  { %v2539_v40 = vpop.f32.mrb[65].mxu1  ;;  %v2478_v29 = vadd.f32 %v5606_v41, %v5058_v18 }
 0x348   :  { %v2540_v16 = vadd.f32 %v2539_v40, %v2475_v14  ;;  %v5956_v34 = vpop.f32.mrb[66].mxu1 }
 0x349   :  { %v2542_v17 = vpop.f32.mrb[67].mxu1 }
 0x34a   :  { %v2543_v51 = vadd.f32 %v2542_v17, %v2478_v29  ;;  %v5607_v20 = vpop.f32.mrb[68].mxu0 }
 0x34b   :  { %v5608_v0 = vpop.f32.mrb[69].mxu0 }
 0x34c   :  { %v5609_v27 = vadd.f32 %v5608_v0, %v5607_v20  ;;  %v5610_v13 = vpop.f32.mrb[70].mxu0  ;;  %v2571_v20 = vmax.f32 %v2543_v51, 0.0 }
 0x34d   :  { %v5611_v12 = vpop.f32.mrb[71].mxu0 }
 0x34e   :  { %v2483_v24 = vadd.f32 %v5609_v27, %v5058_v18  ;;  %v5612_v47 = vadd.f32 %v5611_v12, %v5610_v13 }
 0x350   :  { %v8189_v63 = vadd.f32 %v5955_v19, %v2483_v24  ;;  %v2486_v15 = vadd.f32 %v5612_v47, %v5058_v18  ;;  %v2570_v19 = vmax.f32 %v2540_v16, 0.0 }
 0x352   :  { %v8191_v35 = vadd.f32 %v5956_v34, %v2486_v15  ;;  %v5613_v54 = vpop.f32.mrb[72].mxu0 }
 0x353   :  { %v5614_v5 = vpop.f32.mrb[73].mxu0 }
 0x354   :  { %v5615_v30 = vadd.f32 %v5614_v5, %v5613_v54  ;;  %v5616_v28 = vpop.f32.mrb[74].mxu0 }
 0x355   :  { %v5617_v61 = vpop.f32.mrb[75].mxu0  ;;  %v5959_v56 = vpop.f32.mrb[68].mxu1 }
 0x356   :  { %v5618_v57 = vadd.f32 %v5617_v61, %v5616_v28  ;;  %v2491_v23 = vadd.f32 %v5615_v30, %v5058_v18  ;;  %v2555_v58 = vpop.f32.mrb[69].mxu1 }
 0x357   :  { %v5960_v42 = vpop.f32.mrb[70].mxu1 }
 0x358   :  { %v8193_v9 = vadd.f32 %v2555_v58, %v2491_v23  ;;  %v2494_v6 = vadd.f32 %v5618_v57, %v5058_v18  ;;  %v2558_v10 = vpop.f32.mrb[71].mxu1 }
 0x35a   :  { %v8195_v49 = vadd.f32 %v2558_v10, %v2494_v6  ;;  %v5619_v26 = vpop.f32.mrb[76].mxu0 }
 0x35b   :  { %v5620_v62 = vpop.f32.mrb[77].mxu0 }
 0x35c   :  { %v5621_v53 = vadd.f32 %v5620_v62, %v5619_v26  ;;  %v5622_v37 = vpop.f32.mrb[78].mxu0 }
 0x35d   :  { %v5623_v22 = vpop.f32.mrb[79].mxu0 }
 0x35e   :  { %v2499_v2 = vadd.f32 %v5621_v53, %v5058_v18  ;;  %v5624_v39 = vadd.f32 %v5623_v22, %v5622_v37  ;;  %v2572_v22 = vmax.f32 %v8189_v63, 0.0 }
 0x360   :  { %v8197_v55 = vadd.f32 %v5959_v56, %v2499_v2  ;;  %v2502_v21 = vadd.f32 %v5624_v39, %v5058_v18 }
 0x362   :  { %v8199_v25 = vadd.f32 %v5960_v42, %v2502_v21  ;;  %v5653_v31 = vpop.f32.mrb[80].mxu0 }
 0x363   :  { %v5654_v59 = vpop.f32.mrb[81].mxu0 }
 0x364   :  { %v5655_v48 = vadd.f32 %v5654_v59, %v5653_v31  ;;  %v5656_v45 = vpop.f32.mrb[82].mxu0  ;;  %v6332_v59 = vld [vmem:[%s8645_s11] sm:$0xff]  }
 0x365   :  { %v5657_v4 = vpop.f32.mrb[83].mxu0 }
 0x366   :  { %v2876_v3 = vadd.f32 %v5655_v48, %v8204_v8  ;;  %v5658_v32 = vadd.f32 %v5657_v4, %v5656_v45  ;;  %v5693_v44 = vpop.f32.mrb[72].mxu1  ;;  %v2573_v48 = vmax.f32 %v8191_v35, 0.0 }
 0x367   :  { %v5694_v52 = vpop.f32.mrb[73].mxu1 }
 0x368   :  { %v2879_v60 = vadd.f32 %v5658_v32, %v8204_v8  ;;  %v5695_v18 = vadd.f32 %v5694_v52, %v5693_v44  ;;  %v5696_v41 = vpop.f32.mrb[74].mxu1  ;;  %v6333_v32 = vld [vmem:[%s8645_s11 + $0x48] sm:$0xff]  }
 0x369   :  { %v5697_v14 = vpop.f32.mrb[75].mxu1 }
 0x36a   :  { %v2941_v40 = vadd.f32 %v5695_v18, %v2876_v3  ;;  %v5698_v29 = vadd.f32 %v5697_v14, %v5696_v41  ;;  %v5659_v34 = vpop.f32.mrb[84].mxu0 }
 0x36b   :  { %v5660_v17 = vpop.f32.mrb[85].mxu0 }
 0x36c   :  { %v8208_v0 = vadd.f32 %v2941_v40, %v2570_v19  ;;  %v2944_v27 = vadd.f32 %v5698_v29, %v2879_v60  ;;  %v5661_v13 = vadd.f32 %v5660_v17, %v5659_v34  ;;  %v5662_v12 = vpop.f32.mrb[86].mxu0  ;;  %v6334_v40 = vld [vmem:[%s8645_s11 + $0x8] sm:$0xff]  }
 0x36d   :  { %v5663_v24 = vpop.f32.mrb[87].mxu0 }
 0x36e   :  { %v2987_v47 = vrot.slane %v8208_v0, 6  ;;  %v8211_v15 = vadd.f32 %v2944_v27, %v2571_v20  ;;  %v5664_v54 = vadd.f32 %v5663_v24, %v5662_v12  ;;  %v5699_v5 = vpop.f32.mrb[76].mxu1  ;;  %v2884_v30 = vadd.f32 %v5661_v13, %v8204_v8  ;;  %v6336_v13 = vld [vmem:[%s8645_s11 + $0x50] sm:$0xff]  }
 0x36f   :  { %v5700_v16 = vpop.f32.mrb[77].mxu1  ;;  %v3019_v28 = vrot.slane %v8208_v0, 7  ;;  %v2574_v12 = vmax.f32 %v8193_v9, 0.0 }
 0x370   :  { %v2988_v61 = vrot.slane %v8211_v15, 6  ;;  %v3020_v51 = vrot.slane %v8211_v15, 7  ;;  %v2887_v56 = vadd.f32 %v5664_v54, %v8204_v8  ;;  %v5702_v57 = vpop.f32.mrb[78].mxu1  ;;  %v3010_v23 = vsel %vm557_vm0, 0.0, %v2987_v47 }
 0x371   :  { %v5701_v58 = vadd.f32 %v5700_v16, %v5699_v5  ;;  %v5703_v42 = vpop.f32.mrb[79].mxu1  ;;  %v3053_v6 = vpack.c.bf16 %v8211_v15, %v8208_v0  ;;  %v3042_v37 = vsel %vm799_vm1, 0.0, %v3019_v28 }
 0x372   :  { %v2989_v10 = vsel %vm557_vm0, %v2987_v47, %v2988_v61  ;;  %v5704_v26 = vadd.f32 %v5703_v42, %v5702_v57  ;;  %v5665_v62 = vpop.f32.mrb[88].mxu0  ;;  %v3021_v53 = vsel %vm799_vm1, %v3019_v28, %v3020_v51 }
 0x373   :  { %v2949_v2 = vadd.f32 %v5701_v58, %v2884_v30  ;;  %5977 = vmatprep.mubr.bf16.mxu1 %v3053_v6  ;;  %v5666_v39 = vpop.f32.mrb[89].mxu0  ;;  %v5166_v21 = vpack.c.bf16 %v3021_v53, %v3042_v37  ;;  %v5169_v31 = vpack.c.bf16 %v2989_v10, %v3010_v23  ;;  %v6338_v30 = vld [vmem:[%s8645_s11 + $0x88] sm:$0xff]   ;;  %v6339_v53 = vld [vmem:[%s8645_s11 + $0x58] sm:$0xff]  }
 0x374   :  { %v2952_v45 = vadd.f32 %v5704_v26, %v2887_v56  ;;  %v5667_v4 = vadd.f32 %v5666_v39, %v5665_v62  ;;  %v5668_v3 = vpop.f32.mrb[90].mxu0 }
 0x375   :  { %v8232_v44 = vadd.f32 %v2949_v2, %v2572_v22  ;;  %5167 = vmatprep.mubr.msk.bf16.mxu0 %vm7426_vm12, %v5166_v21  ;;  %v5669_v63 = vpop.f32.mrb[91].mxu0 }
 0x376   :  { %v8236_v52 = vadd.f32 %v2952_v45, %v2573_v48  ;;  %v2892_v60 = vadd.f32 %v5667_v4, %v8204_v8  ;;  %v5670_v18 = vadd.f32 %v5669_v63, %v5668_v3  ;;  %v5705_v41 = vpop.f32.mrb[80].mxu1  ;;  %5170 = vmatmul.mubr.msk.bf16.vlgmr.msra.gmra.mrb[96].mxu0 %vm6997_vm5, %v5169_v31  ;;  %v6340_v48 = vld [vmem:[%s8645_s11 + $0x18] sm:$0xff]  }
 0x377   :  { %v2990_v35 = vrot.slane %v8232_v44, 6  ;;  %v3022_v14 = vrot.slane %v8232_v44, 7  ;;  %v5706_v19 = vpop.f32.mrb[81].mxu1  ;;  %5770 = vmatpush3.bf16.msra.mxu0 %v6332_v59 }
 0x378   :  { %v2992_v29 = vrot.slane %v8236_v52, 6  ;;  %v3024_v34 = vrot.slane %v8236_v52, 7  ;;  %v2895_v17 = vadd.f32 %v5670_v18, %v8204_v8  ;;  %v5707_v20 = vadd.f32 %v5706_v19, %v5705_v41  ;;  %v5708_v27 = vpop.f32.mrb[82].mxu1  ;;  %5771 = vmatprep.subr.bf16.mxu0 %v6333_v32 }
 0x379   :  { %v5709_v24 = vpop.f32.mrb[83].mxu1  ;;  %v3056_v47 = vpack.c.bf16 %v8236_v52, %v8232_v44  ;;  %v3023_v54 = vsel %vm799_vm1, %v3020_v51, %v3022_v14  ;;  %v2991_v5 = vsel %vm557_vm0, %v2988_v61, %v2990_v35  ;;  %v6337_v61 = vld [vmem:[%s8645_s11 + $0x10] sm:$0xff]   ;;  %v2575_v51 = vmax.f32 %v8195_v49, 0.0 }
 0x37a   :  { %v2957_v16 = vadd.f32 %v5707_v20, %v2892_v60  ;;  %v5710_v28 = vadd.f32 %v5709_v24, %v5708_v27  ;;  %v5671_v56 = vpop.f32.mrb[92].mxu0  ;;  %v3025_v57 = vsel %vm799_vm1, %v3022_v14, %v3024_v34  ;;  %v2993_v23 = vsel %vm557_vm0, %v2990_v35, %v2992_v29  ;;  %v6341_v49 = vld [vmem:[%s8645_s11 + $0x90] sm:$0xff]  }
 0x37b   :  { %5978 = vmatmul.mubr.bf16.vlgmr.msra.gmra.mrb[88].mxu1 %v3056_v47  ;;  %v5672_v9 = vpop.f32.mrb[93].mxu0  ;;  %v5172_v58 = vpack.c.bf16 %v3025_v57, %v3023_v54  ;;  %v5175_v42 = vpack.c.bf16 %v2993_v23, %v2991_v5  ;;  %5772 = vmatpush3.bf16.msra.mxu0 %v6334_v40  ;;  %v2576_v60 = vmax.f32 %v8197_v55, 0.0  ;;  %v2577_v55 = vmax.f32 %v8199_v25, 0.0  ;;  %v6342_v23 = vld [vmem:[%s8645_s11 + $0x60] sm:$0xff]  }
 0x37c   :  { %v8266_v6 = vadd.f32 %v2957_v16, %v2574_v12  ;;  %v2960_v10 = vadd.f32 %v5710_v28, %v2895_v17  ;;  %v5673_v26 = vadd.f32 %v5672_v9, %v5671_v56  ;;  %v5674_v62 = vpop.f32.mrb[94].mxu0  ;;  %5986 = vmatpush3.bf16.msra.mxu1 %v8183_v36  ;;  %5773 = vmatprep.subr.bf16.mxu0 %v6336_v13  ;;  %v6343_v9 = vld [vmem:[%s8645_s11 + $0x20] sm:$0xff]  }
 0x37d   :  { %5173 = vmatprep.mubr.msk.bf16.mxu0 %vm7607_vm14, %v5172_v58  ;;  %v5675_v37 = vpop.f32.mrb[95].mxu0  ;;  %5987 = vmatprep.subr.bf16.mxu1 %v6338_v30  ;;  %v6344_v58 = vld [vmem:[%s8645_s11 + $0x98] sm:$0xff]  }
 0x37e   :  { %v2994_v22 = vrot.slane %v8266_v6, 6  ;;  %v3026_v2 = vrot.slane %v8266_v6, 7  ;;  %v8279_v39 = vadd.f32 %v2960_v10, %v2575_v51  ;;  %v2900_v36 = vadd.f32 %v5673_v26, %v8204_v8  ;;  %v5711_v21 = vpop.f32.mrb[84].mxu1  ;;  %5176 = vmatmul.mubr.msk.bf16.gmra.mrb[100].mxu0 %vm7111_vm7, %v5175_v42  ;;  %v6345_v42 = vld [vmem:[%s8645_s11 + $0x68] sm:$0xff]   ;;  %v6347_v51 = vld [vmem:[%s8645_s11 + $0xa0] sm:$0xff]   ;;  %v6348_v10 = vld [vmem:[%s8645_s11 + $0x70] sm:$0xff]  }
 0x37f   :  { %v5676_v31 = vadd.f32 %v5675_v37, %v5674_v62  ;;  %v5712_v59 = vpop.f32.mrb[85].mxu1  ;;  %5774 = vmatpush3.bf16.msra.mxu0 %v6337_v61  ;;  %v6346_v61 = vld [vmem:[%s8645_s11 + $0x28] sm:$0xff]   ;;  %v6349_v26 = vld [vmem:[%s8645_s11 + $0x30] sm:$0xff]  }
 0x380   :  { %v2996_v45 = vrot.slane %v8279_v39, 6  ;;  %v3028_v4 = vrot.slane %v8279_v39, 7  ;;  %v5713_v3 = vadd.f32 %v5712_v59, %v5711_v21  ;;  %v5714_v32 = vpop.f32.mrb[86].mxu1  ;;  %v3059_v63 = vpack.c.bf16 %v8279_v39, %v8266_v6  ;;  %5988 = vmatpush3.bf16.msra.mxu1 %v6338_v30  ;;  %5775 = vmatprep.subr.bf16.mxu0 %v6339_v53  ;;  %v6350_v62 = vld [vmem:[%s8645_s11 + $0xa8] sm:$0xff]   ;;  %v6351_v53 = vld [vmem:[%s8645_s11 + $0x78] sm:$0xff]   ;;  %v6353_v37 = vld [vmem:[%s8645_s11 + $0xb0] sm:$0xff]  }
 0x381   :  { %v2903_v18 = vadd.f32 %v5676_v31, %v8204_v8  ;;  %v5715_v41 = vpop.f32.mrb[87].mxu1  ;;  %v3027_v35 = vsel %vm799_vm1, %v3024_v34, %v3026_v2  ;;  %v2995_v14 = vsel %vm557_vm0, %v2992_v29, %v2994_v22  ;;  %5989 = vmatprep.subr.bf16.mxu1 %v6341_v49  ;;  %v8371_v59 = vld [vmem:[%s8644_s10] ss:$0 sm:$0xff] }
 0x382   :  { %v2965_v19 = vadd.f32 %v5713_v3, %v2900_v36  ;;  %v5716_v40 = vadd.f32 %v5715_v41, %v5714_v32  ;;  %5981 = vmatprep.mubr.bf16.mxu1 %v3059_v63  ;;  %v3029_v17 = vsel %vm799_vm1, %v3026_v2, %v3028_v4  ;;  %v2997_v20 = vsel %vm557_vm0, %v2994_v22, %v2996_v45  ;;  %v6354_v22 = vld [vmem:[%s8645_s11 + $0xb8] sm:$0xff]   ;;  %v6355_v2 = vld [vmem:[%s8647_s13 + $0x40] sm:$0xff]  }
 0x383   :  { %v5178_v27 = vpack.c.bf16 %v3029_v17, %v3027_v35  ;;  %v5181_v13 = vpack.c.bf16 %v2997_v20, %v2995_v14  ;;  %5776 = vmatpush3.bf16.msra.mxu0 %v6340_v48  ;;  %v8365_v36 = vld [vmem:[%s8647_s13 + $0x80] sm:$0xff]  }
 0x384   :  { %v8298_v12 = vadd.f32 %v2965_v19, %v2576_v60  ;;  %v2968_v8 = vadd.f32 %v5716_v40, %v2903_v18  ;;  %5990 = vmatpush3.bf16.msra.mxu1 %v6341_v49  ;;  %5777 = vmatprep.subr.bf16.mxu0 %v6342_v23  ;;  %v6352_v49 = vld [vmem:[%s8645_s11 + $0x38] sm:$0xff]  }
 0x385   :  { %5179 = vmatprep.mubr.msk.bf16.mxu0 %vm7708_vm2, %v5178_v27  ;;  %5991 = vmatprep.subr.bf16.mxu1 %v6344_v58 }
 0x386   :  { %v2998_v29 = vrot.slane %v8298_v12, 6  ;;  %v3030_v34 = vrot.slane %v8298_v12, 7  ;;  %v8304_v24 = vadd.f32 %v2968_v8, %v2577_v55  ;;  %5182 = vmatmul.mubr.msk.bf16.gmra.mrb[104].mxu0 %vm7247_vm9, %v5181_v13 }
 0x387   :  { %5778 = vmatpush3.bf16.msra.mxu0 %v6343_v9 }
 0x388   :  { %v3000_v47 = vrot.slane %v8304_v24, 6  ;;  %v3032_v25 = vrot.slane %v8304_v24, 7  ;;  %v3062_v54 = vpack.c.bf16 %v8304_v24, %v8298_v12  ;;  %v3031_v5 = vsel %vm799_vm1, %v3028_v4, %v3030_v34  ;;  %5992 = vmatpush3.bf16.msra.mxu1 %v6344_v58  ;;  %5779 = vmatprep.subr.bf16.mxu0 %v6345_v42 }
 0x389   :  { %v2999_v16 = vsel %vm557_vm0, %v2996_v45, %v2998_v29  ;;  %5993 = vmatprep.subr.bf16.mxu1 %v6347_v51 }
 0x38a   :  { %5982 = vmatmul.mubr.bf16.gmra.mrb[92].mxu1 %v3062_v54  ;;  %v3033_v30 = vsel %vm799_vm1, %v3030_v34, %v3032_v25  ;;  %v3001_v28 = vsel %vm557_vm0, %v2998_v29, %v3000_v47 }
 0x38b   :  { %v5184_v56 = vpack.c.bf16 %v3033_v30, %v3031_v5  ;;  %v5187_v57 = vpack.c.bf16 %v3001_v28, %v2999_v16  ;;  %5780 = vmatpush3.bf16.msra.mxu0 %v6346_v61 }
 0x38c   :  { %5994 = vmatpush3.bf16.msra.mxu1 %v6347_v51  ;;  %5781 = vmatprep.subr.bf16.mxu0 %v6348_v10 }
 0x38d   :  { %5185 = vmatprep.mubr.msk.bf16.mxu0 %vm7759_vm6, %v5184_v56  ;;  %5995 = vmatprep.subr.bf16.mxu1 %v6350_v62 }
 0x38e   :  { %5188 = vmatmul.mubr.msk.bf16.gmra.mrb[108].mxu0 %vm7317_vm11, %v5187_v57 }
 0x38f   :  { %5782 = vmatpush3.bf16.msra.mxu0 %v6349_v26  ;;  %v6356_v26 = vld [vmem:[%s8647_s13] sm:$0xff]  }
 0x390   :  { %5996 = vmatpush3.bf16.msra.mxu1 %v6350_v62  ;;  %5783 = vmatprep.subr.bf16.mxu0 %v6351_v53  ;;  %v6357_v53 = vld [vmem:[%s8647_s13 + $0x48] sm:$0xff]  }
 0x391   :  { %5997 = vmatprep.subr.bf16.mxu1 %v6353_v37 }
 0x393   :  { %5784 = vmatpush3.bf16.msra.mxu0 %v6352_v49 }
 0x394   :  { %5998 = vmatpush3.bf16.msra.mxu1 %v6353_v37  ;;  %5821 = vmatprep.subr.bf16.mxu0 %v6355_v2 }
 0x395   :  { %5999 = vmatprep.subr.bf16.mxu1 %v6354_v22 }
 0x398   :  { %6000 = vmatpush3.bf16.msra.mxu1 %v6354_v22 }
 0x399   :  { %6009 = vmatprep.subr.bf16.mxu1 %v8365_v36 }
 0x449   :  { %v5733_v21 = vpop.f32.mrb[96].mxu0 }
 0x44a   :  { %v5734_v31 = vpop.f32.mrb[97].mxu0 }
 0x44b   :  { %v5735_v48 = vadd.f32 %v5734_v31, %v5733_v21  ;;  %v5736_v45 = vpop.f32.mrb[98].mxu0 }
 0x44c   :  { %v5737_v4 = vpop.f32.mrb[99].mxu0 }
 0x44d   :  { %v5738_v3 = vadd.f32 %v5737_v4, %v5736_v45  ;;  %v3297_v32 = vadd.f32 %v5735_v48, %v8371_v59 }
 0x44e   :  { %v5979_v63 = vpop.f32.mrb[88].mxu1 }
 0x44f   :  { %v3361_v60 = vpop.f32.mrb[89].mxu1  ;;  %v3300_v18 = vadd.f32 %v5738_v3, %v8371_v59 }
 0x450   :  { %v3362_v41 = vadd.f32 %v3361_v60, %v3297_v32  ;;  %v5980_v35 = vpop.f32.mrb[90].mxu1  ;;  %v6362_v60 = vld [vmem:[%s8647_s13 + $0x88] sm:$0xff]  }
 0x451   :  { %v3364_v14 = vpop.f32.mrb[91].mxu1  ;;  %v5739_v19 = vpop.f32.mrb[100].mxu0 }
 0x452   :  { %v3392_v40 = vmax.f32 %v3362_v41, 0.0  ;;  %v3365_v17 = vadd.f32 %v3364_v14, %v3300_v18  ;;  %v5740_v20 = vpop.f32.mrb[101].mxu0 }
 0x453   :  { %v5741_v27 = vadd.f32 %v5740_v20, %v5739_v19  ;;  %v5742_v13 = vpop.f32.mrb[102].mxu0  ;;  %v6360_v19 = vld [vmem:[%s8647_s13 + $0x50] sm:$0xff]  }
 0x454   :  { %v3408_v55 = vrot.slane %v3392_v40, 6  ;;  %v3440_v8 = vrot.slane %v3392_v40, 7  ;;  %v3393_v29 = vmax.f32 %v3365_v17, 0.0  ;;  %v5743_v34 = vpop.f32.mrb[103].mxu0 }
 0x455   :  { %v3305_v47 = vadd.f32 %v5741_v27, %v8371_v59  ;;  %v5744_v25 = vadd.f32 %v5743_v34, %v5742_v13 }
 0x456   :  { %v3409_v54 = vrot.slane %v3393_v29, 6  ;;  %v3441_v5 = vrot.slane %v3393_v29, 7  ;;  %v3474_v28 = vpack.c.bf16 %v3393_v29, %v3392_v40  ;;  %v3431_v56 = vsel %vm557_vm0, 0.0, %v3408_v55 }
 0x457   :  { %v3370_v30 = vadd.f32 %v5979_v63, %v3305_v47  ;;  %v3308_v16 = vadd.f32 %v5744_v25, %v8371_v59  ;;  %v3463_v57 = vsel %vm799_vm1, 0.0, %v3440_v8  ;;  %v6358_v63 = vld [vmem:[%s8647_s13 + $0x8] sm:$0xff]   ;;  %v6361_v25 = vld [vmem:[%s8647_s13 + $0x10] sm:$0xff]  }
 0x458   :  { %v3410_v23 = vsel %vm557_vm0, %v3408_v55, %v3409_v54  ;;  %v3442_v9 = vsel %vm799_vm1, %v3440_v8, %v3441_v5  ;;  %6001 = vmatprep.mubr.bf16.mxu1 %v3474_v28 }
 0x459   :  { %v5218_v58 = vpack.c.bf16 %v3410_v23, %v3431_v56  ;;  %v3394_v42 = vmax.f32 %v3370_v30, 0.0  ;;  %v3373_v61 = vadd.f32 %v5980_v35, %v3308_v16  ;;  %v5745_v51 = vpop.f32.mrb[104].mxu0  ;;  %v5215_v10 = vpack.c.bf16 %v3442_v9, %v3463_v57  ;;  %v6363_v30 = vld [vmem:[%s8647_s13 + $0x58] sm:$0xff]  }
 0x45a   :  { %v5746_v62 = vpop.f32.mrb[105].mxu0 }
 0x45b   :  { %v3411_v37 = vrot.slane %v3394_v42, 6  ;;  %v3443_v49 = vrot.slane %v3394_v42, 7  ;;  %v3395_v22 = vmax.f32 %v3373_v61, 0.0  ;;  %v5747_v2 = vadd.f32 %v5746_v62, %v5745_v51  ;;  %5216 = vmatprep.mubr.msk.bf16.mxu0 %vm7426_vm12, %v5215_v10  ;;  %v5748_v21 = vpop.f32.mrb[106].mxu0 }
 0x45c   :  { %5219 = vmatmul.mubr.msk.bf16.vlgmr.msra.gmra.mrb[112].mxu0 %vm6997_vm5, %v5218_v58  ;;  %v5749_v31 = vpop.f32.mrb[107].mxu0 }
 0x45d   :  { %v3413_v48 = vrot.slane %v3395_v22, 6  ;;  %v3445_v45 = vrot.slane %v3395_v22, 7  ;;  %v3477_v4 = vpack.c.bf16 %v3395_v22, %v3394_v42  ;;  %v5750_v3 = vadd.f32 %v5749_v31, %v5748_v21  ;;  %v5983_v32 = vpop.f32.mrb[92].mxu1  ;;  %5822 = vmatpush3.bf16.msra.mxu0 %v6356_v26 }
 0x45e   :  { %v3313_v18 = vadd.f32 %v5747_v2, %v8371_v59  ;;  %v3377_v41 = vpop.f32.mrb[93].mxu1  ;;  %v3444_v35 = vsel %vm799_vm1, %v3441_v5, %v3443_v49  ;;  %v3412_v14 = vsel %vm557_vm0, %v3409_v54, %v3411_v37  ;;  %5823 = vmatprep.subr.bf16.mxu0 %v6357_v53 }
 0x45f   :  { %v5984_v40 = vpop.f32.mrb[94].mxu1  ;;  %6002 = vmatmul.mubr.bf16.vlgmr.msra.gmra.mrb[96].mxu1 %v3477_v4  ;;  %v3316_v17 = vadd.f32 %v5750_v3, %v8371_v59  ;;  %v3446_v20 = vsel %vm799_vm1, %v3443_v49, %v3445_v45  ;;  %v3414_v27 = vsel %vm557_vm0, %v3411_v37, %v3413_v48 }
 0x460   :  { %v3378_v13 = vadd.f32 %v3377_v41, %v3313_v18  ;;  %v3380_v55 = vpop.f32.mrb[95].mxu1  ;;  %v5221_v8 = vpack.c.bf16 %v3446_v20, %v3444_v35  ;;  %v5224_v29 = vpack.c.bf16 %v3414_v27, %v3412_v14  ;;  %6010 = vmatpush3.bf16.msra.mxu1 %v8365_v36  ;;  %v6367_v20 = vld [vmem:[%s8647_s13 + $0x20] sm:$0xff]   ;;  %v6368_v27 = vld [vmem:[%s8647_s13 + $0x98] sm:$0xff]  }
 0x461   :  { %v3381_v34 = vadd.f32 %v3380_v55, %v3316_v17  ;;  %v5751_v47 = vpop.f32.mrb[108].mxu0  ;;  %5824 = vmatpush3.bf16.msra.mxu0 %v6358_v63  ;;  %6011 = vmatprep.subr.bf16.mxu1 %v6362_v60  ;;  %v6366_v17 = vld [vmem:[%s8647_s13 + $0x60] sm:$0xff]   ;;  %v6370_v55 = vld [vmem:[%s8647_s13 + $0x28] sm:$0xff]  }
 0x462   :  { %v3396_v54 = vmax.f32 %v3378_v13, 0.0  ;;  %v5752_v5 = vpop.f32.mrb[109].mxu0  ;;  %5222 = vmatprep.mubr.msk.bf16.mxu0 %vm7607_vm14, %v5221_v8  ;;  %5825 = vmatprep.subr.bf16.mxu0 %v6360_v19  ;;  %v6364_v19 = vld [vmem:[%s8647_s13 + $0x18] sm:$0xff]   ;;  %v6369_v13 = vld [vmem:[%s8647_s13 + $0x68] sm:$0xff]   ;;  %v6371_v8 = vld [vmem:[%s8647_s13 + $0xa0] sm:$0xff]  }
 0x463   :  { %v3397_v16 = vmax.f32 %v3381_v34, 0.0  ;;  %v5753_v36 = vadd.f32 %v5752_v5, %v5751_v47  ;;  %v5754_v28 = vpop.f32.mrb[110].mxu0  ;;  %v6373_v34 = vld [vmem:[%s8647_s13 + $0x30] sm:$0xff]   ;;  %v6374_v47 = vld [vmem:[%s8647_s13 + $0xa8] sm:$0xff]   ;;  %v6376_v5 = vld [vmem:[%s8647_s13 + $0x38] sm:$0xff]  }
 0x464   :  { %v3415_v56 = vrot.slane %v3396_v54, 6  ;;  %v3447_v57 = vrot.slane %v3396_v54, 7  ;;  %5225 = vmatmul.mubr.msk.bf16.gmra.mrb[116].mxu0 %vm7111_vm7, %v5224_v29  ;;  %v5755_v23 = vpop.f32.mrb[111].mxu0  ;;  %6012 = vmatpush3.bf16.msra.mxu1 %v6362_v60  ;;  %v6372_v29 = vld [vmem:[%s8647_s13 + $0x70] sm:$0xff]  }
 0x465   :  { %v3417_v9 = vrot.slane %v3397_v16, 6  ;;  %v3449_v58 = vrot.slane %v3397_v16, 7  ;;  %v3321_v42 = vadd.f32 %v5753_v36, %v8371_v59  ;;  %v5756_v61 = vadd.f32 %v5755_v23, %v5754_v28  ;;  %5826 = vmatpush3.bf16.msra.mxu0 %v6361_v25  ;;  %v6375_v25 = vld [vmem:[%s8647_s13 + $0x78] sm:$0xff]   ;;  %v8480_v36 = vld [vmem:[#allocation2 + $0x80] sm:$0xff]  }
 0x466   :  { %v3480_v51 = vpack.c.bf16 %v3397_v16, %v3396_v54  ;;  %v3448_v10 = vsel %vm799_vm1, %v3445_v45, %v3447_v57  ;;  %v3416_v26 = vsel %vm557_vm0, %v3413_v48, %v3415_v56  ;;  %5827 = vmatprep.subr.bf16.mxu0 %v6363_v30  ;;  %v6377_v54 = vld [vmem:[%s8647_s13 + $0xb0] sm:$0xff]   ;;  %v6378_v30 = vld [vmem:[%s8647_s13 + $0xb8] sm:$0xff]   ;;  %v6379_v16 = vld [vmem:[#allocation2 + $0x40] sm:$0xff]  }
 0x467   :  { %v3386_v62 = vadd.f32 %v5983_v32, %v3321_v42  ;;  %v3324_v53 = vadd.f32 %v5756_v61, %v8371_v59  ;;  %v3450_v37 = vsel %vm799_vm1, %v3447_v57, %v3449_v58  ;;  %v3418_v49 = vsel %vm557_vm0, %v3415_v56, %v3417_v9  ;;  %v8486_v57 = vld [vmem:[%s8646_s12] ss:$0 sm:$0xff] }
 0x468   :  { %6005 = vmatprep.mubr.bf16.mxu1 %v3480_v51  ;;  %v5227_v22 = vpack.c.bf16 %v3450_v37, %v3448_v10  ;;  %v5230_v2 = vpack.c.bf16 %v3418_v49, %v3416_v26 }
 0x469   :  { %v3398_v21 = vmax.f32 %v3386_v62, 0.0  ;;  %v3389_v31 = vadd.f32 %v5984_v40, %v3324_v53  ;;  %v6365_v40 = vld [vmem:[%s8647_s13 + $0x90] sm:$0xff]   ;;  %5828 = vmatpush3.bf16.msra.mxu0 %v6364_v19 }
 0x46a   :  { %5228 = vmatprep.mubr.msk.bf16.mxu0 %vm7708_vm2, %v5227_v22  ;;  %6013 = vmatprep.subr.bf16.mxu1 %v6365_v40 }
 0x46b   :  { %v3419_v4 = vrot.slane %v3398_v21, 6  ;;  %v3451_v45 = vrot.slane %v3398_v21, 7  ;;  %v3399_v3 = vmax.f32 %v3389_v31, 0.0  ;;  %6014 = vmatpush3.bf16.msra.mxu1 %v6365_v40  ;;  %5829 = vmatprep.subr.bf16.mxu0 %v6366_v17 }
 0x46c   :  { %5231 = vmatmul.mubr.msk.bf16.gmra.mrb[120].mxu0 %vm7247_vm9, %v5230_v2  ;;  %6015 = vmatprep.subr.bf16.mxu1 %v6368_v27 }
 0x46d   :  { %v3421_v48 = vrot.slane %v3399_v3, 6  ;;  %v3453_v59 = vrot.slane %v3399_v3, 7  ;;  %v3483_v32 = vpack.c.bf16 %v3399_v3, %v3398_v21  ;;  %v3452_v63 = vsel %vm799_vm1, %v3449_v58, %v3451_v45  ;;  %5830 = vmatpush3.bf16.msra.mxu0 %v6367_v20 }
 0x46e   :  { %v3420_v60 = vsel %vm557_vm0, %v3417_v9, %v3419_v4  ;;  %5831 = vmatprep.subr.bf16.mxu0 %v6369_v13 }
 0x46f   :  { %6006 = vmatmul.mubr.bf16.gmra.mrb[100].mxu1 %v3483_v32  ;;  %v3454_v18 = vsel %vm799_vm1, %v3451_v45, %v3453_v59  ;;  %v3422_v41 = vsel %vm557_vm0, %v3419_v4, %v3421_v48 }
 0x470   :  { %v5233_v35 = vpack.c.bf16 %v3454_v18, %v3452_v63  ;;  %v5236_v14 = vpack.c.bf16 %v3422_v41, %v3420_v60  ;;  %6016 = vmatpush3.bf16.msra.mxu1 %v6368_v27 }
 0x471   :  { %6017 = vmatprep.subr.bf16.mxu1 %v6371_v8  ;;  %5832 = vmatpush3.bf16.msra.mxu0 %v6370_v55 }
 0x472   :  { %5234 = vmatprep.mubr.msk.bf16.mxu0 %vm7759_vm6, %v5233_v35  ;;  %5833 = vmatprep.subr.bf16.mxu0 %v6372_v29 }
 0x474   :  { %5237 = vmatmul.mubr.msk.bf16.gmra.mrb[124].mxu0 %vm7317_vm11, %v5236_v14  ;;  %6018 = vmatpush3.bf16.msra.mxu1 %v6371_v8 }
 0x475   :  { %6019 = vmatprep.subr.bf16.mxu1 %v6374_v47  ;;  %5834 = vmatpush3.bf16.msra.mxu0 %v6373_v34 }
 0x476   :  { %5835 = vmatprep.subr.bf16.mxu0 %v6375_v25 }
 0x478   :  { %6020 = vmatpush3.bf16.msra.mxu1 %v6374_v47  ;;  %v6380_v47 = vld [vmem:[#allocation2] sm:$0xff]  }
 0x479   :  { %6021 = vmatprep.subr.bf16.mxu1 %v6377_v54  ;;  %5836 = vmatpush3.bf16.msra.mxu0 %v6376_v5 }
 0x47a   :  { %5873 = vmatprep.subr.bf16.mxu0 %v6379_v16 }
 0x47c   :  { %6022 = vmatpush3.bf16.msra.mxu1 %v6377_v54 }
 0x47d   :  { %6023 = vmatprep.subr.bf16.mxu1 %v6378_v30 }
 0x480   :  { %6024 = vmatpush3.bf16.msra.mxu1 %v6378_v30  ;;  %v6382_v30 = vld [vmem:[#allocation2 + $0x48] sm:$0xff]  }
 0x481   :  { %6033 = vmatprep.subr.bf16.mxu1 %v8480_v36 }
 0x52f   :  { %v5785_v28 = vpop.f32.mrb[112].mxu0 }
 0x530   :  { %v5786_v56 = vpop.f32.mrb[113].mxu0 }
 0x531   :  { %v5787_v23 = vadd.f32 %v5786_v56, %v5785_v28  ;;  %v5788_v9 = vpop.f32.mrb[114].mxu0 }
 0x532   :  { %v5789_v58 = vpop.f32.mrb[115].mxu0  ;;  %v6003_v42 = vpop.f32.mrb[96].mxu1 }
 0x533   :  { %v5790_v61 = vadd.f32 %v5789_v58, %v5788_v9  ;;  %v3718_v51 = vadd.f32 %v5787_v23, %v8486_v57  ;;  %v3782_v10 = vpop.f32.mrb[97].mxu1 }
 0x534   :  { %v6004_v26 = vpop.f32.mrb[98].mxu1 }
 0x535   :  { %v3783_v62 = vadd.f32 %v3782_v10, %v3718_v51  ;;  %v3721_v53 = vadd.f32 %v5790_v61, %v8486_v57  ;;  %v3785_v37 = vpop.f32.mrb[99].mxu1  ;;  %v6383_v10 = vld [vmem:[#allocation2 + $0x8] sm:$0xff]  }
 0x537   :  { %v3813_v49 = vmax.f32 %v3783_v62, 0.0  ;;  %v3786_v22 = vadd.f32 %v3785_v37, %v3721_v53  ;;  %v5791_v2 = vpop.f32.mrb[116].mxu0 }
 0x538   :  { %v5792_v21 = vpop.f32.mrb[117].mxu0 }
 0x539   :  { %v3821_v31 = vadd.f32 %v3813_v49, %v8208_v0  ;;  %v3814_v4 = vmax.f32 %v3786_v22, 0.0  ;;  %v5793_v45 = vadd.f32 %v5792_v21, %v5791_v2  ;;  %v5794_v3 = vpop.f32.mrb[118].mxu0  ;;  %v6385_v22 = vld [vmem:[#allocation2 + $0x50] sm:$0xff]  }
 0x53a   :  { %v5795_v48 = vpop.f32.mrb[119].mxu0 }
 0x53b   :  { %v3837_v59 = vrot.slane %v3821_v31, 6  ;;  %v3869_v32 = vrot.slane %v3821_v31, 7  ;;  %v3822_v63 = vadd.f32 %v3814_v4, %v8211_v15  ;;  %v3726_v60 = vadd.f32 %v5793_v45, %v8486_v57  ;;  %v6384_v4 = vld [vmem:[#allocation2 + $0x88] sm:$0xff]  }
 0x53c   :  { %v5796_v18 = vadd.f32 %v5795_v48, %v5794_v3 }
 0x53d   :  { %v3838_v41 = vrot.slane %v3822_v63, 6  ;;  %v3870_v35 = vrot.slane %v3822_v63, 7  ;;  %v3791_v14 = vadd.f32 %v6003_v42, %v3726_v60  ;;  %v3860_v19 = vsel %vm557_vm0, 0.0, %v3837_v59 }
 0x53e   :  { %v3729_v40 = vadd.f32 %v5796_v18, %v8486_v57  ;;  %v8495_v17 = vpack.c.bf16 %v3822_v63, %v3821_v31  ;;  %v3892_v15 = vsel %vm799_vm1, 0.0, %v3869_v32 }
 0x53f   :  { %v3839_v0 = vsel %vm557_vm0, %v3837_v59, %v3838_v41  ;;  %v3815_v20 = vmax.f32 %v3791_v14, 0.0  ;;  %v5797_v27 = vpop.f32.mrb[120].mxu0  ;;  %v3871_v13 = vsel %vm799_vm1, %v3869_v32, %v3870_v35  ;;  %v6386_v14 = vld [vmem:[#allocation2 + $0x10] sm:$0xff]  }
 0x540   :  { %v5267_v55 = vpack.c.bf16 %v3839_v0, %v3860_v19  ;;  %v3794_v8 = vadd.f32 %v6004_v26, %v3729_v40  ;;  %6025 = vmatprep.mubr.bf16.mxu1 %v8495_v17  ;;  %v5798_v29 = vpop.f32.mrb[121].mxu0  ;;  %v5264_v34 = vpack.c.bf16 %v3871_v13, %v3892_v15  ;;  %v6387_v0 = vld [vmem:[#allocation2 + $0x90] sm:$0xff]  }
 0x541   :  { %v3823_v25 = vadd.f32 %v3815_v20, %v8232_v44  ;;  %v5799_v54 = vadd.f32 %v5798_v29, %v5797_v27  ;;  %v5800_v5 = vpop.f32.mrb[122].mxu0  ;;  %v6388_v20 = vld [vmem:[#allocation2 + $0x58] sm:$0xff]  }
 0x542   :  { %v3816_v16 = vmax.f32 %v3794_v8, 0.0  ;;  %v5801_v28 = vpop.f32.mrb[123].mxu0  ;;  %5265 = vmatprep.mubr.msk.bf16.mxu0 %vm7426_vm12, %v5264_v34  ;;  %v6007_v56 = vpop.f32.mrb[100].mxu1 }
 0x543   :  { %v3840_v23 = vrot.slane %v3823_v25, 6  ;;  %v3872_v9 = vrot.slane %v3823_v25, 7  ;;  %v5802_v58 = vadd.f32 %v5801_v28, %v5800_v5  ;;  %5268 = vmatmul.mubr.msk.bf16.vlgmr.msra.gmra.mrb[128].mxu0 %vm6997_vm5, %v5267_v55  ;;  %v3734_v42 = vadd.f32 %v5799_v54, %v8486_v57  ;;  %v3798_v61 = vpop.f32.mrb[101].mxu1 }
 0x544   :  { %v3824_v44 = vadd.f32 %v3816_v16, %v8236_v52  ;;  %v6008_v51 = vpop.f32.mrb[102].mxu1  ;;  %5874 = vmatpush3.bf16.msra.mxu0 %v6380_v47  ;;  %v6389_v47 = vld [vmem:[#allocation2 + $0x18] sm:$0xff]  }
 0x545   :  { %v3799_v26 = vadd.f32 %v3798_v61, %v3734_v42  ;;  %v3737_v62 = vadd.f32 %v5802_v58, %v8486_v57  ;;  %v3801_v53 = vpop.f32.mrb[103].mxu1  ;;  %v3873_v37 = vsel %vm799_vm1, %v3870_v35, %v3872_v9  ;;  %v3841_v49 = vsel %vm557_vm0, %v3838_v41, %v3840_v23  ;;  %5875 = vmatprep.subr.bf16.mxu0 %v6382_v30 }
 0x546   :  { %v3842_v2 = vrot.slane %v3824_v44, 6  ;;  %v3874_v21 = vrot.slane %v3824_v44, 7  ;;  %v8511_v31 = vpack.c.bf16 %v3824_v44, %v3823_v25 }
 0x547   :  { %v3817_v45 = vmax.f32 %v3799_v26, 0.0  ;;  %v3802_v52 = vadd.f32 %v3801_v53, %v3737_v62  ;;  %v5803_v3 = vpop.f32.mrb[124].mxu0 }
 0x548   :  { %6026 = vmatmul.mubr.bf16.vlgmr.msra.gmra.mrb[104].mxu1 %v8511_v31  ;;  %v5804_v48 = vpop.f32.mrb[125].mxu0  ;;  %v3875_v59 = vsel %vm799_vm1, %v3872_v9, %v3874_v21  ;;  %v3843_v32 = vsel %vm557_vm0, %v3840_v23, %v3842_v2  ;;  %5876 = vmatpush3.bf16.msra.mxu0 %v6383_v10 }
 0x549   :  { %v3825_v63 = vadd.f32 %v3817_v45, %v8266_v6  ;;  %v3818_v60 = vmax.f32 %v3802_v52, 0.0  ;;  %v5805_v18 = vadd.f32 %v5804_v48, %v5803_v3  ;;  %v5806_v41 = vpop.f32.mrb[126].mxu0  ;;  %v5270_v35 = vpack.c.bf16 %v3875_v59, %v3873_v37  ;;  %6034 = vmatpush3.bf16.msra.mxu1 %v8480_v36  ;;  %5877 = vmatprep.subr.bf16.mxu0 %v6385_v22  ;;  %v6391_v22 = vld [vmem:[#allocation2 + $0x60] sm:$0xff]   ;;  %v6395_v45 = vld [vmem:[#allocation2 + $0x28] sm:$0xff]   ;;  %v6397_v3 = vld [vmem:[#allocation2 + $0x70] sm:$0xff]  }
 0x54a   :  { %v5807_v19 = vpop.f32.mrb[127].mxu0  ;;  %v5273_v40 = vpack.c.bf16 %v3843_v32, %v3841_v49  ;;  %6035 = vmatprep.subr.bf16.mxu1 %v6384_v4  ;;  %v6396_v52 = vld [vmem:[#allocation2 + $0xa8] sm:$0xff]   ;;  %v6398_v48 = vld [vmem:[#allocation2 + $0x30] sm:$0xff]   ;;  %v6400_v32 = vld [vmem:[#allocation2 + $0x78] sm:$0xff]  }
 0x54b   :  { %v3844_v27 = vrot.slane %v3825_v63, 6  ;;  %v3876_v13 = vrot.slane %v3825_v63, 7  ;;  %v3826_v15 = vadd.f32 %v3818_v60, %v8279_v39  ;;  %v3742_v55 = vadd.f32 %v5805_v18, %v8486_v57  ;;  %5271 = vmatprep.mubr.msk.bf16.mxu0 %vm7607_vm14, %v5270_v35  ;;  %v6399_v59 = vld [vmem:[#allocation2 + $0xb0] sm:$0xff]   ;;  %v6402_v60 = vld [vmem:[#allocation2 + $0xb8] sm:$0xff]   ;;  %v8549_v18 = vld [vmem:[#allocation4] sm:$0xff]  }
 0x54c   :  { %v5808_v6 = vadd.f32 %v5807_v19, %v5806_v41  ;;  %5274 = vmatmul.mubr.msk.bf16.gmra.mrb[132].mxu0 %vm7111_vm7, %v5273_v40 }
 0x54d   :  { %v3846_v36 = vrot.slane %v3826_v15, 6  ;;  %v3878_v8 = vrot.slane %v3826_v15, 7  ;;  %v3807_v29 = vadd.f32 %v6007_v56, %v3742_v55  ;;  %v8524_v34 = vpack.c.bf16 %v3826_v15, %v3825_v63  ;;  %6036 = vmatpush3.bf16.msra.mxu1 %v6384_v4  ;;  %5878 = vmatpush3.bf16.msra.mxu0 %v6386_v14  ;;  %v6394_v4 = vld [vmem:[#allocation2 + $0x68] sm:$0xff]   ;;  %v6401_v63 = vld [vmem:[#allocation2 + $0x38] sm:$0xff]   ;;  %v8556_v14 = vld [vmem:[%s8648_s14] ss:$0 sm:$0xff] }
 0x54e   :  { %v3745_v25 = vadd.f32 %v5808_v6, %v8486_v57  ;;  %v3877_v39 = vsel %vm799_vm1, %v3874_v21, %v3876_v13  ;;  %v3845_v54 = vsel %vm557_vm0, %v3842_v2, %v3844_v27  ;;  %6037 = vmatprep.subr.bf16.mxu1 %v6387_v0  ;;  %5879 = vmatprep.subr.bf16.mxu0 %v6388_v20  ;;  %v6392_v2 = vld [vmem:[#allocation2 + $0x20] sm:$0xff]  }
 0x54f   :  { %v3819_v5 = vmax.f32 %v3807_v29, 0.0  ;;  %6029 = vmatprep.mubr.bf16.mxu1 %v8524_v34  ;;  %v3879_v30 = vsel %vm799_vm1, %v3876_v13, %v3878_v8  ;;  %v3847_v16 = vsel %vm557_vm0, %v3844_v27, %v3846_v36  ;;  %v6393_v21 = vld [vmem:[#allocation2 + $0xa0] sm:$0xff]  }
 0x550   :  { %v3810_v28 = vadd.f32 %v6008_v51, %v3745_v25  ;;  %v5276_v56 = vpack.c.bf16 %v3879_v30, %v3877_v39  ;;  %v5279_v23 = vpack.c.bf16 %v3847_v16, %v3845_v54 }
 0x551   :  { %v3827_v9 = vadd.f32 %v3819_v5, %v8298_v12  ;;  %6038 = vmatpush3.bf16.msra.mxu1 %v6387_v0  ;;  %5880 = vmatpush3.bf16.msra.mxu0 %v6389_v47 }
 0x552   :  { %v3820_v57 = vmax.f32 %v3810_v28, 0.0  ;;  %5277 = vmatprep.mubr.msk.bf16.mxu0 %vm7708_vm2, %v5276_v56  ;;  %5881 = vmatprep.subr.bf16.mxu0 %v6391_v22 }
 0x553   :  { %v3848_v58 = vrot.slane %v3827_v9, 6  ;;  %v3880_v42 = vrot.slane %v3827_v9, 7 }
 0x554   :  { %v3828_v61 = vadd.f32 %v3820_v57, %v8304_v24  ;;  %5280 = vmatmul.mubr.msk.bf16.gmra.mrb[136].mxu0 %vm7247_vm9, %v5279_v23  ;;  %v6390_v24 = vld [vmem:[#allocation2 + $0x98] sm:$0xff]  }
 0x555   :  { %v3881_v44 = vsel %vm799_vm1, %v3878_v8, %v3880_v42  ;;  %v3849_v51 = vsel %vm557_vm0, %v3846_v36, %v3848_v58  ;;  %6039 = vmatprep.subr.bf16.mxu1 %v6390_v24  ;;  %5882 = vmatpush3.bf16.msra.mxu0 %v6392_v2 }
 0x556   :  { %v3850_v10 = vrot.slane %v3828_v61, 6  ;;  %v3882_v26 = vrot.slane %v3828_v61, 7  ;;  %v8540_v12 = vpack.c.bf16 %v3828_v61, %v3827_v9  ;;  %6040 = vmatpush3.bf16.msra.mxu1 %v6390_v24  ;;  %5883 = vmatprep.subr.bf16.mxu0 %v6394_v4  ;;  %v6404_v24 = vld [vmem:[#allocation4 + $0x8] sm:$0xff]  }
 0x557   :  { %6041 = vmatprep.subr.bf16.mxu1 %v6393_v21 }
 0x558   :  { %6030 = vmatmul.mubr.bf16.gmra.mrb[108].mxu1 %v8540_v12  ;;  %v3883_v62 = vsel %vm799_vm1, %v3880_v42, %v3882_v26  ;;  %v3851_v53 = vsel %vm557_vm0, %v3848_v58, %v3850_v10 }
 0x559   :  { %v5282_v37 = vpack.c.bf16 %v3883_v62, %v3881_v44  ;;  %v5285_v49 = vpack.c.bf16 %v3851_v53, %v3849_v51  ;;  %5884 = vmatpush3.bf16.msra.mxu0 %v6395_v45 }
 0x55a   :  { %6042 = vmatpush3.bf16.msra.mxu1 %v6393_v21  ;;  %5885 = vmatprep.subr.bf16.mxu0 %v6397_v3 }
 0x55b   :  { %5283 = vmatprep.mubr.msk.bf16.mxu0 %vm7759_vm6, %v5282_v37  ;;  %6043 = vmatprep.subr.bf16.mxu1 %v6396_v52 }
 0x55c   :  { %5286 = vmatmul.mubr.msk.bf16.gmra.mrb[140].mxu0 %vm7317_vm11, %v5285_v49 }
 0x55d   :  { %5886 = vmatpush3.bf16.msra.mxu0 %v6398_v48 }
 0x55e   :  { %6044 = vmatpush3.bf16.msra.mxu1 %v6396_v52  ;;  %5887 = vmatprep.subr.bf16.mxu0 %v6400_v32 }
 0x55f   :  { %6045 = vmatprep.subr.bf16.mxu1 %v6399_v59 }
 0x561   :  { %5888 = vmatpush3.bf16.msra.mxu0 %v6401_v63 }
 0x562   :  { %6046 = vmatpush3.bf16.msra.mxu1 %v6399_v59  ;;  %6057 = vmatprep.subr.bf16.mxu0 %v8549_v18 }
 0x563   :  { %6047 = vmatprep.subr.bf16.mxu1 %v6402_v60 }
 0x566   :  { %6048 = vmatpush3.bf16.msra.mxu1 %v6402_v60 }
 0x567   :  { %6081 = vmatprep.subr.bf16.mxu1 %v8549_v18 }
 0x616   :  { %v5837_v41 = vpop.f32.mrb[128].mxu0 }
 0x617   :  { %v5838_v35 = vpop.f32.mrb[129].mxu0 }
 0x618   :  { %v5839_v19 = vadd.f32 %v5838_v35, %v5837_v41  ;;  %v5840_v40 = vpop.f32.mrb[130].mxu0  ;;  %v6405_v41 = vld [vmem:[#allocation4 + $0x10] sm:$0xff]  }
 0x619   :  { %v5841_v0 = vpop.f32.mrb[131].mxu0 }
 0x61a   :  { %v5842_v20 = vadd.f32 %v5841_v0, %v5840_v40  ;;  %v4147_v27 = vadd.f32 %v5839_v19, %v8556_v14 }
 0x61b   :  { %v6027_v13 = vpop.f32.mrb[104].mxu1 }
 0x61c   :  { %v4211_v15 = vpop.f32.mrb[105].mxu1  ;;  %v4150_v55 = vadd.f32 %v5842_v20, %v8556_v14 }
 0x61d   :  { %v4212_v6 = vadd.f32 %v4211_v15, %v4147_v27  ;;  %v6028_v36 = vpop.f32.mrb[106].mxu1 }
 0x61e   :  { %v4214_v8 = vpop.f32.mrb[107].mxu1 }
 0x61f   :  { %v4242_v29 = vmax.f32 %v4212_v6, 0.0  ;;  %v4215_v47 = vadd.f32 %v4214_v8, %v4150_v55  ;;  %v5843_v25 = vpop.f32.mrb[132].mxu0 }
 0x620   :  { %v5844_v39 = vpop.f32.mrb[133].mxu0 }
 0x621   :  { %v4258_v54 = vrot.slane %v4242_v29, 6  ;;  %v4290_v5 = vrot.slane %v4242_v29, 7  ;;  %v4243_v30 = vmax.f32 %v4215_v47, 0.0  ;;  %v5845_v16 = vadd.f32 %v5844_v39, %v5843_v25  ;;  %v5846_v28 = vpop.f32.mrb[134].mxu0 }
 0x622   :  { %v5847_v56 = vpop.f32.mrb[135].mxu0 }
 0x623   :  { %v4259_v23 = vrot.slane %v4243_v30, 6  ;;  %v4291_v9 = vrot.slane %v4243_v30, 7  ;;  %v4155_v57 = vadd.f32 %v5845_v16, %v8556_v14  ;;  %v5848_v58 = vadd.f32 %v5847_v56, %v5846_v28 }
 0x624   :  { %v4324_v42 = vpack.c.bf16 %v4243_v30, %v4242_v29  ;;  %v4281_v61 = vsel %vm557_vm0, 0.0, %v4258_v54  ;;  %v4313_v44 = vsel %vm799_vm1, 0.0, %v4290_v5 }
 0x625   :  { %v4260_v51 = vsel %vm557_vm0, %v4258_v54, %v4259_v23  ;;  %v4292_v10 = vsel %vm799_vm1, %v4290_v5, %v4291_v9  ;;  %v4220_v62 = vadd.f32 %v6027_v13, %v4155_v57  ;;  %v4158_v53 = vadd.f32 %v5848_v58, %v8556_v14  ;;  %v6406_v54 = vld [vmem:[#allocation4 + $0x18] sm:$0xff]  }
 0x626   :  { %v5316_v26 = vpack.c.bf16 %v4260_v51, %v4281_v61  ;;  %6049 = vmatprep.mubr.bf16.mxu1 %v4324_v42  ;;  %v5313_v37 = vpack.c.bf16 %v4292_v10, %v4313_v44 }
 0x627   :  { %v5849_v49 = vpop.f32.mrb[136].mxu0  ;;  %v4244_v22 = vmax.f32 %v4220_v62, 0.0  ;;  %v4223_v2 = vadd.f32 %v6028_v36, %v4158_v53 }
 0x628   :  { %v5850_v21 = vpop.f32.mrb[137].mxu0  ;;  %5314 = vmatprep.mubr.msk.bf16.mxu0 %vm7426_vm12, %v5313_v37 }
 0x629   :  { %v5851_v4 = vadd.f32 %v5850_v21, %v5849_v49  ;;  %v5852_v45 = vpop.f32.mrb[138].mxu0  ;;  %5317 = vmatmul.mubr.msk.bf16.vlgmr.msra.gmra.mrb[144].mxu0 %vm6997_vm5, %v5316_v26  ;;  %v4261_v52 = vrot.slane %v4244_v22, 6  ;;  %v4293_v3 = vrot.slane %v4244_v22, 7  ;;  %v4245_v48 = vmax.f32 %v4223_v2, 0.0  ;;  %v6407_v26 = vld [vmem:[#allocation4 + $0x20] sm:$0xff]  }
 0x62a   :  { %v5853_v59 = vpop.f32.mrb[139].mxu0  ;;  %6058 = vmatpush3.bf16.msra.mxu0 %v8549_v18 }
 0x62b   :  { %v5854_v32 = vadd.f32 %v5853_v59, %v5852_v45  ;;  %v6031_v63 = vpop.f32.mrb[108].mxu1  ;;  %v4163_v60 = vadd.f32 %v5851_v4, %v8556_v14  ;;  %6059 = vmatprep.subr.bf16.mxu0 %v6404_v24  ;;  %v4263_v35 = vrot.slane %v4245_v48, 6  ;;  %v4295_v50 = vrot.slane %v4245_v48, 7  ;;  %v6409_v59 = vld [vmem:[#allocation4 + $0x30] sm:$0xff]  }
 0x62c   :  { %v4327_v19 = vpack.c.bf16 %v4245_v48, %v4244_v22  ;;  %v4227_v40 = vpop.f32.mrb[109].mxu1  ;;  %v4294_v0 = vsel %vm799_vm1, %v4291_v9, %v4293_v3  ;;  %v4262_v13 = vsel %vm557_vm0, %v4259_v23, %v4261_v52 }
 0x62d   :  { %v4228_v46 = vadd.f32 %v4227_v40, %v4163_v60  ;;  %v6032_v20 = vpop.f32.mrb[110].mxu1  ;;  %v4166_v27 = vadd.f32 %v5854_v32, %v8556_v14  ;;  %v4296_v55 = vsel %vm799_vm1, %v4293_v3, %v4295_v50  ;;  %v4264_v6 = vsel %vm557_vm0, %v4261_v52, %v4263_v35 }
 0x62e   :  { %6050 = vmatmul.mubr.bf16.vlgmr.msra.gmra.mrb[112].mxu1 %v4327_v19  ;;  %v4230_v15 = vpop.f32.mrb[111].mxu1  ;;  %6060 = vmatpush3.bf16.msra.mxu0 %v6404_v24  ;;  %v5319_v47 = vpack.c.bf16 %v4296_v55, %v4294_v0  ;;  %v5322_v25 = vpack.c.bf16 %v4264_v6, %v4262_v13 }
 0x62f   :  { %v4246_v36 = vmax.f32 %v4228_v46, 0.0  ;;  %6089 = vmatpush3.bf16.msra.mxu1 %v8549_v18  ;;  %v4231_v8 = vadd.f32 %v4230_v15, %v4166_v27  ;;  %v5855_v29 = vpop.f32.mrb[140].mxu0  ;;  %6061 = vmatprep.subr.bf16.mxu0 %v6405_v41 }
 0x630   :  { %v5856_v39 = vpop.f32.mrb[141].mxu0  ;;  %6082 = vmatprep.subr.bf16.mxu1 %v6404_v24  ;;  %5320 = vmatprep.mubr.msk.bf16.mxu0 %vm7607_vm14, %v5319_v47 }
 0x631   :  { %v4265_v5 = vrot.slane %v4246_v36, 6  ;;  %v4297_v30 = vrot.slane %v4246_v36, 7  ;;  %v4247_v16 = vmax.f32 %v4231_v8, 0.0  ;;  %v5857_v28 = vadd.f32 %v5856_v39, %v5855_v29  ;;  %v5858_v56 = vpop.f32.mrb[142].mxu0  ;;  %5323 = vmatmul.mubr.msk.bf16.gmra.mrb[148].mxu0 %vm7111_vm7, %v5322_v25 }
 0x632   :  { %v5859_v18 = vpop.f32.mrb[143].mxu0  ;;  %6062 = vmatpush3.bf16.msra.mxu0 %v6405_v41 }
 0x633   :  { %v4267_v23 = vrot.slane %v4247_v16, 6  ;;  %v4299_v9 = vrot.slane %v4247_v16, 7  ;;  %v4171_v57 = vadd.f32 %v5857_v28, %v8556_v14  ;;  %6090 = vmatpush3.bf16.msra.mxu1 %v6404_v24  ;;  %v5860_v58 = vadd.f32 %v5859_v18, %v5858_v56  ;;  %6063 = vmatprep.subr.bf16.mxu0 %v6406_v54  ;;  %v6408_v24 = vld [vmem:[#allocation4 + $0x28] sm:$0xff]  }
 0x634   :  { %6083 = vmatprep.subr.bf16.mxu1 %v6405_v41  ;;  %v4330_v42 = vpack.c.bf16 %v4247_v16, %v4246_v36  ;;  %v4298_v61 = vsel %vm799_vm1, %v4295_v50, %v4297_v30  ;;  %v4266_v11 = vsel %vm557_vm0, %v4263_v35, %v4265_v5 }
 0x635   :  { %v4236_v44 = vadd.f32 %v6031_v63, %v4171_v57  ;;  %v4174_v51 = vadd.f32 %v5860_v58, %v8556_v14  ;;  %v4300_v38 = vsel %vm799_vm1, %v4297_v30, %v4299_v9  ;;  %v4268_v10 = vsel %vm557_vm0, %v4265_v5, %v4267_v23  ;;  %v6410_v63 = vld [vmem:[#allocation4 + $0x38] sm:$0xff]  }
 0x636   :  { %6053 = vmatprep.mubr.bf16.mxu1 %v4330_v42  ;;  %v5325_v62 = vpack.c.bf16 %v4300_v38, %v4298_v61  ;;  %v5328_v53 = vpack.c.bf16 %v4268_v10, %v4266_v11  ;;  %6064 = vmatpush3.bf16.msra.mxu0 %v6406_v54 }
 0x637   :  { %v4248_v37 = vmax.f32 %v4236_v44, 0.0  ;;  %v4239_v49 = vadd.f32 %v6032_v20, %v4174_v51  ;;  %6091 = vmatpush3.bf16.msra.mxu1 %v6405_v41  ;;  %6065 = vmatprep.subr.bf16.mxu0 %v6407_v26 }
 0x638   :  { %5326 = vmatprep.mubr.msk.bf16.mxu0 %vm7708_vm2, %v5325_v62  ;;  %6084 = vmatprep.subr.bf16.mxu1 %v6406_v54 }
 0x639   :  { %v4269_v22 = vrot.slane %v4248_v37, 6  ;;  %v4301_v2 = vrot.slane %v4248_v37, 7  ;;  %v4249_v14 = vmax.f32 %v4239_v49, 0.0  ;;  %5329 = vmatmul.mubr.msk.bf16.gmra.mrb[152].mxu0 %vm7247_vm9, %v5328_v53  ;;  %v5336_v49 = vld [vmem:[%s8652_s18] ss:$0 sm:$0xff] }
 0x63a   :  { %6066 = vmatpush3.bf16.msra.mxu0 %v6407_v26 }
 0x63b   :  { %v4271_v21 = vrot.slane %v4249_v14, 6  ;;  %v4303_v4 = vrot.slane %v4249_v14, 7  ;;  %6092 = vmatpush3.bf16.msra.mxu1 %v6406_v54  ;;  %v4333_v45 = vpack.c.bf16 %v4249_v14, %v4248_v37  ;;  %v4302_v52 = vsel %vm799_vm1, %v4299_v9, %v4301_v2  ;;  %6067 = vmatprep.subr.bf16.mxu0 %v6408_v24 }
 0x63c   :  { %6085 = vmatprep.subr.bf16.mxu1 %v6407_v26  ;;  %v4270_v33 = vsel %vm557_vm0, %v4267_v23, %v4269_v22 }
 0x63d   :  { %6054 = vmatmul.mubr.bf16.gmra.mrb[116].mxu1 %v4333_v45  ;;  %v4304_v3 = vsel %vm799_vm1, %v4301_v2, %v4303_v4  ;;  %v4272_v48 = vsel %vm557_vm0, %v4269_v22, %v4271_v21 }
 0x63e   :  { %6077 = vmatprep.mubr.bf16.mxu1 %v8524_v34  ;;  %v5331_v43 = vpack.c.bf16 %v4304_v3, %v4302_v52  ;;  %v5334_v32 = vpack.c.bf16 %v4272_v48, %v4270_v33  ;;  %6068 = vmatpush3.bf16.msra.mxu0 %v6408_v24 }
 0x63f   :  { %6093 = vmatpush3.bf16.msra.mxu1 %v6407_v26  ;;  %6069 = vmatprep.subr.bf16.mxu0 %v6409_v59 }
 0x640   :  { %5332 = vmatprep.mubr.msk.bf16.mxu0 %vm7759_vm6, %v5331_v43  ;;  %6086 = vmatprep.subr.bf16.mxu1 %v6408_v24 }
 0x641   :  { %5335 = vmatmul.mubr.msk.bf16.gmra.mrb[156].mxu0 %vm7317_vm11, %v5334_v32 }
 0x642   :  { %6070 = vmatpush3.bf16.msra.mxu0 %v6409_v59  ;;  %6073 = vmatprep.mubr.bf16.mxu0 %v8495_v17 }
 0x643   :  { %6094 = vmatpush3.bf16.msra.mxu1 %v6408_v24  ;;  %6071 = vmatprep.subr.bf16.mxu0 %v6410_v63 }
 0x644   :  { %6087 = vmatprep.subr.bf16.mxu1 %v6409_v59 }
 0x646   :  { %6072 = vmatpush3.bf16.msra.mxu0 %v6410_v63 }
 0x647   :  { %6095 = vmatpush3.bf16.msra.mxu1 %v6409_v59 }
 0x648   :  { %6088 = vmatprep.subr.bf16.mxu1 %v6410_v63 }
 0x649   :  { %6074 = vmatmul.mubr.bf16.vlgmr.msra.gmra.mrb[160].mxu0 %v8511_v31 }
 0x64b   :  { %6096 = vmatpush3.bf16.msra.mxu1 %v6410_v63 }
 0x64e   :  { %6078 = vmatmul.mubr.bf16.vlgmr.msra.gmra.mrb[120].mxu1 %v8540_v12 }
 0x6fc   :  { %v5889_v7 = vpop.f32.mrb[144].mxu0 }
 0x6fd   :  { %v5890_v34 = vpop.f32.mrb[145].mxu0 }
 0x6fe   :  { %v5891_v60 = vadd.f32 %v5890_v34, %v5889_v7  ;;  %v5892_v41 = vpop.f32.mrb[146].mxu0 }
 0x6ff   :  { %v5893_v35 = vpop.f32.mrb[147].mxu0 }
 0x700   :  { %v5894_v17 = vadd.f32 %v5893_v35, %v5892_v41  ;;  %v4568_v50 = vadd.f32 %v5891_v60, %v5287_v1 }
 0x701   :  { %v6051_v19 = vpop.f32.mrb[112].mxu1 }
 0x702   :  { %v4632_v40 = vpop.f32.mrb[113].mxu1  ;;  %v4571_v0 = vadd.f32 %v5894_v17, %v5287_v1 }
 0x703   :  { %v4633_v46 = vadd.f32 %v4632_v40, %v4568_v50  ;;  %v6052_v20 = vpop.f32.mrb[114].mxu1 }
 0x704   :  { %v4635_v31 = vpop.f32.mrb[115].mxu1  ;;  %v5895_v13 = vpop.f32.mrb[148].mxu0 }
 0x705   :  { %v4636_v27 = vadd.f32 %v4635_v31, %v4571_v0  ;;  %v5896_v12 = vpop.f32.mrb[149].mxu0  ;;  %v4663_v4 = vmax.f32 %v4633_v46, 0.0 }
 0x706   :  { %v5897_v15 = vadd.f32 %v5896_v12, %v5895_v13  ;;  %v5898_v55 = vpop.f32.mrb[150].mxu0 }
 0x707   :  { %v5899_v6 = vpop.f32.mrb[151].mxu0  ;;  %v4664_v43 = vmax.f32 %v4636_v27, 0.0 }
 0x708   :  { %v4576_v36 = vadd.f32 %v5897_v15, %v5287_v1  ;;  %v5900_v8 = vadd.f32 %v5899_v6, %v5898_v55 }
 0x70a   :  { %v4641_v29 = vadd.f32 %v6051_v19, %v4576_v36  ;;  %v4579_v47 = vadd.f32 %v5900_v8, %v5287_v1 }
 0x70c   :  { %v4644_v25 = vadd.f32 %v6052_v20, %v4579_v47  ;;  %v5901_v39 = vpop.f32.mrb[152].mxu0  ;;  %v4665_v2 = vmax.f32 %v4641_v29, 0.0 }
 0x70d   :  { %v5902_v54 = vpop.f32.mrb[153].mxu0 }
 0x70e   :  { %v5903_v5 = vadd.f32 %v5902_v54, %v5901_v39  ;;  %v5904_v30 = vpop.f32.mrb[154].mxu0  ;;  %v4666_v3 = vmax.f32 %v4644_v25, 0.0 }
 0x70f   :  { %v5905_v16 = vpop.f32.mrb[155].mxu0 }
 0x710   :  { %v6055_v28 = vpop.f32.mrb[116].mxu1  ;;  %v5906_v56 = vadd.f32 %v5905_v16, %v5904_v30  ;;  %v4584_v18 = vadd.f32 %v5903_v5, %v5287_v1 }
 0x711   :  { %v4648_v23 = vpop.f32.mrb[117].mxu1 }
 0x712   :  { %v6056_v9 = vpop.f32.mrb[118].mxu1  ;;  %v4649_v57 = vadd.f32 %v4648_v23, %v4584_v18  ;;  %v4587_v58 = vadd.f32 %v5906_v56, %v5287_v1 }
 0x713   :  { %v4651_v42 = vpop.f32.mrb[119].mxu1 }
 0x714   :  { %v4652_v61 = vadd.f32 %v4651_v42, %v4587_v58  ;;  %v5907_v11 = vpop.f32.mrb[156].mxu0  ;;  %v4667_v35 = vmax.f32 %v4649_v57, 0.0 }
 0x715   :  { %v5908_v44 = vpop.f32.mrb[157].mxu0 }
 0x716   :  { %v5909_v51 = vadd.f32 %v5908_v44, %v5907_v11  ;;  %v5910_v38 = vpop.f32.mrb[158].mxu0  ;;  %v4668_v31 = vmax.f32 %v4652_v61, 0.0 }
 0x717   :  { %v5911_v10 = vpop.f32.mrb[159].mxu0 }
 0x718   :  { %v4592_v26 = vadd.f32 %v5909_v51, %v5287_v1  ;;  %v5912_v62 = vadd.f32 %v5911_v10, %v5910_v38 }
 0x71a   :  { %v4657_v53 = vadd.f32 %v6055_v28, %v4592_v26  ;;  %v4595_v37 = vadd.f32 %v5912_v62, %v5287_v1 }
 0x71c   :  { %v4660_v24 = vadd.f32 %v6056_v9, %v4595_v37  ;;  %v6075_v22 = vpop.f32.mrb[160].mxu0  ;;  %v4669_v1 = vmax.f32 %v4657_v53, 0.0 }
 0x71d   :  { %v4785_v14 = vadd.f32 %v6075_v22, %v5336_v49  ;;  %v4776_v21 = vpop.f32.mrb[161].mxu0 }
 0x71e   :  { %v4777_v45 = vadd.f32 %v5336_v49, %v4776_v21  ;;  %v6076_v52 = vpop.f32.mrb[162].mxu0  ;;  %v4670_v0 = vmax.f32 %v4660_v24, 0.0 }
 0x71f   :  { %v4809_v33 = vadd.f32 %v4785_v14, %v4665_v2  ;;  %v4788_v48 = vadd.f32 %v6076_v52, %v5336_v49  ;;  %v4779_v59 = vpop.f32.mrb[163].mxu0 }
 0x720   :  { %v4807_v32 = vadd.f32 %v4777_v45, %v4663_v4  ;;  %v4780_v63 = vadd.f32 %v5336_v49, %v4779_v59 }
 0x721   :  { %v6079_v7 = vpop.f32.mrb[120].mxu1  ;;  %4817 = vst [vmem:[%s8653_s19 + $0x10] sm:$0xff] %v4809_v33  ;;  %v4810_v34 = vadd.f32 %v4788_v48, %v4666_v3 }
 0x722   :  { %v4801_v60 = vadd.f32 %v6079_v7, %v5336_v49  ;;  %v4792_v41 = vpop.f32.mrb[121].mxu1  ;;  %4815 = vst [vmem:[%s8653_s19] sm:$0xff] %v4807_v32  ;;  %v4808_v17 = vadd.f32 %v4780_v63, %v4664_v43 }
 0x723   :  { %v4793_v50 = vadd.f32 %v5336_v49, %v4792_v41  ;;  %v6080_v19 = vpop.f32.mrb[122].mxu1  ;;  %4818 = vst [vmem:[%s8653_s19 + $0x18] sm:$0xff] %v4810_v34 }
 0x724   :  { %v4813_v40 = vadd.f32 %v4801_v60, %v4669_v1  ;;  %v4804_v46 = vadd.f32 %v6080_v19, %v5336_v49  ;;  %v4795_v20 = vpop.f32.mrb[123].mxu1  ;;  %4816 = vst [vmem:[%s8653_s19 + $0x8] sm:$0xff] %v4808_v17 }
 0x725   :  { %v4811_v27 = vadd.f32 %v4793_v50, %v4667_v35  ;;  %v4796_v13 = vadd.f32 %v5336_v49, %v4795_v20 }
 0x726   :  { %4821 = vst [vmem:[%s8653_s19 + $0x30] sm:$0xff] %v4813_v40  ;;  %v4814_v12 = vadd.f32 %v4804_v46, %v4670_v0 }
 0x727   :  { %4819 = vst [vmem:[%s8653_s19 + $0x20] sm:$0xff] %v4811_v27  ;;  %v4812_v15 = vadd.f32 %v4796_v13, %v4668_v31 }
 0x728   :  { %4822 = vst [vmem:[%s8653_s19 + $0x38] sm:$0xff] %v4814_v12 }
 0x729   :  { %4820 = vst [vmem:[%s8653_s19 + $0x28] sm:$0xff] %v4812_v15 }
 0x72a   :  { %4827 = vsyncpa [#allocation3], 1 }
 0x72b   :  { %4828 = vsyncpa [#allocation5], 1 }

</bundles_post_ra>
